<compile_context>
chip_gen: v5e
topology: v5e:2x2
jax: 0.10.0
libtpu: 0.0.40
codegen_flags: <defaults>
</compile_context>

<pallas_src>
import functools

import jax
import jax.numpy as jnp
import numpy as np
from jax import lax
from jax.experimental import pallas as pl
from jax.experimental.pallas import tpu as pltpu


# Row layout of the packed bias slab (built in the wrapper).
_R_BQ, _R_BKV, _R_BIH, _R_BHH, _R_B1, _R_B2 = 0, 1, 2, 3, 4, 5
_N_VEC_ROWS = 6


# ----------------------------- Pallas kernel --------------------------------
def _slot_attention_kernel(
    x_ref, s0_ref, vec_ref, w_ref, w2_ref,
    out_ref,
    *, d, n_tok, n_slot, bg, iters, hidden, bf16,
):
    eps = 1e-8        # slot-attention eps
    ln_eps = 1e-5     # torch.nn.LayerNorm default eps
    ms = bg * n_slot  # stacked slot rows
    inv_d = 1.0 / d

    # ---- unpack the weight slab with static lane slices (done once) --------
    w = w_ref[...]                      # (d, 9d + hidden)
    wq = w[:, :d]                       # ln_sl gain + 1/sqrt(d) folded in
    wkv = w[:, d:3 * d]                 # fused K|V, ln_in gain folded in
    wih = w[:, 3 * d:6 * d]             # GRU input gates  [r|z|n]
    whh = w[:, 6 * d:9 * d]             # GRU hidden gates [r|z|n]
    w1 = w[:, 9 * d:]                   # MLP fc1, ln_ff gain folded in
    w2 = w2_ref[...]                    # (hidden, d)

    vecs = vec_ref[...]                 # (6, VW) packed biases

    def row(r, width):                  # static (1, width) slice of the slab
        return vecs[r:r + 1, :width]

    def normalize(x):
        # one-pass moments: s1 and s2 are independent reductions.
        s1 = jnp.sum(x, axis=-1, keepdims=True)
        s2 = jnp.sum(x * x, axis=-1, keepdims=True)
        mu = s1 * inv_d
        var = s2 * inv_d - mu * mu
        return (x - mu) * lax.rsqrt(var + ln_eps)

    def mm(a, b):
        # Non-recurrent matmuls may optionally run in bf16 (fewer MXU passes).
        if bf16:
            a = a.astype(jnp.bfloat16)
            b = b.astype(jnp.bfloat16)
        return jnp.dot(a, b, preferred_element_type=jnp.float32)

    # ---- encode inputs once: normalize -> fused K|V projection -------------
    xn = normalize(x_ref[...])                                     # (bg*n, d)
    kv = mm(xn, wkv) + row(_R_BKV, 2 * d)                          # (bg*n, 2d)
    k = kv[:, :d]
    v = kv[:, d:]
    # loop-invariant per-batch views; k is transposed ONCE, outside the loop.
    kT_parts = [k[b_i * n_tok:(b_i + 1) * n_tok, :].T for b_i in range(bg)]   # (d, n)
    v_parts = [v[b_i * n_tok:(b_i + 1) * n_tok, :] for b_i in range(bg)]      # (n, d)

    # ---- hoist loop-invariant broadcasts (JAX does not CSE broadcast_in_dim)
    bq = jnp.broadcast_to(row(_R_BQ, d), (ms, d))
    bih = jnp.broadcast_to(row(_R_BIH, 3 * d), (ms, 3 * d))
    bhh = jnp.broadcast_to(row(_R_BHH, 3 * d), (ms, 3 * d))
    b1 = jnp.broadcast_to(row(_R_B1, hidden), (ms, hidden))
    b2 = jnp.broadcast_to(row(_R_B2, d), (ms, d))

    def step(_, slots):                                  # slots: (ms, d) f32 carry
        # GRU hidden-side gates depend only on the carry -> issued first so the
        # slots@Whh matmul overlaps the whole attention chain.  Kept f32.
        hid = jnp.dot(slots, whh, preferred_element_type=jnp.float32) + bhh   # (ms, 3d)

        s_n = normalize(slots)
        # ln_sl affine and the 1/sqrt(d) scale are folded into wq / bq.
        q = mm(s_n, wq) + bq                                                  # (ms, d)

        upd_parts = []
        for b_i in range(bg):                            # static, tiny (bg <= 2)
            qb = q[b_i * n_slot:(b_i + 1) * n_slot, :]   # (S, d) aligned slice
            dots = jnp.dot(qb, kT_parts[b_i],
                           preferred_element_type=jnp.float32)                # (S, n)
            # softmax over the SLOT axis (torch dim=1), divides on the EUP
            dots = dots - jnp.max(dots, axis=0, keepdims=True)
            a = jnp.exp(dots)
            a = a * pl.reciprocal(jnp.sum(a, axis=0, keepdims=True), approx=True)
            a = a + eps
            # renormalize over the token axis
            a = a * pl.reciprocal(jnp.sum(a, axis=1, keepdims=True), approx=True)
            upd_parts.append(
                jnp.dot(a, v_parts[b_i], preferred_element_type=jnp.float32))
        upd = jnp.concatenate(upd_parts, axis=0) if bg > 1 else upd_parts[0]  # (ms, d)

        # ---- GRUCell(upd, slots), gate order [r|z|n]; recurrence stays f32 ----
        inp = jnp.dot(upd, wih, preferred_element_type=jnp.float32) + bih     # (ms, 3d)
        r = jax.nn.sigmoid(inp[:, :d] + hid[:, :d])
        z = jax.nn.sigmoid(inp[:, d:2 * d] + hid[:, d:2 * d])
        n_g = jnp.tanh(inp[:, 2 * d:] + r * hid[:, 2 * d:])
        slots = (1.0 - z) * n_g + z * slots

        # ---- residual MLP (ln_ff affine folded into w1/b1) --------------------
        ff = normalize(slots)
        h = jnp.maximum(mm(ff, w1) + b1, 0.0)
        return slots + mm(h, w2) + b2

    # iters refinement steps + 1 final step (detach is a no-op in forward);
    # fori_loop bounds live ranges, unroll=True keeps LLO scheduler visibility.
    out_ref[...] = lax.fori_loop(0, iters + 1, step, s0_ref[...], unroll=True)


# ------------------------------- wrapper -------------------------------------
def _default_num_programs(batch, n_tok):
    """Default grid=(1,).  Only shard the batch across the two v7x TensorCores
    when each core gets a non-trivial amount of rows (bg*n_tok >= 128); at tiny
    batches the split just duplicates weight DMAs and the prologue."""
    try:
        kind = jax.devices()[0].device_kind.lower()
    except Exception:
        kind = ""
    if ("v7" in kind or "7x" in kind) and batch % 2 == 0 and (batch // 2) * n_tok >= 128:
        return 2
    return 1


def slot_attention_pallas(inputs, params, *, num_slots, iters,
                          num_programs=None, bf16_matmuls=False):
    b, n, d = inputs.shape
    hidden = params["w1"].shape[1]
    if num_programs is None:
        num_programs = _default_num_programs(b, n)
    assert b % num_programs == 0
    bg = b // num_programs

    f32 = jnp.float32
    hp = lax.Precision.HIGHEST
    scale = float(d) ** -0.5

    # ----- host-side prep: fold LN affines + scale into weights, fuse K|V ----
    g_in = params["ln_in_g"].astype(f32).reshape(d, 1)
    be_in = params["ln_in_b"].astype(f32).reshape(1, d)
    g_sl = params["ln_sl_g"].astype(f32).reshape(d, 1)
    be_sl = params["ln_sl_b"].astype(f32).reshape(1, d)
    g_ff = params["ln_ff_g"].astype(f32).reshape(d, 1)
    be_ff = params["ln_ff_b"].astype(f32).reshape(1, d)

    wkv_raw = jnp.concatenate([params["wk"], params["wv"]], axis=1).astype(f32)  # (d, 2d)
    bkv_raw = jnp.concatenate([params["bk"], params["bv"]], axis=1).astype(f32)  # (1, 2d)
    wkv = wkv_raw * g_in
    bkv = jnp.dot(be_in, wkv_raw, precision=hp) + bkv_raw

    wq_raw = params["wq"].astype(f32)
    bq_raw = params["bq"].astype(f32).reshape(1, d)
    wq = wq_raw * g_sl * scale
    bq = (jnp.dot(be_sl, wq_raw, precision=hp) + bq_raw) * scale

    w1_raw = params["w1"].astype(f32)
    b1_raw = params["b1"].astype(f32).reshape(1, hidden)
    w1 = w1_raw * g_ff
    b1 = jnp.dot(be_ff, w1_raw, precision=hp) + b1_raw

    wih = params["wih"].astype(f32)                    # (d, 3d), gate order [r|z|n]
    whh = params["whh"].astype(f32)
    bih = params["bih"].astype(f32).reshape(1, 3 * d)
    bhh = params["bhh"].astype(f32).reshape(1, 3 * d)
    w2 = params["w2"].astype(f32)
    b2 = params["b2"].astype(f32).reshape(1, d)

    # one lane-concatenated weight slab (d rows each) -> one operand / one DMA
    w_slab = jnp.concatenate([wq, wkv, wih, whh, w1], axis=1)      # (d, 9d+hidden)

    # one small bias slab
    vw = max(hidden, 3 * d, 128)

    def pad_row(vec):
        vec = jnp.asarray(vec, f32).reshape(1, -1)
        return jnp.pad(vec, ((0, 0), (0, vw - vec.shape[1])))

    vec_slab = jnp.concatenate(
        [pad_row(bq), pad_row(bkv), pad_row(bih), pad_row(bhh),
         pad_row(b1), pad_row(b2)], axis=0)                        # (6, vw)
    assert vec_slab.shape[0] == _N_VEC_ROWS

    # batch stacked into the sublane axis (no in-kernel reshapes needed)
    x2 = inputs.astype(f32).reshape(b * n, d)
    slots0 = jnp.broadcast_to(params["query_pos"].astype(f32),
                              (b, num_slots, d)).reshape(b * num_slots, d)

    def whole(arr):
        return pl.BlockSpec(arr.shape, lambda i: (0, 0))

    in_specs = [
        pl.BlockSpec((bg * n, d), lambda i: (i, 0)),             # stacked inputs
        pl.BlockSpec((bg * num_slots, d), lambda i: (i, 0)),     # stacked init slots
        whole(vec_slab),
        whole(w_slab),
        whole(w2),
    ]
    out_specs = pl.BlockSpec((bg * num_slots, d), lambda i: (i, 0))

    kernel = functools.partial(
        _slot_attention_kernel, d=d, n_tok=n, n_slot=num_slots, bg=bg,
        iters=iters, hidden=hidden, bf16=bf16_matmuls)

    fn = pl.pallas_call(
        kernel,
        out_shape=jax.ShapeDtypeStruct((b * num_slots, d), f32),
        grid_spec=pltpu.PrefetchScalarGridSpec(
            num_scalar_prefetch=0,
            grid=(num_programs,),
            in_specs=in_specs,
            out_specs=out_specs,
        ),
        compiler_params=pltpu.CompilerParams(
            dimension_semantics=("parallel",)),
    )

    out = fn(x2, slots0, vec_slab, w_slab, w2)
    return out.reshape(b, num_slots, d)


# --------------------------- pure-JAX reference ------------------------------
def slot_attention_ref(inputs, params, *, num_slots, iters):
    hp = jax.lax.Precision.HIGHEST
    b, n, d = inputs.shape
    scale = float(d) ** -0.5
    eps = 1e-8

    def ln(x, g, b_):
        mu = x.mean(-1, keepdims=True)
        var = ((x - mu) ** 2).mean(-1, keepdims=True)
        return (x - mu) / jnp.sqrt(var + 1e-5) * g + b_

    x = ln(inputs, params["ln_in_g"], params["ln_in_b"])
    k = jnp.einsum("bnd,de->bne", x, params["wk"], precision=hp) + params["bk"]
    v = jnp.einsum("bnd,de->bne", x, params["wv"], precision=hp) + params["bv"]
    slots = jnp.broadcast_to(params["query_pos"], (b, num_slots, d))

    def step(slots):
        s_n = ln(slots, params["ln_sl_g"], params["ln_sl_b"])
        q = jnp.einsum("bsd,de->bse", s_n, params["wq"], precision=hp) + params["bq"]
        dots = jnp.einsum("bid,bjd->bij", q, k, precision=hp) * scale
        attn = jax.nn.softmax(dots, axis=1) + eps
        attn = attn / attn.sum(-1, keepdims=True)
        upd = jnp.einsum("bjd,bij->bid", v, attn, precision=hp)
        gx = jnp.einsum("bsd,de->bse", upd, params["wih"], precision=hp) + params["bih"]
        gh = jnp.einsum("bsd,de->bse", slots, params["whh"], precision=hp) + params["bhh"]
        r = jax.nn.sigmoid(gx[..., :d] + gh[..., :d])
        z = jax.nn.sigmoid(gx[..., d:2 * d] + gh[..., d:2 * d])
        ng = jnp.tanh(gx[..., 2 * d:] + r * gh[..., 2 * d:])
        slots2 = (1.0 - z) * ng + z * slots
        ff = ln(slots2, params["ln_ff_g"], params["ln_ff_b"])
        h = jax.nn.relu(jnp.einsum("bsd,dh->bsh", ff, params["w1"], precision=hp) + params["b1"])
        return slots2 + jnp.einsum("bsh,hd->bsd", h, params["w2"], precision=hp) + params["b2"]

    for _ in range(iters + 1):
        slots = step(slots)
    return slots


# --------------------------------- main --------------------------------------
if __name__ == "__main__":
    B, N, D = 2, 16, 32          # batch, tokens, feature dim
    NUM_SLOTS, ITERS = 8, 3
    HIDDEN = max(D, 128)         # matches hidden_dim = max(dim, 128)

    key = jax.random.PRNGKey(0)
    ks = jax.random.split(key, 24)

    def nrm(k_, shape, s=0.1):
        return jax.random.normal(k_, shape, dtype=jnp.float32) * s

    params = {
        "query_pos": jax.random.uniform(ks[0], (1, NUM_SLOTS, D), dtype=jnp.float32),
        "ln_in_g": jnp.ones((1, D), jnp.float32),  "ln_in_b": jnp.zeros((1, D), jnp.float32),
        "ln_sl_g": jnp.ones((1, D), jnp.float32),  "ln_sl_b": jnp.zeros((1, D), jnp.float32),
        "ln_ff_g": jnp.ones((1, D), jnp.float32),  "ln_ff_b": jnp.zeros((1, D), jnp.float32),
        "wq": nrm(ks[1], (D, D)),          "bq": nrm(ks[2], (1, D), 0.01),
        "wk": nrm(ks[3], (D, D)),          "bk": nrm(ks[4], (1, D), 0.01),
        "wv": nrm(ks[5], (D, D)),          "bv": nrm(ks[6], (1, D), 0.01),
        "wih": nrm(ks[7], (D, 3 * D)),     "bih": nrm(ks[8], (1, 3 * D), 0.01),
        "whh": nrm(ks[9], (D, 3 * D)),     "bhh": nrm(ks[10], (1, 3 * D), 0.01),
        "w1": nrm(ks[11], (D, HIDDEN)),    "b1": nrm(ks[12], (1, HIDDEN), 0.01),
        "w2": nrm(ks[13], (HIDDEN, D)),    "b2": nrm(ks[14], (1, D), 0.01),
    }

    inputs = jax.random.normal(ks[15], (B, N, D), dtype=jnp.float32)

    out = slot_attention_pallas(inputs, params, num_slots=NUM_SLOTS, iters=ITERS)
    out = jax.block_until_ready(out)

    ref = jax.block_until_ready(
        slot_attention_ref(inputs, params, num_slots=NUM_SLOTS, iters=ITERS))
    np.testing.assert_allclose(np.asarray(out), np.asarray(ref), rtol=1e-2, atol=1e-2)

    print("KERNEL_OK")
</pallas_src>

<mosaic_0001>
module attributes {stable_mosaic.version = 11 : i64} {
  func.func @_slot_attention_kernel(%arg0: i32, %arg1: memref<32x32xf32, #tpu.memory_space<vmem>>, %arg2: memref<16x32xf32, #tpu.memory_space<vmem>>, %arg3: memref<6x128xf32, #tpu.memory_space<vmem>>, %arg4: memref<32x416xf32, #tpu.memory_space<vmem>>, %arg5: memref<128x32xf32, #tpu.memory_space<vmem>>, %arg6: memref<16x32xf32, #tpu.memory_space<vmem>>) attributes {dimension_semantics = [#tpu.dimension_semantics<parallel>], iteration_bounds = array<i64: 1>, scalar_prefetch = 0 : i64, scratch_operands = 0 : i64, tpu.core_type = #tpu.core_type<tc>, window_params = [{transform_indices = @transform_0, window_bounds = array<i64: 32, 32>}, {transform_indices = @transform_1, window_bounds = array<i64: 16, 32>}, {pipeline_mode = #tpu.pipeline_mode<synchronous>, transform_indices = @transform_2, window_bounds = array<i64: 6, 128>}, {pipeline_mode = #tpu.pipeline_mode<synchronous>, transform_indices = @transform_3, window_bounds = array<i64: 32, 416>}, {pipeline_mode = #tpu.pipeline_mode<synchronous>, transform_indices = @transform_4, window_bounds = array<i64: 128, 32>}, {transform_indices = @transform_5, window_bounds = array<i64: 16, 32>}]} {
    %c0 = arith.constant 0 : index
    %c0_0 = arith.constant 0 : index
    %0 = vector.load %arg4[%c0, %c0_0] : memref<32x416xf32, #tpu.memory_space<vmem>>, vector<32x416xf32>
    %1 = vector.extract_strided_slice %0 {offsets = [0, 0], sizes = [32, 32], strides = [1, 1]} : vector<32x416xf32> to vector<32x32xf32>
    %2 = vector.extract_strided_slice %0 {offsets = [0, 32], sizes = [32, 64], strides = [1, 1]} : vector<32x416xf32> to vector<32x64xf32>
    %3 = vector.extract_strided_slice %0 {offsets = [0, 96], sizes = [32, 96], strides = [1, 1]} : vector<32x416xf32> to vector<32x96xf32>
    %4 = vector.extract_strided_slice %0 {offsets = [0, 192], sizes = [32, 96], strides = [1, 1]} : vector<32x416xf32> to vector<32x96xf32>
    %5 = vector.extract_strided_slice %0 {offsets = [0, 288], sizes = [32, 128], strides = [1, 1]} : vector<32x416xf32> to vector<32x128xf32>
    %c0_1 = arith.constant 0 : index
    %c0_2 = arith.constant 0 : index
    %6 = vector.load %arg5[%c0_1, %c0_2] : memref<128x32xf32, #tpu.memory_space<vmem>>, vector<128x32xf32>
    %c0_3 = arith.constant 0 : index
    %c0_4 = arith.constant 0 : index
    %7 = vector.load %arg3[%c0_3, %c0_4] : memref<6x128xf32, #tpu.memory_space<vmem>>, vector<6x128xf32>
    %c0_5 = arith.constant 0 : index
    %c0_6 = arith.constant 0 : index
    %8 = vector.load %arg1[%c0_5, %c0_6] : memref<32x32xf32, #tpu.memory_space<vmem>>, vector<32x32xf32>
    %cst = arith.constant dense<0.000000e+00> : vector<32xf32>
    %9 = vector.multi_reduction <add>, %8, %cst [1] : vector<32x32xf32> to vector<32xf32>
    %10 = vector.shape_cast %9 : vector<32xf32> to vector<32x1xf32>
    %11 = arith.mulf %8, %8 : vector<32x32xf32>
    %cst_7 = arith.constant dense<0.000000e+00> : vector<32xf32>
    %12 = vector.multi_reduction <add>, %11, %cst_7 [1] : vector<32x32xf32> to vector<32xf32>
    %13 = vector.shape_cast %12 : vector<32xf32> to vector<32x1xf32>
    %cst_8 = arith.constant 3.125000e-02 : f32
    %14 = vector.broadcast %cst_8 : f32 to vector<32x1xf32>
    %15 = arith.mulf %10, %14 : vector<32x1xf32>
    %cst_9 = arith.constant 3.125000e-02 : f32
    %16 = vector.broadcast %cst_9 : f32 to vector<32x1xf32>
    %17 = arith.mulf %13, %16 : vector<32x1xf32>
    %18 = arith.mulf %15, %15 : vector<32x1xf32>
    %19 = arith.subf %17, %18 : vector<32x1xf32>
    %20 = vector.broadcast %15 : vector<32x1xf32> to vector<32x32xf32>
    %21 = arith.subf %8, %20 : vector<32x32xf32>
    %cst_10 = arith.constant 9.99999974E-6 : f32
    %22 = vector.broadcast %cst_10 : f32 to vector<32x1xf32>
    %23 = arith.addf %19, %22 : vector<32x1xf32>
    %24 = math.rsqrt %23 : vector<32x1xf32>
    %25 = vector.broadcast %24 : vector<32x1xf32> to vector<32x32xf32>
    %26 = arith.mulf %21, %25 : vector<32x32xf32>
    %cst_11 = arith.constant dense<0.000000e+00> : vector<32x64xf32>
    %27 = tpu.matmul %26, %2, %cst_11 {dimension_numbers = #tpu.dot_dimension_numbers<[1], [0], [0], [1], [0, 0, 1, 1], [], []>} : vector<32x32xf32>, vector<32x64xf32>, vector<32x64xf32> -> vector<32x64xf32>
    %28 = vector.extract_strided_slice %7 {offsets = [1, 0], sizes = [1, 64], strides = [1, 1]} : vector<6x128xf32> to vector<1x64xf32>
    %29 = vector.broadcast %28 : vector<1x64xf32> to vector<32x64xf32>
    %30 = arith.addf %27, %29 : vector<32x64xf32>
    %31 = vector.extract_strided_slice %30 {offsets = [0, 0], sizes = [32, 32], strides = [1, 1]} : vector<32x64xf32> to vector<32x32xf32>
    %32 = vector.extract_strided_slice %30 {offsets = [0, 32], sizes = [32, 32], strides = [1, 1]} : vector<32x64xf32> to vector<32x32xf32>
    %33 = vector.extract_strided_slice %31 {offsets = [0, 0], sizes = [16, 32], strides = [1, 1]} : vector<32x32xf32> to vector<16x32xf32>
    %34 = tpu.transpose %33, [1, 0] : vector<16x32xf32> -> vector<32x16xf32>
    %35 = vector.extract_strided_slice %31 {offsets = [16, 0], sizes = [16, 32], strides = [1, 1]} : vector<32x32xf32> to vector<16x32xf32>
    %36 = tpu.transpose %35, [1, 0] : vector<16x32xf32> -> vector<32x16xf32>
    %37 = vector.extract_strided_slice %32 {offsets = [0, 0], sizes = [16, 32], strides = [1, 1]} : vector<32x32xf32> to vector<16x32xf32>
    %38 = vector.extract_strided_slice %32 {offsets = [16, 0], sizes = [16, 32], strides = [1, 1]} : vector<32x32xf32> to vector<16x32xf32>
    %39 = vector.extract_strided_slice %7 {offsets = [0, 0], sizes = [1, 32], strides = [1, 1]} : vector<6x128xf32> to vector<1x32xf32>
    %40 = vector.shape_cast %39 : vector<1x32xf32> to vector<1x32xf32>
    %41 = vector.broadcast %40 : vector<1x32xf32> to vector<16x32xf32>
    %42 = vector.extract_strided_slice %7 {offsets = [2, 0], sizes = [1, 96], strides = [1, 1]} : vector<6x128xf32> to vector<1x96xf32>
    %43 = vector.shape_cast %42 : vector<1x96xf32> to vector<1x96xf32>
    %44 = vector.broadcast %43 : vector<1x96xf32> to vector<16x96xf32>
    %45 = vector.extract_strided_slice %7 {offsets = [3, 0], sizes = [1, 96], strides = [1, 1]} : vector<6x128xf32> to vector<1x96xf32>
    %46 = vector.shape_cast %45 : vector<1x96xf32> to vector<1x96xf32>
    %47 = vector.broadcast %46 : vector<1x96xf32> to vector<16x96xf32>
    %48 = vector.extract_strided_slice %7 {offsets = [4, 0], sizes = [1, 128], strides = [1, 1]} : vector<6x128xf32> to vector<1x128xf32>
    %49 = vector.shape_cast %48 : vector<1x128xf32> to vector<1x128xf32>
    %50 = vector.broadcast %49 : vector<1x128xf32> to vector<16x128xf32>
    %51 = vector.extract_strided_slice %7 {offsets = [5, 0], sizes = [1, 32], strides = [1, 1]} : vector<6x128xf32> to vector<1x32xf32>
    %52 = vector.shape_cast %51 : vector<1x32xf32> to vector<1x32xf32>
    %53 = vector.broadcast %52 : vector<1x32xf32> to vector<16x32xf32>
    %c0_12 = arith.constant 0 : index
    %c0_13 = arith.constant 0 : index
    %54 = vector.load %arg2[%c0_12, %c0_13] : memref<16x32xf32, #tpu.memory_space<vmem>>, vector<16x32xf32>
    %c0_i32 = arith.constant 0 : i32
    %cst_14 = arith.constant dense<0.000000e+00> : vector<16x96xf32>
    %55 = tpu.matmul %54, %4, %cst_14 {dimension_numbers = #tpu.dot_dimension_numbers<[1], [0], [0], [1], [0, 0, 1, 1], [], []>} : vector<16x32xf32>, vector<32x96xf32>, vector<16x96xf32> -> vector<16x96xf32>
    %56 = arith.addf %55, %47 : vector<16x96xf32>
    %cst_15 = arith.constant dense<0.000000e+00> : vector<16xf32>
    %57 = vector.multi_reduction <add>, %54, %cst_15 [1] : vector<16x32xf32> to vector<16xf32>
    %58 = vector.shape_cast %57 : vector<16xf32> to vector<16x1xf32>
    %59 = arith.mulf %54, %54 : vector<16x32xf32>
    %cst_16 = arith.constant dense<0.000000e+00> : vector<16xf32>
    %60 = vector.multi_reduction <add>, %59, %cst_16 [1] : vector<16x32xf32> to vector<16xf32>
    %61 = vector.shape_cast %60 : vector<16xf32> to vector<16x1xf32>
    %cst_17 = arith.constant 3.125000e-02 : f32
    %62 = vector.broadcast %cst_17 : f32 to vector<16x1xf32>
    %63 = arith.mulf %58, %62 : vector<16x1xf32>
    %cst_18 = arith.constant 3.125000e-02 : f32
    %64 = vector.broadcast %cst_18 : f32 to vector<16x1xf32>
    %65 = arith.mulf %61, %64 : vector<16x1xf32>
    %66 = arith.mulf %63, %63 : vector<16x1xf32>
    %67 = arith.subf %65, %66 : vector<16x1xf32>
    %68 = vector.broadcast %63 : vector<16x1xf32> to vector<16x32xf32>
    %69 = arith.subf %54, %68 : vector<16x32xf32>
    %cst_19 = arith.constant 9.99999974E-6 : f32
    %70 = vector.broadcast %cst_19 : f32 to vector<16x1xf32>
    %71 = arith.addf %67, %70 : vector<16x1xf32>
    %72 = math.rsqrt %71 : vector<16x1xf32>
    %73 = vector.broadcast %72 : vector<16x1xf32> to vector<16x32xf32>
    %74 = arith.mulf %69, %73 : vector<16x32xf32>
    %cst_20 = arith.constant dense<0.000000e+00> : vector<16x32xf32>
    %75 = tpu.matmul %74, %1, %cst_20 {dimension_numbers = #tpu.dot_dimension_numbers<[1], [0], [0], [1], [0, 0, 1, 1], [], []>} : vector<16x32xf32>, vector<32x32xf32>, vector<16x32xf32> -> vector<16x32xf32>
    %76 = arith.addf %75, %41 : vector<16x32xf32>
    %77 = vector.extract_strided_slice %76 {offsets = [0, 0], sizes = [8, 32], strides = [1, 1]} : vector<16x32xf32> to vector<8x32xf32>
    %cst_21 = arith.constant dense<0.000000e+00> : vector<8x16xf32>
    %78 = tpu.matmul %77, %34, %cst_21 {dimension_numbers = #tpu.dot_dimension_numbers<[1], [0], [0], [1], [0, 0, 1, 1], [], []>} : vector<8x32xf32>, vector<32x16xf32>, vector<8x16xf32> -> vector<8x16xf32>
    %cst_22 = arith.constant dense<0xFF800000> : vector<16xf32>
    %79 = vector.multi_reduction <maximumf>, %78, %cst_22 [0] : vector<8x16xf32> to vector<16xf32>
    %80 = vector.shape_cast %79 : vector<16xf32> to vector<1x16xf32>
    %81 = vector.broadcast %80 : vector<1x16xf32> to vector<8x16xf32>
    %82 = arith.subf %78, %81 : vector<8x16xf32>
    %83 = math.exp %82 : vector<8x16xf32>
    %cst_23 = arith.constant dense<0.000000e+00> : vector<16xf32>
    %84 = vector.multi_reduction <add>, %83, %cst_23 [0] : vector<8x16xf32> to vector<16xf32>
    %85 = vector.shape_cast %84 : vector<16xf32> to vector<1x16xf32>
    %86 = tpu.reciprocal %85 {approx = true} : vector<1x16xf32> -> vector<1x16xf32>
    %87 = vector.broadcast %86 : vector<1x16xf32> to vector<8x16xf32>
    %88 = arith.mulf %83, %87 : vector<8x16xf32>
    %cst_24 = arith.constant 9.99999993E-9 : f32
    %89 = vector.broadcast %cst_24 : f32 to vector<8x16xf32>
    %90 = arith.addf %88, %89 : vector<8x16xf32>
    %cst_25 = arith.constant dense<0.000000e+00> : vector<8xf32>
    %91 = vector.multi_reduction <add>, %90, %cst_25 [1] : vector<8x16xf32> to vector<8xf32>
    %92 = vector.shape_cast %91 : vector<8xf32> to vector<8x1xf32>
    %93 = tpu.reciprocal %92 {approx = true} : vector<8x1xf32> -> vector<8x1xf32>
    %94 = vector.broadcast %93 : vector<8x1xf32> to vector<8x16xf32>
    %95 = arith.mulf %90, %94 : vector<8x16xf32>
    %cst_26 = arith.constant dense<0.000000e+00> : vector<8x32xf32>
    %96 = tpu.matmul %95, %37, %cst_26 {dimension_numbers = #tpu.dot_dimension_numbers<[1], [0], [0], [1], [0, 0, 1, 1], [], []>} : vector<8x16xf32>, vector<16x32xf32>, vector<8x32xf32> -> vector<8x32xf32>
    %97 = vector.extract_strided_slice %76 {offsets = [8, 0], sizes = [8, 32], strides = [1, 1]} : vector<16x32xf32> to vector<8x32xf32>
    %cst_27 = arith.constant dense<0.000000e+00> : vector<8x16xf32>
    %98 = tpu.matmul %97, %36, %cst_27 {dimension_numbers = #tpu.dot_dimension_numbers<[1], [0], [0], [1], [0, 0, 1, 1], [], []>} : vector<8x32xf32>, vector<32x16xf32>, vector<8x16xf32> -> vector<8x16xf32>
    %cst_28 = arith.constant dense<0xFF800000> : vector<16xf32>
    %99 = vector.multi_reduction <maximumf>, %98, %cst_28 [0] : vector<8x16xf32> to vector<16xf32>
    %100 = vector.shape_cast %99 : vector<16xf32> to vector<1x16xf32>
    %101 = vector.broadcast %100 : vector<1x16xf32> to vector<8x16xf32>
    %102 = arith.subf %98, %101 : vector<8x16xf32>
    %103 = math.exp %102 : vector<8x16xf32>
    %cst_29 = arith.constant dense<0.000000e+00> : vector<16xf32>
    %104 = vector.multi_reduction <add>, %103, %cst_29 [0] : vector<8x16xf32> to vector<16xf32>
    %105 = vector.shape_cast %104 : vector<16xf32> to vector<1x16xf32>
    %106 = tpu.reciprocal %105 {approx = true} : vector<1x16xf32> -> vector<1x16xf32>
    %107 = vector.broadcast %106 : vector<1x16xf32> to vector<8x16xf32>
    %108 = arith.mulf %103, %107 : vector<8x16xf32>
    %cst_30 = arith.constant 9.99999993E-9 : f32
    %109 = vector.broadcast %cst_30 : f32 to vector<8x16xf32>
    %110 = arith.addf %108, %109 : vector<8x16xf32>
    %cst_31 = arith.constant dense<0.000000e+00> : vector<8xf32>
    %111 = vector.multi_reduction <add>, %110, %cst_31 [1] : vector<8x16xf32> to vector<8xf32>
    %112 = vector.shape_cast %111 : vector<8xf32> to vector<8x1xf32>
    %113 = tpu.reciprocal %112 {approx = true} : vector<8x1xf32> -> vector<8x1xf32>
    %114 = vector.broadcast %113 : vector<8x1xf32> to vector<8x16xf32>
    %115 = arith.mulf %110, %114 : vector<8x16xf32>
    %cst_32 = arith.constant dense<0.000000e+00> : vector<8x32xf32>
    %116 = tpu.matmul %115, %38, %cst_32 {dimension_numbers = #tpu.dot_dimension_numbers<[1], [0], [0], [1], [0, 0, 1, 1], [], []>} : vector<8x16xf32>, vector<16x32xf32>, vector<8x32xf32> -> vector<8x32xf32>
    %117 = tpu.concatenate %96, %116 in 0 : vector<8x32xf32>, vector<8x32xf32> -> vector<16x32xf32>
    %cst_33 = arith.constant dense<0.000000e+00> : vector<16x96xf32>
    %118 = tpu.matmul %117, %3, %cst_33 {dimension_numbers = #tpu.dot_dimension_numbers<[1], [0], [0], [1], [0, 0, 1, 1], [], []>} : vector<16x32xf32>, vector<32x96xf32>, vector<16x96xf32> -> vector<16x96xf32>
    %119 = arith.addf %118, %44 : vector<16x96xf32>
    %120 = vector.extract_strided_slice %119 {offsets = [0, 0], sizes = [16, 32], strides = [1, 1]} : vector<16x96xf32> to vector<16x32xf32>
    %121 = vector.extract_strided_slice %56 {offsets = [0, 0], sizes = [16, 32], strides = [1, 1]} : vector<16x96xf32> to vector<16x32xf32>
    %122 = arith.addf %120, %121 : vector<16x32xf32>
    %123 = arith.negf %122 : vector<16x32xf32>
    %124 = math.exp %123 : vector<16x32xf32>
    %cst_34 = arith.constant 1.000000e+00 : f32
    %125 = vector.broadcast %cst_34 : f32 to vector<16x32xf32>
    %126 = arith.addf %125, %124 : vector<16x32xf32>
    %127 = arith.divf %125, %126 : vector<16x32xf32>
    %128 = vector.extract_strided_slice %119 {offsets = [0, 32], sizes = [16, 32], strides = [1, 1]} : vector<16x96xf32> to vector<16x32xf32>
    %129 = vector.extract_strided_slice %56 {offsets = [0, 32], sizes = [16, 32], strides = [1, 1]} : vector<16x96xf32> to vector<16x32xf32>
    %130 = arith.addf %128, %129 : vector<16x32xf32>
    %131 = arith.negf %130 : vector<16x32xf32>
    %132 = math.exp %131 : vector<16x32xf32>
    %cst_35 = arith.constant 1.000000e+00 : f32
    %133 = vector.broadcast %cst_35 : f32 to vector<16x32xf32>
    %134 = arith.addf %133, %132 : vector<16x32xf32>
    %135 = arith.divf %133, %134 : vector<16x32xf32>
    %136 = vector.extract_strided_slice %119 {offsets = [0, 64], sizes = [16, 32], strides = [1, 1]} : vector<16x96xf32> to vector<16x32xf32>
    %137 = vector.extract_strided_slice %56 {offsets = [0, 64], sizes = [16, 32], strides = [1, 1]} : vector<16x96xf32> to vector<16x32xf32>
    %138 = arith.mulf %127, %137 : vector<16x32xf32>
    %139 = arith.addf %136, %138 : vector<16x32xf32>
    %140 = math.tanh %139 : vector<16x32xf32>
    %cst_36 = arith.constant 1.000000e+00 : f32
    %141 = vector.broadcast %cst_36 : f32 to vector<16x32xf32>
    %142 = arith.subf %141, %135 : vector<16x32xf32>
    %143 = arith.mulf %142, %140 : vector<16x32xf32>
    %144 = arith.mulf %135, %54 : vector<16x32xf32>
    %145 = arith.addf %143, %144 : vector<16x32xf32>
    %cst_37 = arith.constant dense<0.000000e+00> : vector<16xf32>
    %146 = vector.multi_reduction <add>, %145, %cst_37 [1] : vector<16x32xf32> to vector<16xf32>
    %147 = vector.shape_cast %146 : vector<16xf32> to vector<16x1xf32>
    %148 = arith.mulf %145, %145 : vector<16x32xf32>
    %cst_38 = arith.constant dense<0.000000e+00> : vector<16xf32>
    %149 = vector.multi_reduction <add>, %148, %cst_38 [1] : vector<16x32xf32> to vector<16xf32>
    %150 = vector.shape_cast %149 : vector<16xf32> to vector<16x1xf32>
    %cst_39 = arith.constant 3.125000e-02 : f32
    %151 = vector.broadcast %cst_39 : f32 to vector<16x1xf32>
    %152 = arith.mulf %147, %151 : vector<16x1xf32>
    %cst_40 = arith.constant 3.125000e-02 : f32
    %153 = vector.broadcast %cst_40 : f32 to vector<16x1xf32>
    %154 = arith.mulf %150, %153 : vector<16x1xf32>
    %155 = arith.mulf %152, %152 : vector<16x1xf32>
    %156 = arith.subf %154, %155 : vector<16x1xf32>
    %157 = vector.broadcast %152 : vector<16x1xf32> to vector<16x32xf32>
    %158 = arith.subf %145, %157 : vector<16x32xf32>
    %cst_41 = arith.constant 9.99999974E-6 : f32
    %159 = vector.broadcast %cst_41 : f32 to vector<16x1xf32>
    %160 = arith.addf %156, %159 : vector<16x1xf32>
    %161 = math.rsqrt %160 : vector<16x1xf32>
    %162 = vector.broadcast %161 : vector<16x1xf32> to vector<16x32xf32>
    %163 = arith.mulf %158, %162 : vector<16x32xf32>
    %cst_42 = arith.constant dense<0.000000e+00> : vector<16x128xf32>
    %164 = tpu.matmul %163, %5, %cst_42 {dimension_numbers = #tpu.dot_dimension_numbers<[1], [0], [0], [1], [0, 0, 1, 1], [], []>} : vector<16x32xf32>, vector<32x128xf32>, vector<16x128xf32> -> vector<16x128xf32>
    %165 = arith.addf %164, %50 : vector<16x128xf32>
    %cst_43 = arith.constant 0.000000e+00 : f32
    %166 = vector.broadcast %cst_43 : f32 to vector<16x128xf32>
    %167 = arith.maximumf %165, %166 : vector<16x128xf32>
    %cst_44 = arith.constant dense<0.000000e+00> : vector<16x32xf32>
    %168 = tpu.matmul %167, %6, %cst_44 {dimension_numbers = #tpu.dot_dimension_numbers<[1], [0], [0], [1], [0, 0, 1, 1], [], []>} : vector<16x128xf32>, vector<128x32xf32>, vector<16x32xf32> -> vector<16x32xf32>
    %169 = arith.addf %145, %168 : vector<16x32xf32>
    %170 = arith.addf %169, %53 : vector<16x32xf32>
    %c1_i32 = arith.constant 1 : i32
    %cst_45 = arith.constant dense<0.000000e+00> : vector<16x96xf32>
    %171 = tpu.matmul %170, %4, %cst_45 {dimension_numbers = #tpu.dot_dimension_numbers<[1], [0], [0], [1], [0, 0, 1, 1], [], []>} : vector<16x32xf32>, vector<32x96xf32>, vector<16x96xf32> -> vector<16x96xf32>
    %172 = arith.addf %171, %47 : vector<16x96xf32>
    %cst_46 = arith.constant dense<0.000000e+00> : vector<16xf32>
    %173 = vector.multi_reduction <add>, %170, %cst_46 [1] : vector<16x32xf32> to vector<16xf32>
    %174 = vector.shape_cast %173 : vector<16xf32> to vector<16x1xf32>
    %175 = arith.mulf %170, %170 : vector<16x32xf32>
    %cst_47 = arith.constant dense<0.000000e+00> : vector<16xf32>
    %176 = vector.multi_reduction <add>, %175, %cst_47 [1] : vector<16x32xf32> to vector<16xf32>
    %177 = vector.shape_cast %176 : vector<16xf32> to vector<16x1xf32>
    %cst_48 = arith.constant 3.125000e-02 : f32
    %178 = vector.broadcast %cst_48 : f32 to vector<16x1xf32>
    %179 = arith.mulf %174, %178 : vector<16x1xf32>
    %cst_49 = arith.constant 3.125000e-02 : f32
    %180 = vector.broadcast %cst_49 : f32 to vector<16x1xf32>
    %181 = arith.mulf %177, %180 : vector<16x1xf32>
    %182 = arith.mulf %179, %179 : vector<16x1xf32>
    %183 = arith.subf %181, %182 : vector<16x1xf32>
    %184 = vector.broadcast %179 : vector<16x1xf32> to vector<16x32xf32>
    %185 = arith.subf %170, %184 : vector<16x32xf32>
    %cst_50 = arith.constant 9.99999974E-6 : f32
    %186 = vector.broadcast %cst_50 : f32 to vector<16x1xf32>
    %187 = arith.addf %183, %186 : vector<16x1xf32>
    %188 = math.rsqrt %187 : vector<16x1xf32>
    %189 = vector.broadcast %188 : vector<16x1xf32> to vector<16x32xf32>
    %190 = arith.mulf %185, %189 : vector<16x32xf32>
    %cst_51 = arith.constant dense<0.000000e+00> : vector<16x32xf32>
    %191 = tpu.matmul %190, %1, %cst_51 {dimension_numbers = #tpu.dot_dimension_numbers<[1], [0], [0], [1], [0, 0, 1, 1], [], []>} : vector<16x32xf32>, vector<32x32xf32>, vector<16x32xf32> -> vector<16x32xf32>
    %192 = arith.addf %191, %41 : vector<16x32xf32>
    %193 = vector.extract_strided_slice %192 {offsets = [0, 0], sizes = [8, 32], strides = [1, 1]} : vector<16x32xf32> to vector<8x32xf32>
    %cst_52 = arith.constant dense<0.000000e+00> : vector<8x16xf32>
    %194 = tpu.matmul %193, %34, %cst_52 {dimension_numbers = #tpu.dot_dimension_numbers<[1], [0], [0], [1], [0, 0, 1, 1], [], []>} : vector<8x32xf32>, vector<32x16xf32>, vector<8x16xf32> -> vector<8x16xf32>
    %cst_53 = arith.constant dense<0xFF800000> : vector<16xf32>
    %195 = vector.multi_reduction <maximumf>, %194, %cst_53 [0] : vector<8x16xf32> to vector<16xf32>
    %196 = vector.shape_cast %195 : vector<16xf32> to vector<1x16xf32>
    %197 = vector.broadcast %196 : vector<1x16xf32> to vector<8x16xf32>
    %198 = arith.subf %194, %197 : vector<8x16xf32>
    %199 = math.exp %198 : vector<8x16xf32>
    %cst_54 = arith.constant dense<0.000000e+00> : vector<16xf32>
    %200 = vector.multi_reduction <add>, %199, %cst_54 [0] : vector<8x16xf32> to vector<16xf32>
    %201 = vector.shape_cast %200 : vector<16xf32> to vector<1x16xf32>
    %202 = tpu.reciprocal %201 {approx = true} : vector<1x16xf32> -> vector<1x16xf32>
    %203 = vector.broadcast %202 : vector<1x16xf32> to vector<8x16xf32>
    %204 = arith.mulf %199, %203 : vector<8x16xf32>
    %cst_55 = arith.constant 9.99999993E-9 : f32
    %205 = vector.broadcast %cst_55 : f32 to vector<8x16xf32>
    %206 = arith.addf %204, %205 : vector<8x16xf32>
    %cst_56 = arith.constant dense<0.000000e+00> : vector<8xf32>
    %207 = vector.multi_reduction <add>, %206, %cst_56 [1] : vector<8x16xf32> to vector<8xf32>
    %208 = vector.shape_cast %207 : vector<8xf32> to vector<8x1xf32>
    %209 = tpu.reciprocal %208 {approx = true} : vector<8x1xf32> -> vector<8x1xf32>
    %210 = vector.broadcast %209 : vector<8x1xf32> to vector<8x16xf32>
    %211 = arith.mulf %206, %210 : vector<8x16xf32>
    %cst_57 = arith.constant dense<0.000000e+00> : vector<8x32xf32>
    %212 = tpu.matmul %211, %37, %cst_57 {dimension_numbers = #tpu.dot_dimension_numbers<[1], [0], [0], [1], [0, 0, 1, 1], [], []>} : vector<8x16xf32>, vector<16x32xf32>, vector<8x32xf32> -> vector<8x32xf32>
    %213 = vector.extract_strided_slice %192 {offsets = [8, 0], sizes = [8, 32], strides = [1, 1]} : vector<16x32xf32> to vector<8x32xf32>
    %cst_58 = arith.constant dense<0.000000e+00> : vector<8x16xf32>
    %214 = tpu.matmul %213, %36, %cst_58 {dimension_numbers = #tpu.dot_dimension_numbers<[1], [0], [0], [1], [0, 0, 1, 1], [], []>} : vector<8x32xf32>, vector<32x16xf32>, vector<8x16xf32> -> vector<8x16xf32>
    %cst_59 = arith.constant dense<0xFF800000> : vector<16xf32>
    %215 = vector.multi_reduction <maximumf>, %214, %cst_59 [0] : vector<8x16xf32> to vector<16xf32>
    %216 = vector.shape_cast %215 : vector<16xf32> to vector<1x16xf32>
    %217 = vector.broadcast %216 : vector<1x16xf32> to vector<8x16xf32>
    %218 = arith.subf %214, %217 : vector<8x16xf32>
    %219 = math.exp %218 : vector<8x16xf32>
    %cst_60 = arith.constant dense<0.000000e+00> : vector<16xf32>
    %220 = vector.multi_reduction <add>, %219, %cst_60 [0] : vector<8x16xf32> to vector<16xf32>
    %221 = vector.shape_cast %220 : vector<16xf32> to vector<1x16xf32>
    %222 = tpu.reciprocal %221 {approx = true} : vector<1x16xf32> -> vector<1x16xf32>
    %223 = vector.broadcast %222 : vector<1x16xf32> to vector<8x16xf32>
    %224 = arith.mulf %219, %223 : vector<8x16xf32>
    %cst_61 = arith.constant 9.99999993E-9 : f32
    %225 = vector.broadcast %cst_61 : f32 to vector<8x16xf32>
    %226 = arith.addf %224, %225 : vector<8x16xf32>
    %cst_62 = arith.constant dense<0.000000e+00> : vector<8xf32>
    %227 = vector.multi_reduction <add>, %226, %cst_62 [1] : vector<8x16xf32> to vector<8xf32>
    %228 = vector.shape_cast %227 : vector<8xf32> to vector<8x1xf32>
    %229 = tpu.reciprocal %228 {approx = true} : vector<8x1xf32> -> vector<8x1xf32>
    %230 = vector.broadcast %229 : vector<8x1xf32> to vector<8x16xf32>
    %231 = arith.mulf %226, %230 : vector<8x16xf32>
    %cst_63 = arith.constant dense<0.000000e+00> : vector<8x32xf32>
    %232 = tpu.matmul %231, %38, %cst_63 {dimension_numbers = #tpu.dot_dimension_numbers<[1], [0], [0], [1], [0, 0, 1, 1], [], []>} : vector<8x16xf32>, vector<16x32xf32>, vector<8x32xf32> -> vector<8x32xf32>
    %233 = tpu.concatenate %212, %232 in 0 : vector<8x32xf32>, vector<8x32xf32> -> vector<16x32xf32>
    %cst_64 = arith.constant dense<0.000000e+00> : vector<16x96xf32>
    %234 = tpu.matmul %233, %3, %cst_64 {dimension_numbers = #tpu.dot_dimension_numbers<[1], [0], [0], [1], [0, 0, 1, 1], [], []>} : vector<16x32xf32>, vector<32x96xf32>, vector<16x96xf32> -> vector<16x96xf32>
    %235 = arith.addf %234, %44 : vector<16x96xf32>
    %236 = vector.extract_strided_slice %235 {offsets = [0, 0], sizes = [16, 32], strides = [1, 1]} : vector<16x96xf32> to vector<16x32xf32>
    %237 = vector.extract_strided_slice %172 {offsets = [0, 0], sizes = [16, 32], strides = [1, 1]} : vector<16x96xf32> to vector<16x32xf32>
    %238 = arith.addf %236, %237 : vector<16x32xf32>
    %239 = arith.negf %238 : vector<16x32xf32>
    %240 = math.exp %239 : vector<16x32xf32>
    %cst_65 = arith.constant 1.000000e+00 : f32
    %241 = vector.broadcast %cst_65 : f32 to vector<16x32xf32>
    %242 = arith.addf %241, %240 : vector<16x32xf32>
    %243 = arith.divf %241, %242 : vector<16x32xf32>
    %244 = vector.extract_strided_slice %235 {offsets = [0, 32], sizes = [16, 32], strides = [1, 1]} : vector<16x96xf32> to vector<16x32xf32>
    %245 = vector.extract_strided_slice %172 {offsets = [0, 32], sizes = [16, 32], strides = [1, 1]} : vector<16x96xf32> to vector<16x32xf32>
    %246 = arith.addf %244, %245 : vector<16x32xf32>
    %247 = arith.negf %246 : vector<16x32xf32>
    %248 = math.exp %247 : vector<16x32xf32>
    %cst_66 = arith.constant 1.000000e+00 : f32
    %249 = vector.broadcast %cst_66 : f32 to vector<16x32xf32>
    %250 = arith.addf %249, %248 : vector<16x32xf32>
    %251 = arith.divf %249, %250 : vector<16x32xf32>
    %252 = vector.extract_strided_slice %235 {offsets = [0, 64], sizes = [16, 32], strides = [1, 1]} : vector<16x96xf32> to vector<16x32xf32>
    %253 = vector.extract_strided_slice %172 {offsets = [0, 64], sizes = [16, 32], strides = [1, 1]} : vector<16x96xf32> to vector<16x32xf32>
    %254 = arith.mulf %243, %253 : vector<16x32xf32>
    %255 = arith.addf %252, %254 : vector<16x32xf32>
    %256 = math.tanh %255 : vector<16x32xf32>
    %cst_67 = arith.constant 1.000000e+00 : f32
    %257 = vector.broadcast %cst_67 : f32 to vector<16x32xf32>
    %258 = arith.subf %257, %251 : vector<16x32xf32>
    %259 = arith.mulf %258, %256 : vector<16x32xf32>
    %260 = arith.mulf %251, %170 : vector<16x32xf32>
    %261 = arith.addf %259, %260 : vector<16x32xf32>
    %cst_68 = arith.constant dense<0.000000e+00> : vector<16xf32>
    %262 = vector.multi_reduction <add>, %261, %cst_68 [1] : vector<16x32xf32> to vector<16xf32>
    %263 = vector.shape_cast %262 : vector<16xf32> to vector<16x1xf32>
    %264 = arith.mulf %261, %261 : vector<16x32xf32>
    %cst_69 = arith.constant dense<0.000000e+00> : vector<16xf32>
    %265 = vector.multi_reduction <add>, %264, %cst_69 [1] : vector<16x32xf32> to vector<16xf32>
    %266 = vector.shape_cast %265 : vector<16xf32> to vector<16x1xf32>
    %cst_70 = arith.constant 3.125000e-02 : f32
    %267 = vector.broadcast %cst_70 : f32 to vector<16x1xf32>
    %268 = arith.mulf %263, %267 : vector<16x1xf32>
    %cst_71 = arith.constant 3.125000e-02 : f32
    %269 = vector.broadcast %cst_71 : f32 to vector<16x1xf32>
    %270 = arith.mulf %266, %269 : vector<16x1xf32>
    %271 = arith.mulf %268, %268 : vector<16x1xf32>
    %272 = arith.subf %270, %271 : vector<16x1xf32>
    %273 = vector.broadcast %268 : vector<16x1xf32> to vector<16x32xf32>
    %274 = arith.subf %261, %273 : vector<16x32xf32>
    %cst_72 = arith.constant 9.99999974E-6 : f32
    %275 = vector.broadcast %cst_72 : f32 to vector<16x1xf32>
    %276 = arith.addf %272, %275 : vector<16x1xf32>
    %277 = math.rsqrt %276 : vector<16x1xf32>
    %278 = vector.broadcast %277 : vector<16x1xf32> to vector<16x32xf32>
    %279 = arith.mulf %274, %278 : vector<16x32xf32>
    %cst_73 = arith.constant dense<0.000000e+00> : vector<16x128xf32>
    %280 = tpu.matmul %279, %5, %cst_73 {dimension_numbers = #tpu.dot_dimension_numbers<[1], [0], [0], [1], [0, 0, 1, 1], [], []>} : vector<16x32xf32>, vector<32x128xf32>, vector<16x128xf32> -> vector<16x128xf32>
    %281 = arith.addf %280, %50 : vector<16x128xf32>
    %cst_74 = arith.constant 0.000000e+00 : f32
    %282 = vector.broadcast %cst_74 : f32 to vector<16x128xf32>
    %283 = arith.maximumf %281, %282 : vector<16x128xf32>
    %cst_75 = arith.constant dense<0.000000e+00> : vector<16x32xf32>
    %284 = tpu.matmul %283, %6, %cst_75 {dimension_numbers = #tpu.dot_dimension_numbers<[1], [0], [0], [1], [0, 0, 1, 1], [], []>} : vector<16x128xf32>, vector<128x32xf32>, vector<16x32xf32> -> vector<16x32xf32>
    %285 = arith.addf %261, %284 : vector<16x32xf32>
    %286 = arith.addf %285, %53 : vector<16x32xf32>
    %c2_i32 = arith.constant 2 : i32
    %cst_76 = arith.constant dense<0.000000e+00> : vector<16x96xf32>
    %287 = tpu.matmul %286, %4, %cst_76 {dimension_numbers = #tpu.dot_dimension_numbers<[1], [0], [0], [1], [0, 0, 1, 1], [], []>} : vector<16x32xf32>, vector<32x96xf32>, vector<16x96xf32> -> vector<16x96xf32>
    %288 = arith.addf %287, %47 : vector<16x96xf32>
    %cst_77 = arith.constant dense<0.000000e+00> : vector<16xf32>
    %289 = vector.multi_reduction <add>, %286, %cst_77 [1] : vector<16x32xf32> to vector<16xf32>
    %290 = vector.shape_cast %289 : vector<16xf32> to vector<16x1xf32>
    %291 = arith.mulf %286, %286 : vector<16x32xf32>
    %cst_78 = arith.constant dense<0.000000e+00> : vector<16xf32>
    %292 = vector.multi_reduction <add>, %291, %cst_78 [1] : vector<16x32xf32> to vector<16xf32>
    %293 = vector.shape_cast %292 : vector<16xf32> to vector<16x1xf32>
    %cst_79 = arith.constant 3.125000e-02 : f32
    %294 = vector.broadcast %cst_79 : f32 to vector<16x1xf32>
    %295 = arith.mulf %290, %294 : vector<16x1xf32>
    %cst_80 = arith.constant 3.125000e-02 : f32
    %296 = vector.broadcast %cst_80 : f32 to vector<16x1xf32>
    %297 = arith.mulf %293, %296 : vector<16x1xf32>
    %298 = arith.mulf %295, %295 : vector<16x1xf32>
    %299 = arith.subf %297, %298 : vector<16x1xf32>
    %300 = vector.broadcast %295 : vector<16x1xf32> to vector<16x32xf32>
    %301 = arith.subf %286, %300 : vector<16x32xf32>
    %cst_81 = arith.constant 9.99999974E-6 : f32
    %302 = vector.broadcast %cst_81 : f32 to vector<16x1xf32>
    %303 = arith.addf %299, %302 : vector<16x1xf32>
    %304 = math.rsqrt %303 : vector<16x1xf32>
    %305 = vector.broadcast %304 : vector<16x1xf32> to vector<16x32xf32>
    %306 = arith.mulf %301, %305 : vector<16x32xf32>
    %cst_82 = arith.constant dense<0.000000e+00> : vector<16x32xf32>
    %307 = tpu.matmul %306, %1, %cst_82 {dimension_numbers = #tpu.dot_dimension_numbers<[1], [0], [0], [1], [0, 0, 1, 1], [], []>} : vector<16x32xf32>, vector<32x32xf32>, vector<16x32xf32> -> vector<16x32xf32>
    %308 = arith.addf %307, %41 : vector<16x32xf32>
    %309 = vector.extract_strided_slice %308 {offsets = [0, 0], sizes = [8, 32], strides = [1, 1]} : vector<16x32xf32> to vector<8x32xf32>
    %cst_83 = arith.constant dense<0.000000e+00> : vector<8x16xf32>
    %310 = tpu.matmul %309, %34, %cst_83 {dimension_numbers = #tpu.dot_dimension_numbers<[1], [0], [0], [1], [0, 0, 1, 1], [], []>} : vector<8x32xf32>, vector<32x16xf32>, vector<8x16xf32> -> vector<8x16xf32>
    %cst_84 = arith.constant dense<0xFF800000> : vector<16xf32>
    %311 = vector.multi_reduction <maximumf>, %310, %cst_84 [0] : vector<8x16xf32> to vector<16xf32>
    %312 = vector.shape_cast %311 : vector<16xf32> to vector<1x16xf32>
    %313 = vector.broadcast %312 : vector<1x16xf32> to vector<8x16xf32>
    %314 = arith.subf %310, %313 : vector<8x16xf32>
    %315 = math.exp %314 : vector<8x16xf32>
    %cst_85 = arith.constant dense<0.000000e+00> : vector<16xf32>
    %316 = vector.multi_reduction <add>, %315, %cst_85 [0] : vector<8x16xf32> to vector<16xf32>
    %317 = vector.shape_cast %316 : vector<16xf32> to vector<1x16xf32>
    %318 = tpu.reciprocal %317 {approx = true} : vector<1x16xf32> -> vector<1x16xf32>
    %319 = vector.broadcast %318 : vector<1x16xf32> to vector<8x16xf32>
    %320 = arith.mulf %315, %319 : vector<8x16xf32>
    %cst_86 = arith.constant 9.99999993E-9 : f32
    %321 = vector.broadcast %cst_86 : f32 to vector<8x16xf32>
    %322 = arith.addf %320, %321 : vector<8x16xf32>
    %cst_87 = arith.constant dense<0.000000e+00> : vector<8xf32>
    %323 = vector.multi_reduction <add>, %322, %cst_87 [1] : vector<8x16xf32> to vector<8xf32>
    %324 = vector.shape_cast %323 : vector<8xf32> to vector<8x1xf32>
    %325 = tpu.reciprocal %324 {approx = true} : vector<8x1xf32> -> vector<8x1xf32>
    %326 = vector.broadcast %325 : vector<8x1xf32> to vector<8x16xf32>
    %327 = arith.mulf %322, %326 : vector<8x16xf32>
    %cst_88 = arith.constant dense<0.000000e+00> : vector<8x32xf32>
    %328 = tpu.matmul %327, %37, %cst_88 {dimension_numbers = #tpu.dot_dimension_numbers<[1], [0], [0], [1], [0, 0, 1, 1], [], []>} : vector<8x16xf32>, vector<16x32xf32>, vector<8x32xf32> -> vector<8x32xf32>
    %329 = vector.extract_strided_slice %308 {offsets = [8, 0], sizes = [8, 32], strides = [1, 1]} : vector<16x32xf32> to vector<8x32xf32>
    %cst_89 = arith.constant dense<0.000000e+00> : vector<8x16xf32>
    %330 = tpu.matmul %329, %36, %cst_89 {dimension_numbers = #tpu.dot_dimension_numbers<[1], [0], [0], [1], [0, 0, 1, 1], [], []>} : vector<8x32xf32>, vector<32x16xf32>, vector<8x16xf32> -> vector<8x16xf32>
    %cst_90 = arith.constant dense<0xFF800000> : vector<16xf32>
    %331 = vector.multi_reduction <maximumf>, %330, %cst_90 [0] : vector<8x16xf32> to vector<16xf32>
    %332 = vector.shape_cast %331 : vector<16xf32> to vector<1x16xf32>
    %333 = vector.broadcast %332 : vector<1x16xf32> to vector<8x16xf32>
    %334 = arith.subf %330, %333 : vector<8x16xf32>
    %335 = math.exp %334 : vector<8x16xf32>
    %cst_91 = arith.constant dense<0.000000e+00> : vector<16xf32>
    %336 = vector.multi_reduction <add>, %335, %cst_91 [0] : vector<8x16xf32> to vector<16xf32>
    %337 = vector.shape_cast %336 : vector<16xf32> to vector<1x16xf32>
    %338 = tpu.reciprocal %337 {approx = true} : vector<1x16xf32> -> vector<1x16xf32>
    %339 = vector.broadcast %338 : vector<1x16xf32> to vector<8x16xf32>
    %340 = arith.mulf %335, %339 : vector<8x16xf32>
    %cst_92 = arith.constant 9.99999993E-9 : f32
    %341 = vector.broadcast %cst_92 : f32 to vector<8x16xf32>
    %342 = arith.addf %340, %341 : vector<8x16xf32>
    %cst_93 = arith.constant dense<0.000000e+00> : vector<8xf32>
    %343 = vector.multi_reduction <add>, %342, %cst_93 [1] : vector<8x16xf32> to vector<8xf32>
    %344 = vector.shape_cast %343 : vector<8xf32> to vector<8x1xf32>
    %345 = tpu.reciprocal %344 {approx = true} : vector<8x1xf32> -> vector<8x1xf32>
    %346 = vector.broadcast %345 : vector<8x1xf32> to vector<8x16xf32>
    %347 = arith.mulf %342, %346 : vector<8x16xf32>
    %cst_94 = arith.constant dense<0.000000e+00> : vector<8x32xf32>
    %348 = tpu.matmul %347, %38, %cst_94 {dimension_numbers = #tpu.dot_dimension_numbers<[1], [0], [0], [1], [0, 0, 1, 1], [], []>} : vector<8x16xf32>, vector<16x32xf32>, vector<8x32xf32> -> vector<8x32xf32>
    %349 = tpu.concatenate %328, %348 in 0 : vector<8x32xf32>, vector<8x32xf32> -> vector<16x32xf32>
    %cst_95 = arith.constant dense<0.000000e+00> : vector<16x96xf32>
    %350 = tpu.matmul %349, %3, %cst_95 {dimension_numbers = #tpu.dot_dimension_numbers<[1], [0], [0], [1], [0, 0, 1, 1], [], []>} : vector<16x32xf32>, vector<32x96xf32>, vector<16x96xf32> -> vector<16x96xf32>
    %351 = arith.addf %350, %44 : vector<16x96xf32>
    %352 = vector.extract_strided_slice %351 {offsets = [0, 0], sizes = [16, 32], strides = [1, 1]} : vector<16x96xf32> to vector<16x32xf32>
    %353 = vector.extract_strided_slice %288 {offsets = [0, 0], sizes = [16, 32], strides = [1, 1]} : vector<16x96xf32> to vector<16x32xf32>
    %354 = arith.addf %352, %353 : vector<16x32xf32>
    %355 = arith.negf %354 : vector<16x32xf32>
    %356 = math.exp %355 : vector<16x32xf32>
    %cst_96 = arith.constant 1.000000e+00 : f32
    %357 = vector.broadcast %cst_96 : f32 to vector<16x32xf32>
    %358 = arith.addf %357, %356 : vector<16x32xf32>
    %359 = arith.divf %357, %358 : vector<16x32xf32>
    %360 = vector.extract_strided_slice %351 {offsets = [0, 32], sizes = [16, 32], strides = [1, 1]} : vector<16x96xf32> to vector<16x32xf32>
    %361 = vector.extract_strided_slice %288 {offsets = [0, 32], sizes = [16, 32], strides = [1, 1]} : vector<16x96xf32> to vector<16x32xf32>
    %362 = arith.addf %360, %361 : vector<16x32xf32>
    %363 = arith.negf %362 : vector<16x32xf32>
    %364 = math.exp %363 : vector<16x32xf32>
    %cst_97 = arith.constant 1.000000e+00 : f32
    %365 = vector.broadcast %cst_97 : f32 to vector<16x32xf32>
    %366 = arith.addf %365, %364 : vector<16x32xf32>
    %367 = arith.divf %365, %366 : vector<16x32xf32>
    %368 = vector.extract_strided_slice %351 {offsets = [0, 64], sizes = [16, 32], strides = [1, 1]} : vector<16x96xf32> to vector<16x32xf32>
    %369 = vector.extract_strided_slice %288 {offsets = [0, 64], sizes = [16, 32], strides = [1, 1]} : vector<16x96xf32> to vector<16x32xf32>
    %370 = arith.mulf %359, %369 : vector<16x32xf32>
    %371 = arith.addf %368, %370 : vector<16x32xf32>
    %372 = math.tanh %371 : vector<16x32xf32>
    %cst_98 = arith.constant 1.000000e+00 : f32
    %373 = vector.broadcast %cst_98 : f32 to vector<16x32xf32>
    %374 = arith.subf %373, %367 : vector<16x32xf32>
    %375 = arith.mulf %374, %372 : vector<16x32xf32>
    %376 = arith.mulf %367, %286 : vector<16x32xf32>
    %377 = arith.addf %375, %376 : vector<16x32xf32>
    %cst_99 = arith.constant dense<0.000000e+00> : vector<16xf32>
    %378 = vector.multi_reduction <add>, %377, %cst_99 [1] : vector<16x32xf32> to vector<16xf32>
    %379 = vector.shape_cast %378 : vector<16xf32> to vector<16x1xf32>
    %380 = arith.mulf %377, %377 : vector<16x32xf32>
    %cst_100 = arith.constant dense<0.000000e+00> : vector<16xf32>
    %381 = vector.multi_reduction <add>, %380, %cst_100 [1] : vector<16x32xf32> to vector<16xf32>
    %382 = vector.shape_cast %381 : vector<16xf32> to vector<16x1xf32>
    %cst_101 = arith.constant 3.125000e-02 : f32
    %383 = vector.broadcast %cst_101 : f32 to vector<16x1xf32>
    %384 = arith.mulf %379, %383 : vector<16x1xf32>
    %cst_102 = arith.constant 3.125000e-02 : f32
    %385 = vector.broadcast %cst_102 : f32 to vector<16x1xf32>
    %386 = arith.mulf %382, %385 : vector<16x1xf32>
    %387 = arith.mulf %384, %384 : vector<16x1xf32>
    %388 = arith.subf %386, %387 : vector<16x1xf32>
    %389 = vector.broadcast %384 : vector<16x1xf32> to vector<16x32xf32>
    %390 = arith.subf %377, %389 : vector<16x32xf32>
    %cst_103 = arith.constant 9.99999974E-6 : f32
    %391 = vector.broadcast %cst_103 : f32 to vector<16x1xf32>
    %392 = arith.addf %388, %391 : vector<16x1xf32>
    %393 = math.rsqrt %392 : vector<16x1xf32>
    %394 = vector.broadcast %393 : vector<16x1xf32> to vector<16x32xf32>
    %395 = arith.mulf %390, %394 : vector<16x32xf32>
    %cst_104 = arith.constant dense<0.000000e+00> : vector<16x128xf32>
    %396 = tpu.matmul %395, %5, %cst_104 {dimension_numbers = #tpu.dot_dimension_numbers<[1], [0], [0], [1], [0, 0, 1, 1], [], []>} : vector<16x32xf32>, vector<32x128xf32>, vector<16x128xf32> -> vector<16x128xf32>
    %397 = arith.addf %396, %50 : vector<16x128xf32>
    %cst_105 = arith.constant 0.000000e+00 : f32
    %398 = vector.broadcast %cst_105 : f32 to vector<16x128xf32>
    %399 = arith.maximumf %397, %398 : vector<16x128xf32>
    %cst_106 = arith.constant dense<0.000000e+00> : vector<16x32xf32>
    %400 = tpu.matmul %399, %6, %cst_106 {dimension_numbers = #tpu.dot_dimension_numbers<[1], [0], [0], [1], [0, 0, 1, 1], [], []>} : vector<16x128xf32>, vector<128x32xf32>, vector<16x32xf32> -> vector<16x32xf32>
    %401 = arith.addf %377, %400 : vector<16x32xf32>
    %402 = arith.addf %401, %53 : vector<16x32xf32>
    %c3_i32 = arith.constant 3 : i32
    %cst_107 = arith.constant dense<0.000000e+00> : vector<16x96xf32>
    %403 = tpu.matmul %402, %4, %cst_107 {dimension_numbers = #tpu.dot_dimension_numbers<[1], [0], [0], [1], [0, 0, 1, 1], [], []>} : vector<16x32xf32>, vector<32x96xf32>, vector<16x96xf32> -> vector<16x96xf32>
    %404 = arith.addf %403, %47 : vector<16x96xf32>
    %cst_108 = arith.constant dense<0.000000e+00> : vector<16xf32>
    %405 = vector.multi_reduction <add>, %402, %cst_108 [1] : vector<16x32xf32> to vector<16xf32>
    %406 = vector.shape_cast %405 : vector<16xf32> to vector<16x1xf32>
    %407 = arith.mulf %402, %402 : vector<16x32xf32>
    %cst_109 = arith.constant dense<0.000000e+00> : vector<16xf32>
    %408 = vector.multi_reduction <add>, %407, %cst_109 [1] : vector<16x32xf32> to vector<16xf32>
    %409 = vector.shape_cast %408 : vector<16xf32> to vector<16x1xf32>
    %cst_110 = arith.constant 3.125000e-02 : f32
    %410 = vector.broadcast %cst_110 : f32 to vector<16x1xf32>
    %411 = arith.mulf %406, %410 : vector<16x1xf32>
    %cst_111 = arith.constant 3.125000e-02 : f32
    %412 = vector.broadcast %cst_111 : f32 to vector<16x1xf32>
    %413 = arith.mulf %409, %412 : vector<16x1xf32>
    %414 = arith.mulf %411, %411 : vector<16x1xf32>
    %415 = arith.subf %413, %414 : vector<16x1xf32>
    %416 = vector.broadcast %411 : vector<16x1xf32> to vector<16x32xf32>
    %417 = arith.subf %402, %416 : vector<16x32xf32>
    %cst_112 = arith.constant 9.99999974E-6 : f32
    %418 = vector.broadcast %cst_112 : f32 to vector<16x1xf32>
    %419 = arith.addf %415, %418 : vector<16x1xf32>
    %420 = math.rsqrt %419 : vector<16x1xf32>
    %421 = vector.broadcast %420 : vector<16x1xf32> to vector<16x32xf32>
    %422 = arith.mulf %417, %421 : vector<16x32xf32>
    %cst_113 = arith.constant dense<0.000000e+00> : vector<16x32xf32>
    %423 = tpu.matmul %422, %1, %cst_113 {dimension_numbers = #tpu.dot_dimension_numbers<[1], [0], [0], [1], [0, 0, 1, 1], [], []>} : vector<16x32xf32>, vector<32x32xf32>, vector<16x32xf32> -> vector<16x32xf32>
    %424 = arith.addf %423, %41 : vector<16x32xf32>
    %425 = vector.extract_strided_slice %424 {offsets = [0, 0], sizes = [8, 32], strides = [1, 1]} : vector<16x32xf32> to vector<8x32xf32>
    %cst_114 = arith.constant dense<0.000000e+00> : vector<8x16xf32>
    %426 = tpu.matmul %425, %34, %cst_114 {dimension_numbers = #tpu.dot_dimension_numbers<[1], [0], [0], [1], [0, 0, 1, 1], [], []>} : vector<8x32xf32>, vector<32x16xf32>, vector<8x16xf32> -> vector<8x16xf32>
    %cst_115 = arith.constant dense<0xFF800000> : vector<16xf32>
    %427 = vector.multi_reduction <maximumf>, %426, %cst_115 [0] : vector<8x16xf32> to vector<16xf32>
    %428 = vector.shape_cast %427 : vector<16xf32> to vector<1x16xf32>
    %429 = vector.broadcast %428 : vector<1x16xf32> to vector<8x16xf32>
    %430 = arith.subf %426, %429 : vector<8x16xf32>
    %431 = math.exp %430 : vector<8x16xf32>
    %cst_116 = arith.constant dense<0.000000e+00> : vector<16xf32>
    %432 = vector.multi_reduction <add>, %431, %cst_116 [0] : vector<8x16xf32> to vector<16xf32>
    %433 = vector.shape_cast %432 : vector<16xf32> to vector<1x16xf32>
    %434 = tpu.reciprocal %433 {approx = true} : vector<1x16xf32> -> vector<1x16xf32>
    %435 = vector.broadcast %434 : vector<1x16xf32> to vector<8x16xf32>
    %436 = arith.mulf %431, %435 : vector<8x16xf32>
    %cst_117 = arith.constant 9.99999993E-9 : f32
    %437 = vector.broadcast %cst_117 : f32 to vector<8x16xf32>
    %438 = arith.addf %436, %437 : vector<8x16xf32>
    %cst_118 = arith.constant dense<0.000000e+00> : vector<8xf32>
    %439 = vector.multi_reduction <add>, %438, %cst_118 [1] : vector<8x16xf32> to vector<8xf32>
    %440 = vector.shape_cast %439 : vector<8xf32> to vector<8x1xf32>
    %441 = tpu.reciprocal %440 {approx = true} : vector<8x1xf32> -> vector<8x1xf32>
    %442 = vector.broadcast %441 : vector<8x1xf32> to vector<8x16xf32>
    %443 = arith.mulf %438, %442 : vector<8x16xf32>
    %cst_119 = arith.constant dense<0.000000e+00> : vector<8x32xf32>
    %444 = tpu.matmul %443, %37, %cst_119 {dimension_numbers = #tpu.dot_dimension_numbers<[1], [0], [0], [1], [0, 0, 1, 1], [], []>} : vector<8x16xf32>, vector<16x32xf32>, vector<8x32xf32> -> vector<8x32xf32>
    %445 = vector.extract_strided_slice %424 {offsets = [8, 0], sizes = [8, 32], strides = [1, 1]} : vector<16x32xf32> to vector<8x32xf32>
    %cst_120 = arith.constant dense<0.000000e+00> : vector<8x16xf32>
    %446 = tpu.matmul %445, %36, %cst_120 {dimension_numbers = #tpu.dot_dimension_numbers<[1], [0], [0], [1], [0, 0, 1, 1], [], []>} : vector<8x32xf32>, vector<32x16xf32>, vector<8x16xf32> -> vector<8x16xf32>
    %cst_121 = arith.constant dense<0xFF800000> : vector<16xf32>
    %447 = vector.multi_reduction <maximumf>, %446, %cst_121 [0] : vector<8x16xf32> to vector<16xf32>
    %448 = vector.shape_cast %447 : vector<16xf32> to vector<1x16xf32>
    %449 = vector.broadcast %448 : vector<1x16xf32> to vector<8x16xf32>
    %450 = arith.subf %446, %449 : vector<8x16xf32>
    %451 = math.exp %450 : vector<8x16xf32>
    %cst_122 = arith.constant dense<0.000000e+00> : vector<16xf32>
    %452 = vector.multi_reduction <add>, %451, %cst_122 [0] : vector<8x16xf32> to vector<16xf32>
    %453 = vector.shape_cast %452 : vector<16xf32> to vector<1x16xf32>
    %454 = tpu.reciprocal %453 {approx = true} : vector<1x16xf32> -> vector<1x16xf32>
    %455 = vector.broadcast %454 : vector<1x16xf32> to vector<8x16xf32>
    %456 = arith.mulf %451, %455 : vector<8x16xf32>
    %cst_123 = arith.constant 9.99999993E-9 : f32
    %457 = vector.broadcast %cst_123 : f32 to vector<8x16xf32>
    %458 = arith.addf %456, %457 : vector<8x16xf32>
    %cst_124 = arith.constant dense<0.000000e+00> : vector<8xf32>
    %459 = vector.multi_reduction <add>, %458, %cst_124 [1] : vector<8x16xf32> to vector<8xf32>
    %460 = vector.shape_cast %459 : vector<8xf32> to vector<8x1xf32>
    %461 = tpu.reciprocal %460 {approx = true} : vector<8x1xf32> -> vector<8x1xf32>
    %462 = vector.broadcast %461 : vector<8x1xf32> to vector<8x16xf32>
    %463 = arith.mulf %458, %462 : vector<8x16xf32>
    %cst_125 = arith.constant dense<0.000000e+00> : vector<8x32xf32>
    %464 = tpu.matmul %463, %38, %cst_125 {dimension_numbers = #tpu.dot_dimension_numbers<[1], [0], [0], [1], [0, 0, 1, 1], [], []>} : vector<8x16xf32>, vector<16x32xf32>, vector<8x32xf32> -> vector<8x32xf32>
    %465 = tpu.concatenate %444, %464 in 0 : vector<8x32xf32>, vector<8x32xf32> -> vector<16x32xf32>
    %cst_126 = arith.constant dense<0.000000e+00> : vector<16x96xf32>
    %466 = tpu.matmul %465, %3, %cst_126 {dimension_numbers = #tpu.dot_dimension_numbers<[1], [0], [0], [1], [0, 0, 1, 1], [], []>} : vector<16x32xf32>, vector<32x96xf32>, vector<16x96xf32> -> vector<16x96xf32>
    %467 = arith.addf %466, %44 : vector<16x96xf32>
    %468 = vector.extract_strided_slice %467 {offsets = [0, 0], sizes = [16, 32], strides = [1, 1]} : vector<16x96xf32> to vector<16x32xf32>
    %469 = vector.extract_strided_slice %404 {offsets = [0, 0], sizes = [16, 32], strides = [1, 1]} : vector<16x96xf32> to vector<16x32xf32>
    %470 = arith.addf %468, %469 : vector<16x32xf32>
    %471 = arith.negf %470 : vector<16x32xf32>
    %472 = math.exp %471 : vector<16x32xf32>
    %cst_127 = arith.constant 1.000000e+00 : f32
    %473 = vector.broadcast %cst_127 : f32 to vector<16x32xf32>
    %474 = arith.addf %473, %472 : vector<16x32xf32>
    %475 = arith.divf %473, %474 : vector<16x32xf32>
    %476 = vector.extract_strided_slice %467 {offsets = [0, 32], sizes = [16, 32], strides = [1, 1]} : vector<16x96xf32> to vector<16x32xf32>
    %477 = vector.extract_strided_slice %404 {offsets = [0, 32], sizes = [16, 32], strides = [1, 1]} : vector<16x96xf32> to vector<16x32xf32>
    %478 = arith.addf %476, %477 : vector<16x32xf32>
    %479 = arith.negf %478 : vector<16x32xf32>
    %480 = math.exp %479 : vector<16x32xf32>
    %cst_128 = arith.constant 1.000000e+00 : f32
    %481 = vector.broadcast %cst_128 : f32 to vector<16x32xf32>
    %482 = arith.addf %481, %480 : vector<16x32xf32>
    %483 = arith.divf %481, %482 : vector<16x32xf32>
    %484 = vector.extract_strided_slice %467 {offsets = [0, 64], sizes = [16, 32], strides = [1, 1]} : vector<16x96xf32> to vector<16x32xf32>
    %485 = vector.extract_strided_slice %404 {offsets = [0, 64], sizes = [16, 32], strides = [1, 1]} : vector<16x96xf32> to vector<16x32xf32>
    %486 = arith.mulf %475, %485 : vector<16x32xf32>
    %487 = arith.addf %484, %486 : vector<16x32xf32>
    %488 = math.tanh %487 : vector<16x32xf32>
    %cst_129 = arith.constant 1.000000e+00 : f32
    %489 = vector.broadcast %cst_129 : f32 to vector<16x32xf32>
    %490 = arith.subf %489, %483 : vector<16x32xf32>
    %491 = arith.mulf %490, %488 : vector<16x32xf32>
    %492 = arith.mulf %483, %402 : vector<16x32xf32>
    %493 = arith.addf %491, %492 : vector<16x32xf32>
    %cst_130 = arith.constant dense<0.000000e+00> : vector<16xf32>
    %494 = vector.multi_reduction <add>, %493, %cst_130 [1] : vector<16x32xf32> to vector<16xf32>
    %495 = vector.shape_cast %494 : vector<16xf32> to vector<16x1xf32>
    %496 = arith.mulf %493, %493 : vector<16x32xf32>
    %cst_131 = arith.constant dense<0.000000e+00> : vector<16xf32>
    %497 = vector.multi_reduction <add>, %496, %cst_131 [1] : vector<16x32xf32> to vector<16xf32>
    %498 = vector.shape_cast %497 : vector<16xf32> to vector<16x1xf32>
    %cst_132 = arith.constant 3.125000e-02 : f32
    %499 = vector.broadcast %cst_132 : f32 to vector<16x1xf32>
    %500 = arith.mulf %495, %499 : vector<16x1xf32>
    %cst_133 = arith.constant 3.125000e-02 : f32
    %501 = vector.broadcast %cst_133 : f32 to vector<16x1xf32>
    %502 = arith.mulf %498, %501 : vector<16x1xf32>
    %503 = arith.mulf %500, %500 : vector<16x1xf32>
    %504 = arith.subf %502, %503 : vector<16x1xf32>
    %505 = vector.broadcast %500 : vector<16x1xf32> to vector<16x32xf32>
    %506 = arith.subf %493, %505 : vector<16x32xf32>
    %cst_134 = arith.constant 9.99999974E-6 : f32
    %507 = vector.broadcast %cst_134 : f32 to vector<16x1xf32>
    %508 = arith.addf %504, %507 : vector<16x1xf32>
    %509 = math.rsqrt %508 : vector<16x1xf32>
    %510 = vector.broadcast %509 : vector<16x1xf32> to vector<16x32xf32>
    %511 = arith.mulf %506, %510 : vector<16x32xf32>
    %cst_135 = arith.constant dense<0.000000e+00> : vector<16x128xf32>
    %512 = tpu.matmul %511, %5, %cst_135 {dimension_numbers = #tpu.dot_dimension_numbers<[1], [0], [0], [1], [0, 0, 1, 1], [], []>} : vector<16x32xf32>, vector<32x128xf32>, vector<16x128xf32> -> vector<16x128xf32>
    %513 = arith.addf %512, %50 : vector<16x128xf32>
    %cst_136 = arith.constant 0.000000e+00 : f32
    %514 = vector.broadcast %cst_136 : f32 to vector<16x128xf32>
    %515 = arith.maximumf %513, %514 : vector<16x128xf32>
    %cst_137 = arith.constant dense<0.000000e+00> : vector<16x32xf32>
    %516 = tpu.matmul %515, %6, %cst_137 {dimension_numbers = #tpu.dot_dimension_numbers<[1], [0], [0], [1], [0, 0, 1, 1], [], []>} : vector<16x128xf32>, vector<128x32xf32>, vector<16x32xf32> -> vector<16x32xf32>
    %517 = arith.addf %493, %516 : vector<16x32xf32>
    %518 = arith.addf %517, %53 : vector<16x32xf32>
    %c0_138 = arith.constant 0 : index
    %c0_139 = arith.constant 0 : index
    %519 = vector.load %arg6[%c0_138, %c0_139] : memref<16x32xf32, #tpu.memory_space<vmem>>, vector<16x32xf32>
    tpu.vector_store %arg6[%c0_138, %c0_139], %518 {strides = array<i32>} : memref<16x32xf32, #tpu.memory_space<vmem>>, vector<16x32xf32>,
    return
  }
  func.func @transform_0(%arg0: i32) -> (i32, i32) {
    %c0_i32 = arith.constant 0 : i32
    %c0_i32_0 = arith.constant 0 : i32
    return %arg0, %c0_i32 : i32, i32
  }
  func.func @transform_1(%arg0: i32) -> (i32, i32) {
    %c0_i32 = arith.constant 0 : i32
    %c0_i32_0 = arith.constant 0 : i32
    return %arg0, %c0_i32 : i32, i32
  }
  func.func @transform_2(%arg0: i32) -> (i32, i32) {
    %c0_i32 = arith.constant 0 : i32
    %c0_i32_0 = arith.constant 0 : i32
    %c0_i32_1 = arith.constant 0 : i32
    return %c0_i32, %c0_i32_0 : i32, i32
  }
  func.func @transform_3(%arg0: i32) -> (i32, i32) {
    %c0_i32 = arith.constant 0 : i32
    %c0_i32_0 = arith.constant 0 : i32
    %c0_i32_1 = arith.constant 0 : i32
    return %c0_i32, %c0_i32_0 : i32, i32
  }
  func.func @transform_4(%arg0: i32) -> (i32, i32) {
    %c0_i32 = arith.constant 0 : i32
    %c0_i32_0 = arith.constant 0 : i32
    %c0_i32_1 = arith.constant 0 : i32
    return %c0_i32, %c0_i32_0 : i32, i32
  }
  func.func @transform_5(%arg0: i32) -> (i32, i32) {
    %c0_i32 = arith.constant 0 : i32
    %c0_i32_0 = arith.constant 0 : i32
    return %arg0, %c0_i32 : i32, i32
  }
}

</mosaic_0001>

<bundles_post_ra>
// kernel: tpu_custom_call.1
= control target key start
LH: loop header
LB: loop body
LE: loop exit
PB: predicated region body
PF: predicated region fallthrough
CT: control target
= control target key end

     0   :  { %10 = vsyncpa [#allocation3], 0  ;;  %s3759_s0 = inlined_call_operand.vmem [shape: f32[32,32], index: 0, kind: input, shape index: {}]   ;;  %s3760_s1 = inlined_call_operand.hbm [shape: f32[16,32], index: 1, kind: input, shape index: {}]   ;;  %s3761_s2 = inlined_call_operand.hbm [shape: f32[6,128], index: 2, kind: input, shape index: {}]   ;;  %s3762_s3 = inlined_call_operand.vmem [shape: f32[32,416], index: 3, kind: input, shape index: {}]   ;;  %s3763_s4 = inlined_call_operand.vmem [shape: f32[128,32], index: 4, kind: input, shape index: {}]   ;;  %s3764_s5 = inlined_call_operand.hbm [shape: f32[16,32], index: 5, kind: output, shape index: {}]  }
   0x1   :  { %11 = vsyncpa [#allocation6], 0 }
   0x2   :  { %12 = vsyncpa [#allocation4], 0  ;;  %s19_s20 = sshll.u32 %s3760_s1, 4  ;;  %s2793_s21 = smov [#allocation2]   ;;  %s20_s20 = int_to_ptr.hbm [resolvable:$true] %s19_s20 }
   0x3   :  { %s21_s22 = sshll.u32 %s2793_s21, 4  ;;  %s33_s25 = sshll.u32 %s3761_s2, 4  ;;  %s22_s22 = int_to_ptr.vmem [resolvable:$true] %s21_s22  ;;  %s34_s25 = int_to_ptr.hbm [resolvable:$true] %s33_s25 }
   0x4   :  { %s2794_s26 = smov 128   ;;  %s2795_s27 = smov 8  }
   0x5   :  { %27 = dma.hbm_to_vmem [thread:$0]  %s20_s20, 256, %s22_s22, [#allocation3], %s2794_s26, %s2794_s26, %s2795_s27  }
   0x6   :  { %s2796_s28 = smov [#allocation5]  }
   0x7   :  { %s35_s29 = sshll.u32 %s2796_s28, 4  ;;  %s36_s29 = int_to_ptr.vmem [resolvable:$true] %s35_s29 }
   0x8   :  { %38 = dma.hbm_to_vmem [thread:$0]  %s34_s25, 128, %s36_s29, [#allocation6]  }
   0x9   :  { %2787 = dma.done.wait [#allocation3], 256  }
   0xa   :  { %2788 = vsyncadd [#allocation3], 4294967040 }
   0xb   :  { %2789 = dma.done.wait [#allocation6], 128  }
   0xc   :  { %2790 = vsyncadd [#allocation6], 4294967168  ;;  %vm88_vm0 = vcmask 261120   ;;  %v2843_v0 = vld [vmem:[%s3759_s0 + $0x8] sm:$0xff]  ;;  %v2848_v1 = vld [vmem:[%s3759_s0] sm:$0xff]  ;;  %s2798_s23 = smov 64  }
   0xd   :  { %v92_v2 = vsel %vm88_vm0, %v2843_v0, 0.0  ;;  %v89_v3 = vsel %vm88_vm0, %v2848_v1, 0.0  ;;  %v102_v4 = vmul.f32 %v2843_v0, %v2843_v0  ;;  %v2856_v5 = vld [vmem:[#allocation2] sm:$0xff]  ;;  %v101_v8 = vmul.f32 %v2848_v1, %v2848_v1  ;;  %v2887_v14 = vld [vmem:[%s3759_s0 + $0x10] sm:$0xff]  ;;  %v2904_v20 = vld [vmem:[%s3759_s0 + $0x18] sm:$0xff]  ;;  %s2797_s0 = smov 96  }
   0xe   :  { %93 = vadd.xlane.f32.xlu1 %v92_v2  ;;  %90 = vadd.xlane.f32.xlu0 %v89_v3  ;;  %v2861_v6 = vld [vmem:[%s3762_s3 + $0x60] sm:$0xff]  ;;  %v318_v10 = vmul.f32 %v2856_v5, %v2856_v5  ;;  %v312_v12 = vsel %vm88_vm0, %v2856_v5, 0.0  ;;  %v103_v17 = vmul.f32 %v2887_v14, %v2887_v14  ;;  %v95_v19 = vsel %vm88_vm0, %v2887_v14, 0.0  ;;  %v2908_v22 = vld [vmem:[#allocation2 + $0x8] sm:$0xff]  ;;  %s2799_s11 = smov 32   ;;  %s2397_s14 = sshll.u32 %s3764_s5, 4  ;;  %s2398_s14 = int_to_ptr.hbm [resolvable:$true] %s2397_s14 }
   0xf   :  { %v108_v7 = vsel %vm88_vm0, %v102_v4, 0.0  ;;  %378 = vmatpush.msra.mxu2 %v2861_v6  ;;  %v2870_v9 = vld [vmem:[%s3762_s3 + $0x40] sm:$0xff]  ;;  %v105_v13 = vsel %vm88_vm0, %v101_v8, 0.0  ;;  %v98_v21 = vsel %vm88_vm0, %v2904_v20, 0.0  ;;  %v315_v23 = vsel %vm88_vm0, %v2908_v22, 0.0 }
  0x10   :  { %109 = vadd.xlane.f32.xlu2 %v108_v7  ;;  %v2878_v11 = vld [vmem:[%s3762_s3 + $0x20] sm:$0xff]  ;;  %v320_v16 = vsel %vm88_vm0, %v318_v10, 0.0  ;;  %v111_v18 = vsel %vm88_vm0, %v103_v17, 0.0  ;;  %v2495_v24 = vpack.i.bf16 %v2870_v9, %v2861_v6  ;;  %v104_v26 = vmul.f32 %v2904_v20, %v2904_v20 }
  0x11   :  { %379 = vmatpush.msra.mxu2 %v2870_v9  ;;  %v2892_v15 = vld [vmem:[%s3762_s3] sm:$0xff]  ;;  %v319_v28 = vmul.f32 %v2908_v22, %v2908_v22 }
  0x12   :  { %v2500_v25 = vpack.i.bf16 %v2892_v15, %v2878_v11  ;;  %v114_v27 = vsel %vm88_vm0, %v104_v26, 0.0 }
  0x13   :  { %380 = vmatpush.msra.mxu2 %v2878_v11  ;;  %v323_v29 = vsel %vm88_vm0, %v319_v28, 0.0 }
  0x15   :  { %381 = vmatpush.msra.mxu2 %v2892_v15 }
  0x16   :  { %313 = vadd.xlane.f32.xlu1 %v312_v12  ;;  %106 = vadd.xlane.f32.xlu0 %v105_v13  ;;  %v2953_v13 = vld [vmem:[%s3762_s3 + $0x68] sm:$0xff] }
  0x18   :  { %321 = vadd.xlane.f32.xlu2 %v320_v16  ;;  %v2958_v16 = vld [vmem:[%s3762_s3 + $0x70] sm:$0xff] }
  0x1e   :  { %112 = vadd.xlane.f32.xlu1 %v111_v18  ;;  %96 = vadd.xlane.f32.xlu0 %v95_v19  ;;  %v2505_v18 = vpack.i.bf16 %v2958_v16, %v2953_v13 }
  0x26   :  { %99 = vadd.xlane.f32.xlu1 %v98_v21 }
  0x2e   :  { %316 = vadd.xlane.f32.xlu1 %v315_v23 }
  0x30   :  { %2496 = vrot.lane.b32.xlu2 %v2495_v24, %s2797_s0 }
  0x32   :  { %2501 = vrot.lane.b32.xlu0 %v2500_v25, %s2797_s0 }
  0x36   :  { %115 = vadd.xlane.f32.xlu1 %v114_v27 }
  0x3a   :  { %2506 = vrot.lane.b32.xlu0 %v2505_v18, %s2798_s23 }
  0x59   :  { %324 = vadd.xlane.f32.xlu2 %v323_v29 }
  0x81   :  { %v94_v30 = vpop.xlane.xlu1 %93  ;;  %v91_v31 = vpop.xlane.xlu0 %90 }
  0x82   :  { %v2924_v32 = vmul.f32 0.03125, %v94_v30  ;;  %v2928_v36 = vmul.f32 0.03125, %v91_v31 }
  0x83   :  { %v110_v33 = vpop.xlane.xlu2 %109 }
  0x84   :  { %v126_v34 = vmul.f32 %v2924_v32, %v2924_v32  ;;  %v122_v35 = vmul.f32 0.03125, %v110_v33  ;;  %v125_v40 = vmul.f32 %v2928_v36, %v2928_v36 }
  0x86   :  { %v130_v37 = vsub.f32 %v122_v35, %v126_v34  ;;  %v2976_v34 = vld [vmem:[%s3762_s3 + $0x28] sm:$0xff]  ;;  %v2981_v35 = vld [vmem:[%s3762_s3 + $0x30] sm:$0xff] }
  0x88   :  { %v2934_v43 = vadd.f32 1e-05, %v130_v37 }
  0x89   :  { %v314_v38 = vpop.xlane.xlu1 %313  ;;  %v107_v39 = vpop.xlane.xlu0 %106 }
  0x8a   :  { %v2932_v41 = vmul.f32 0.03125, %v314_v38  ;;  %v121_v42 = vmul.f32 0.03125, %v107_v39  ;;  %2575 = vrsqrt.f32 %v2934_v43  ;;  %vm157_vm7 = vweird.f32 %v2934_v43 }
  0x8b   :  { %v322_v44 = vpop.xlane.xlu2 %321 }
  0x8c   :  { %v330_v45 = vmul.f32 %v2932_v41, %v2932_v41  ;;  %v129_v46 = vsub.f32 %v121_v42, %v125_v40  ;;  %v328_v47 = vmul.f32 0.03125, %v322_v44  ;;  %v334_v29 = vsub.f32 %v2856_v5, %v2932_v41  ;;  %v2988_v42 = vld [vmem:[%s3762_s3 + $0x48] sm:$0xff]  ;;  %v2993_v44 = vld [vmem:[%s3762_s3 + $0x50] sm:$0xff] }
  0x8e   :  { %v137_v48 = vadd.f32 1e-05, %v129_v46  ;;  %v332_v49 = vsub.f32 %v328_v47, %v330_v45  ;;  %v2515_v47 = vpack.i.bf16 %v2981_v35, %v2976_v34 }
  0x90   :  { %2577 = vrsqrt.f32 %v137_v48  ;;  %v336_v50 = vadd.f32 1e-05, %v332_v49  ;;  %v2941_v58 = vpop.eup %2575  ;;  %vm147_vm5 = vweird.f32 %v137_v48  ;;  %v133_v49 = vsub.f32 %v2848_v1, %v2928_v36  ;;  %2516 = vrot.lane.b32.xlu0 %v2515_v47, %s2798_s23  ;;  %v3011_v36 = vld [vmem:[%s3762_s3 + $0x8] sm:$0xff] }
  0x91   :  { %v113_v51 = vpop.xlane.xlu1 %112  ;;  %v97_v52 = vpop.xlane.xlu0 %96  ;;  %v152_v2 = vmul.f32 %v2941_v58, %v2934_v43  ;;  %vm158_vm8 = vweird.f32 %v2941_v58 }
  0x92   :  { %2579 = vrsqrt.f32 %v336_v50  ;;  %v123_v53 = vmul.f32 0.03125, %v113_v51  ;;  %v2939_v54 = vmul.f32 0.03125, %v97_v52  ;;  %vm344_vm1 = vweird.f32 %v336_v50  ;;  %vm159_vm9 = vmor %vm157_vm7, %vm158_vm8 }
  0x93   :  { %v2497_v55 = vpop.permute.xlu2 %2496  ;;  %v153_v17 = vmul.f32 %v2941_v58, %v152_v2 }
  0x94   :  { %v2498_v56 = vunpack.i.l.bf16 %v2497_v55  ;;  %v2499_v57 = vunpack.i.h.bf16 %v2497_v55  ;;  %v127_v59 = vmul.f32 %v2939_v54, %v2939_v54 }
  0x95   :  { %v154_v24 = vmul.f32 0.5, %v153_v17 }
  0x96   :  { %v2578_v60 = vpop.eup %2577  ;;  %226 = vmatpush.msra.mxu0 %v2498_v56  ;;  %v131_v62 = vsub.f32 %v123_v53, %v127_v59 }
  0x97   :  { %v142_v61 = vmul.f32 %v2578_v60, %v137_v48  ;;  %vm148_vm3 = vweird.f32 %v2578_v60  ;;  %v155_v37 = vsub.f32 1.5, %v154_v24  ;;  %v2510_v48 = vpack.i.bf16 %v2993_v44, %v2988_v42 }
  0x98   :  { %v2580_v63 = vpop.eup %2579  ;;  %227 = vmatpush.msra.mxu0 %v2499_v57  ;;  %v2947_v7 = vadd.f32 1e-05, %v131_v62  ;;  %vm2969_vm6 = vmor %vm147_vm5, %vm148_vm3  ;;  %v3016_v57 = vld [vmem:[%s3762_s3 + $0x10] sm:$0xff]  ;;  %v134_v62 = vsub.f32 %v2843_v0, %v2924_v32  ;;  %vm418_vm5 = vcmask 130048  }
  0x99   :  { %v143_v3 = vmul.f32 %v2578_v60, %v142_v61  ;;  %v339_v4 = vmul.f32 %v2580_v63, %v336_v50  ;;  %v100_v8 = vpop.xlane.xlu1 %99  ;;  %vm345_vm2 = vweird.f32 %v2580_v63  ;;  %2511 = vrot.lane.b32.xlu1 %v2510_v48, %s2798_s23  ;;  %v156_v55 = vmul.f32 %v2941_v58, %v155_v37 }
  0x9a   :  { %2581 = vrsqrt.f32 %v2947_v7  ;;  %vm346_vm4 = vmor %vm344_vm1, %vm345_vm2  ;;  %v120_v38 = vmul.f32 0.03125, %v100_v8  ;;  %v2520_v59 = vpack.i.bf16 %v3016_v57, %v3011_v36  ;;  %vm167_vm11 = vweird.f32 %v2947_v7 }
  0x9b   :  { %v144_v10 = vmul.f32 0.5, %v143_v3  ;;  %v340_v12 = vmul.f32 %v2580_v63, %v339_v4 }
  0x9c   :  { %v128_v51 = vmul.f32 %v120_v38, %v120_v38  ;;  %2521 = vrot.lane.b32.xlu0 %v2520_v59, %s2798_s23  ;;  %v136_v18 = vsub.f32 %v2904_v20, %v120_v38 }
  0x9d   :  { %v341_v19 = vmul.f32 0.5, %v340_v12  ;;  %v145_v21 = vsub.f32 1.5, %v144_v10 }
  0x9f   :  { %v342_v23 = vsub.f32 1.5, %v341_v19  ;;  %v146_v25 = vmul.f32 %v2578_v60, %v145_v21 }
  0xa0   :  { %v2582_v26 = vpop.eup %2581 }
  0xa1   :  { %v2964_v27 = vpop.xlane.xlu1 %316  ;;  %v343_v28 = vmul.f32 %v2580_v63, %v342_v23  ;;  %v162_v30 = vmul.f32 %v2582_v26, %v2947_v7  ;;  %v150_v41 = vsel %vm2969_vm6, %v2578_v60, %v146_v25  ;;  %v160_v60 = vsel %vm159_vm9, %v2941_v58, %v156_v55 }
  0xa2   :  { %v181_v52 = vmul.f32 %v150_v41, %v133_v49  ;;  %v182_v2 = vmul.f32 %v160_v60, %v134_v62  ;;  %vm168_vm10 = vweird.f32 %v2582_v26  ;;  %v135_v58 = vsub.f32 %v2887_v14, %v2939_v54  ;;  %v3048_v60 = vld [vmem:[#allocation5] sm:$0x3f] }
  0xa3   :  { %v347_v31 = vsel %vm346_vm4, %v2580_v63, %v343_v28  ;;  %v163_v45 = vmul.f32 %v2582_v26, %v162_v30  ;;  %vm169_vm12 = vmor %vm167_vm11, %vm168_vm10  ;;  %v327_v23 = vmul.f32 0.03125, %v2964_v27  ;;  %vm274_vm4 = vcmask 523264  }
  0xa4   :  { %v2502_v39 = vpop.permute.xlu0 %2501  ;;  %v358_v40 = vmul.f32 %v347_v31, %v334_v29 }
  0xa5   :  { %v2503_v46 = vunpack.i.l.bf16 %v2502_v39  ;;  %v2504_v50 = vunpack.i.h.bf16 %v2502_v39  ;;  %v164_v56 = vmul.f32 0.5, %v163_v45  ;;  %v331_v14 = vmul.f32 %v327_v23, %v327_v23 }
  0xa6   :  { %2417 = vmatmul.msk.f32.vlgmr.msra.gmra.mxu2 %vm88_vm0, %v358_v40  ;;  %v335_v33 = vsub.f32 %v2908_v22, %v327_v23 }
  0xa7   :  { %228 = vmatpush.msra.mxu0 %v2503_v46  ;;  %v165_v61 = vsub.f32 1.5, %v164_v56 }
  0xa9   :  { %v116_v53 = vpop.xlane.xlu1 %115  ;;  %229 = vmatpush.msra.mxu0 %v2504_v50  ;;  %v166_v3 = vmul.f32 %v2582_v26, %v165_v61  ;;  %v185_v61 = vperm.slane %v3048_v60, 1 }
  0xaa   :  { %v124_v1 = vmul.f32 0.03125, %v116_v53  ;;  %2411 = vmatmul.msk.f32.vlgmr.msra.gmra.mxu0 %vm88_vm0, %v181_v52 }
  0xab   :  { %v170_v4 = vsel %vm169_vm12, %v2582_v26, %v166_v3 }
  0xac   :  { %v132_v43 = vsub.f32 %v124_v1, %v128_v51  ;;  %v183_v12 = vmul.f32 %v170_v4, %v135_v58  ;;  %v2507_v27 = vpop.permute.xlu0 %2506  ;;  %v3062_v4 = vperm.slane %v3048_v60, 0 }
  0xad   :  { %v2509_v40 = vunpack.i.h.bf16 %v2507_v27  ;;  %v2508_v41 = vunpack.i.l.bf16 %v2507_v27 }
  0xae   :  { %v140_v63 = vadd.f32 1e-05, %v132_v43 }
  0xaf   :  { %v3034_v47 = vsel %vm274_vm4, %v2508_v41, %v2509_v40 }
  0xb0   :  { %2583 = vrsqrt.f32 %v140_v63  ;;  %vm177_vm13 = vweird.f32 %v140_v63  ;;  %301 = vmatpush.msra.mxu1 %v3034_v47 }
  0xb2   :  { %2412 = vmatmul.msk.f32.gmra.mxu0 %vm88_vm0, %v182_v2 }
  0xb6   :  { %v2584_v8 = vpop.eup %2583 }
  0xb7   :  { %v172_v10 = vmul.f32 %v2584_v8, %v140_v63  ;;  %vm178_vm14 = vweird.f32 %v2584_v8 }
  0xb8   :  { %vm179_vm15 = vmor %vm177_vm13, %vm178_vm14 }
  0xb9   :  { %v173_v0 = vmul.f32 %v2584_v8, %v172_v10 }
  0xba   :  { %2413 = vmatmul.msk.f32.gmra.mxu0 %vm88_vm0, %v183_v12 }
  0xbb   :  { %v174_v32 = vmul.f32 0.5, %v173_v0 }
  0xbd   :  { %v175_v17 = vsub.f32 1.5, %v174_v32 }
  0xbf   :  { %v176_v19 = vmul.f32 %v2584_v8, %v175_v17 }
  0xc1   :  { %v180_v7 = vsel %vm179_vm15, %v2584_v8, %v176_v19 }
  0xc2   :  { %v184_v21 = vmul.f32 %v180_v7, %v136_v18 }
  0xc4   :  { %2414 = vmatmul.msk.f32.gmra.mxu0 %vm88_vm0, %v184_v21 }
  0xcc   :  { %v325_v54 = vpop.xlane.xlu2 %324 }
  0xcd   :  { %v329_v24 = vmul.f32 0.03125, %v325_v54 }
  0xcf   :  { %v333_v25 = vsub.f32 %v329_v24, %v331_v14 }
  0xd1   :  { %v337_v26 = vadd.f32 1e-05, %v333_v25 }
  0xd3   :  { %2585 = vrsqrt.f32 %v337_v26  ;;  %vm354_vm1 = vweird.f32 %v337_v26 }
  0xd9   :  { %v2586_v28 = vpop.eup %2585 }
  0xda   :  { %v349_v29 = vmul.f32 %v2586_v28, %v337_v26  ;;  %vm355_vm2 = vweird.f32 %v2586_v28 }
  0xdb   :  { %vm356_vm3 = vmor %vm354_vm1, %vm355_vm2  ;;  %vm783_vm2 = vcmask 785408  }
  0xdc   :  { %v350_v30 = vmul.f32 %v2586_v28, %v349_v29 }
  0xde   :  { %v351_v31 = vmul.f32 0.5, %v350_v30 }
  0xe0   :  { %v352_v20 = vsub.f32 1.5, %v351_v31 }
  0xe2   :  { %v353_v37 = vmul.f32 %v2586_v28, %v352_v20 }
  0xe4   :  { %v357_v38 = vsel %vm356_vm3, %v2586_v28, %v353_v37 }
  0xe5   :  { %v359_v39 = vmul.f32 %v357_v38, %v335_v33 }
  0xe7   :  { %2418 = vmatmul.msk.f32.gmra.mxu2 %vm88_vm0, %v359_v39 }
 0x102   :  { %v2517_v45 = vpop.permute.xlu0 %2516 }
 0x103   :  { %v2519_v50 = vunpack.i.h.bf16 %v2517_v45  ;;  %v2518_v51 = vunpack.i.l.bf16 %v2517_v45 }
 0x105   :  { %v3040_v55 = vsel %vm274_vm4, %v2518_v51, %v2519_v50 }
 0x106   :  { %3772 = vst [vmem:[#allocation11_spill] sm:$0xff] %v3040_v55 }
 0x10b   :  { %v2512_v46 = vpop.permute.xlu1 %2511 }
 0x10c   :  { %v2514_v48 = vunpack.i.h.bf16 %v2512_v46  ;;  %v2513_v49 = vunpack.i.l.bf16 %v2512_v46 }
 0x10e   :  { %v3037_v52 = vsel %vm274_vm4, %v2513_v49, %v2514_v48  ;;  %v2522_v53 = vpop.permute.xlu0 %2521 }
 0x10f   :  { %302 = vmatpush.msra.mxu1 %v3037_v52  ;;  %v2524_v56 = vunpack.i.h.bf16 %v2522_v53  ;;  %v2523_v1 = vunpack.i.l.bf16 %v2522_v53  ;;  %v2535_v53 = vpack.i.bf16 %v2953_v13, %v2861_v6 }
 0x111   :  { %303 = vmatpush.msra.mxu1 %v3040_v55  ;;  %v3043_v43 = vsel %vm274_vm4, %v2523_v1, %v2524_v56  ;;  %v2545_v1 = vpack.i.bf16 %v2976_v34, %v2878_v11  ;;  %v3112_v34 = vperm.slane %v3048_v60, 3 }
 0x112   :  { %3773 = vst [vmem:[#allocation12_spill] sm:$0xff] %v3043_v43 }
 0x113   :  { %304 = vmatpush.msra.mxu1 %v3043_v43 }
 0x114   :  { %2415 = vmatmul.msk.f32.vlgmr.msra.gmra.mxu1 %vm88_vm0, %v2856_v5 }
 0x11c   :  { %2416 = vmatmul.msk.f32.gmra.mxu1 %vm88_vm0, %v2908_v22 }
 0x127   :  { %v231_v59 = vpop.f32.mrf.mxu0 }
 0x128   :  { %v3053_v63 = vadd.f32 %v231_v59, %v185_v61 }
 0x129   :  { %v383_v8 = vpop.f32.mrf.mxu2 }
 0x12a   :  { %v384_v58 = vadd.f32 %v383_v8, %v3062_v4 }
 0x12f   :  { %v234_v62 = vpop.f32.mrf.mxu0 }
 0x130   :  { %v3055_v2 = vadd.f32 %v234_v62, %v185_v61 }
 0x132   :  { %2419 = vmatpush.xpose.msk.msra.mxu3 %vm88_vm0, %v3055_v2  ;;  %v2525_v3 = vpack.i.bf16 %v3053_v63, %v3055_v2 }
 0x134   :  { %2526 = vrot.lane.b32.xlu1 %v2525_v3, %s2797_s0 }
 0x136   :  { %2420 = vmatpush.xpose.msk.msra.mxu3 %vm88_vm0, %v3053_v63 }
 0x137   :  { %v237_v10 = vpop.f32.mrf.mxu0 }
 0x138   :  { %v3069_v0 = vadd.f32 %v237_v10, %v185_v61 }
 0x139   :  { %2421 = vmatmul.msk.f32.vlgmr.msra.gmra.mxu3 %vm88_vm0, %v384_v58 }
 0x141   :  { %v240_v12 = vpop.f32.mrf.mxu0 }
 0x142   :  { %v3071_v32 = vadd.f32 %v240_v12, %v185_v61  ;;  %v2550_v12 = vpack.i.bf16 %v3011_v36, %v2892_v15 }
 0x144   :  { %2423 = vmatpush.xpose.msk.msrb.mxu1 %vm88_vm0, %v3071_v32  ;;  %v2530_v17 = vpack.i.bf16 %v3069_v0, %v3071_v32 }
 0x146   :  { %2531 = vrot.lane.b32.xlu2 %v2530_v17, %s2797_s0 }
 0x148   :  { %2424 = vmatpush.xpose.msk.msrb.mxu1 %vm88_vm0, %v3069_v0 }
 0x14e   :  { %2536 = vrot.lane.b32.xlu2 %v2535_v53, %s2799_s11 }
 0x156   :  { %2546 = vrot.lane.b32.xlu2 %v2545_v1, %s2799_s11 }
 0x15e   :  { %2551 = vrot.lane.b32.xlu2 %v2550_v12, %s2799_s11 }
 0x16a   :  { %v386_v18 = vpop.f32.mrf.mxu2 }
 0x16b   :  { %v387_v19 = vadd.f32 %v386_v18, %v3062_v4 }
 0x16d   :  { %2425 = vmatmul.msk.f32.vlgmr.msrb.gmra.mxu1 %vm88_vm0, %v387_v19 }
 0x191   :  { %v306_v41 = vpop.f32.mrf.mxu1 }
 0x199   :  { %v309_v50 = vpop.f32.mrf.mxu1 }
 0x1a0   :  { %v2532_v7 = vpop.permute.xlu2 %2531 }
 0x1a1   :  { %v3082_v21 = vunpack.i.l.bf16 %v2532_v7  ;;  %v3084_v23 = vunpack.i.h.bf16 %v2532_v7  ;;  %v3115_v7 = vadd.f32 %v309_v50, %v3112_v34 }
 0x1a3   :  { %550 = vmatpush.msrb.mxu2 %v3082_v21  ;;  %653 = vrot.lane.b32.xlu2 %v3115_v7, %s2798_s23 }
 0x1a5   :  { %551 = vmatpush.msrb.mxu2 %v3084_v23 }
 0x1a6   :  { %v2527_v14 = vpop.permute.xlu1 %2526 }
 0x1a7   :  { %882 = vmatpush.msra.mxu2 %v3034_v47  ;;  %v3089_v54 = vunpack.i.l.bf16 %v2527_v14  ;;  %v3092_v24 = vunpack.i.h.bf16 %v2527_v14 }
 0x1a8   :  { %v2537_v50 = vpop.permute.xlu2 %2536 }
 0x1a9   :  { %883 = vmatpush.msra.mxu2 %v3037_v52  ;;  %467 = vmatpush.msrb.mxu3 %v3089_v54  ;;  %v2538_v53 = vunpack.i.l.bf16 %v2537_v50 }
 0x1ab   :  { %884 = vmatpush.msra.mxu2 %v3040_v55  ;;  %468 = vmatpush.msrb.mxu3 %v3092_v24 }
 0x1ad   :  { %885 = vmatpush.msra.mxu2 %v3043_v43 }
 0x1b0   :  { %v2547_v1 = vpop.permute.xlu2 %2546 }
 0x1bc   :  { %v415_v25 = vpop.f32.mrf.mxu3 }
 0x1bd   :  { %v419_v26 = vsel %vm418_vm5, %v415_v25, -inf }
 0x1be   :  { %v420_v28 = vrot.slane %v419_v26, 4 }
 0x1c0   :  { %v421_v29 = vmax.f32 %v419_v26, %v420_v28 }
 0x1c2   :  { %v422_v30 = vrot.slane %v421_v29, 2 }
 0x1c4   :  { %v423_v31 = vmax.f32 %v421_v29, %v422_v30 }
 0x1c6   :  { %v424_v20 = vrot.slane %v423_v31, 1 }
 0x1c8   :  { %v425_v33 = vmax.f32 %v423_v31, %v424_v20 }
 0x1ca   :  { %v426_v37 = vsub.f32 %v415_v25, %v425_v33 }
 0x1cc   :  { %v427_v38 = vmul.f32 1.442695, %v426_v37 }
 0x1ce   :  { %2587 = vpow2.f32 %v427_v38 }
 0x1d4   :  { %v2588_v39 = vpop.eup %2587 }
 0x1d5   :  { %v429_v27 = vsel %vm418_vm5, %v2588_v39, 0.0 }
 0x1d6   :  { %v430_v40 = vrot.slane %v429_v27, 4 }
 0x1d8   :  { %v431_v45 = vadd.f32 %v430_v40, %v429_v27  ;;  %v307_v40 = vadd.f32 %v306_v41, %v3112_v34 }
 0x1da   :  { %v432_v46 = vrot.slane %v431_v45, 2 }
 0x1dc   :  { %v433_v48 = vadd.f32 %v432_v46, %v431_v45  ;;  %v2540_v45 = vpack.i.bf16 %v2988_v42, %v2870_v9 }
 0x1de   :  { %v434_v49 = vrot.slane %v433_v48, 1 }
 0x1e0   :  { %v435_v51 = vadd.f32 %v434_v49, %v433_v48 }
 0x1e2   :  { %2589 = vrcp.f32 %v435_v51  ;;  %v2539_v51 = vunpack.i.h.bf16 %v2537_v50 }
 0x1e4   :  { %v3130_v41 = vsel %vm88_vm0, %v2538_v53, %v2539_v51 }
 0x1e5   :  { %598 = vmatpush.msra.mxu3 %v3130_v41 }
 0x1e8   :  { %v2590_v56 = vpop.eup %2589 }
 0x1e9   :  { %v437_v59 = vmul.f32 %v2590_v56, %v2588_v39 }
 0x1ea   :  { %v499_v61 = vpop.f32.mrf.mxu1 }
 0x1eb   :  { %v502_v62 = vsel %vm418_vm5, %v499_v61, -inf  ;;  %v438_v3 = vadd.f32 1e-08, %v437_v59  ;;  %v2549_v59 = vunpack.i.h.bf16 %v2547_v1 }
 0x1ec   :  { %v503_v8 = vrot.slane %v502_v62, 4 }
 0x1ed   :  { %v439_v58 = vsel %vm418_vm5, %v438_v3, 0.0 }
 0x1ee   :  { %v504_v10 = vmax.f32 %v502_v62, %v503_v8  ;;  %440 = vadd.xlane.f32.xlu0 %v439_v58  ;;  %v2552_v62 = vpop.permute.xlu2 %2551 }
 0x1ef   :  { %v2554_v8 = vunpack.i.h.bf16 %v2552_v62  ;;  %v2553_v58 = vunpack.i.l.bf16 %v2552_v62 }
 0x1f0   :  { %v505_v13 = vrot.slane %v504_v10, 2 }
 0x1f2   :  { %v506_v17 = vmax.f32 %v504_v10, %v505_v13 }
 0x1f4   :  { %v507_v18 = vrot.slane %v506_v17, 1 }
 0x1f6   :  { %v508_v19 = vmax.f32 %v506_v17, %v507_v18  ;;  %v3144_v18 = vsel %vm88_vm0, %v2553_v58, %v2554_v8 }
 0x1f7   :  { %3774 = vst [vmem:[#allocation13_spill] sm:$0xff] %v3144_v18 }
 0x1f8   :  { %v509_v14 = vsub.f32 %v499_v61, %v508_v19  ;;  %v2548_v61 = vunpack.i.l.bf16 %v2547_v1 }
 0x1fa   :  { %v510_v25 = vmul.f32 1.442695, %v509_v14  ;;  %v3140_v17 = vsel %vm88_vm0, %v2548_v61, %v2549_v59 }
 0x1fc   :  { %2591 = vpow2.f32 %v510_v25  ;;  %v3155_v25 = vperm.slane %v3048_v60, 2 }
 0x1fd   :  { %v654_v58 = vpop.permute.xlu2 %653 }
 0x1fe   :  { %3775 = vst [vmem:[#allocation14_spill] sm:$0xff] %v3155_v25 }
 0x202   :  { %v2592_v26 = vpop.eup %2591  ;;  %2541 = vrot.lane.b32.xlu0 %v2540_v45, %s2799_s11 }
 0x203   :  { %v512_v36 = vsel %vm418_vm5, %v2592_v26, 0.0 }
 0x204   :  { %v513_v28 = vrot.slane %v512_v36, 4 }
 0x206   :  { %v514_v29 = vadd.f32 %v513_v28, %v512_v36 }
 0x208   :  { %v515_v30 = vrot.slane %v514_v29, 2 }
 0x20a   :  { %v516_v31 = vadd.f32 %v515_v30, %v514_v29 }
 0x20c   :  { %v517_v20 = vrot.slane %v516_v31, 1 }
 0x20e   :  { %v518_v33 = vadd.f32 %v517_v20, %v516_v31 }
 0x210   :  { %2593 = vrcp.f32 %v518_v33 }
 0x216   :  { %v2594_v37 = vpop.eup %2593 }
 0x217   :  { %v520_v38 = vmul.f32 %v2594_v37, %v2592_v26 }
 0x219   :  { %v521_v39 = vadd.f32 1e-08, %v520_v38 }
 0x21b   :  { %v522_v27 = vsel %vm418_vm5, %v521_v39, 0.0 }
 0x21c   :  { %523 = vadd.xlane.f32.xlu1 %v522_v27 }
 0x235   :  { %651 = vrot.lane.b32.xlu1 %v307_v40, %s2798_s23 }
 0x23d   :  { %685 = vrot.lane.b32.xlu1 %v2908_v22, %s2799_s11 }
 0x261   :  { %v441_v46 = vpop.xlane.xlu0 %440 }
 0x262   :  { %2595 = vrcp.f32 %v441_v46 }
 0x268   :  { %v2596_v48 = vpop.eup %2595 }
 0x269   :  { %v443_v49 = vmul.f32 %v2596_v48, %v438_v3 }
 0x26b   :  { %2422 = vmatmul.msk.f32.vlgmr.msrb.gmra.mxu3 %vm418_vm5, %v443_v49 }
 0x274   :  { %v2542_v3 = vpop.permute.xlu0 %2541 }
 0x275   :  { %v2544_v10 = vunpack.i.h.bf16 %v2542_v3  ;;  %v2543_v13 = vunpack.i.l.bf16 %v2542_v3 }
 0x277   :  { %v3137_v12 = vsel %vm88_vm0, %v2543_v13, %v2544_v10 }
 0x278   :  { %599 = vmatpush.msra.mxu3 %v3137_v12 }
 0x27a   :  { %600 = vmatpush.msra.mxu3 %v3140_v17 }
 0x27c   :  { %601 = vmatpush.msra.mxu3 %v3144_v18 }
 0x27e   :  { %973 = vmatpush.msrb.mxu3 %v2861_v6 }
 0x280   :  { %974 = vmatpush.msrb.mxu3 %v2870_v9 }
 0x282   :  { %975 = vmatpush.msrb.mxu3 %v2878_v11 }
 0x284   :  { %976 = vmatpush.msrb.mxu3 %v2892_v15 }
 0x28f   :  { %v524_v22 = vpop.xlane.xlu1 %523 }
 0x290   :  { %2597 = vrcp.f32 %v524_v22 }
 0x296   :  { %v2598_v56 = vpop.eup %2597 }
 0x297   :  { %v526_v42 = vmul.f32 %v2598_v56, %v521_v39 }
 0x299   :  { %2426 = vmatmul.msk.f32.vlgmr.msrb.gmra.mxu2 %vm418_vm5, %v526_v42 }
 0x29a   :  { %1049 = vmatpush.msrb.mxu2 %v3089_v54 }
 0x29c   :  { %1050 = vmatpush.msrb.mxu2 %v3092_v24 }
 0x2a7   :  { %v652_v27 = vpop.permute.xlu1 %651 }
 0x2ee   :  { %v470_v19 = vpop.f32.mrf.mxu3 }
 0x2ef   :  { %2427 = vmatmul.msk.f32.vlgmr.msra.gmra.mxu3 %vm88_vm0, %v470_v19 }
 0x31c   :  { %v553_v14 = vpop.f32.mrf.mxu2 }
 0x31d   :  { %2428 = vmatmul.msk.f32.gmra.mxu3 %vm88_vm0, %v553_v14 }
 0x372   :  { %v603_v26 = vpop.f32.mrf.mxu3 }
 0x373   :  { %v604_v36 = vadd.f32 %v603_v26, %v3155_v25 }
 0x375   :  { %v609_v28 = vadd.f32 %v604_v36, %v307_v40 }
 0x377   :  { %v2429_v6 = vmul.f32 -1.442695, %v609_v28 }
 0x379   :  { %2599 = vpow2.f32 %v2429_v6 }
 0x37f   :  { %v2600_v9 = vpop.eup %2599 }
 0x380   :  { %v617_v29 = vadd.f32 1.0, %v2600_v9 }
 0x382   :  { %2601 = vrcp.f32 %v617_v29  ;;  %v630_v31 = vand.u32 2147483648, %v617_v29  ;;  %v628_v33 = vand.u32 2147483647, %v617_v29  ;;  %vm624_vm7 = vweird.f32 %v617_v29 }
 0x384   :  { %v631_v38 = vor.u32 1.1754944e-38, %v630_v31  ;;  %vm629_vm9 = vcmp.eq.f32.partialorder %v628_v33, 8.507059e+37 }
 0x388   :  { %v2602_v11 = vpop.eup %2601 }
 0x389   :  { %v620_v15 = vmul.f32 %v2602_v11, %v617_v29  ;;  %vm625_vm6 = vweird.f32 %v2602_v11 }
 0x38a   :  { %vm626_vm8 = vmor %vm624_vm7, %vm625_vm6 }
 0x38b   :  { %v621_v30 = vsub.f32 1.0, %v620_v15 }
 0x38d   :  { %v622_v20 = vmul.f32 %v2602_v11, %v621_v30 }
 0x38f   :  { %v623_v37 = vadd.f32 %v2602_v11, %v622_v20 }
 0x391   :  { %v627_v39 = vsel %vm626_vm8, %v2602_v11, %v623_v37 }
 0x392   :  { %v632_v40 = vsel %vm629_vm9, %v631_v38, %v627_v39 }
 0x393   :  { %v657_v45 = vmul.f32 %v652_v27, %v632_v40  ;;  %v671_v29 = vsub.f32 1.0, %v632_v40 }
 0x395   :  { %661 = vrot.lane.b32.xlu0 %v657_v45, %s2798_s23 }
 0x3a0   :  { %v606_v46 = vpop.f32.mrf.mxu3 }
 0x3a1   :  { %v607_v48 = vadd.f32 %v606_v46, %v3155_v25 }
 0x3a3   :  { %v610_v49 = vadd.f32 %v607_v48, %v3115_v7 }
 0x3a5   :  { %v2430_v50 = vmul.f32 -1.442695, %v610_v49 }
 0x3a7   :  { %2603 = vpow2.f32 %v2430_v50 }
 0x3ad   :  { %v2604_v51 = vpop.eup %2603 }
 0x3ae   :  { %v618_v53 = vadd.f32 1.0, %v2604_v51  ;;  %v58_v51 = vld [vmem:[%s3762_s3 + $0x38] sm:$0xff] }
 0x3b0   :  { %2605 = vrcp.f32 %v618_v53  ;;  %v645_v1 = vand.u32 2147483648, %v618_v53  ;;  %v643_v61 = vand.u32 2147483647, %v618_v53  ;;  %vm639_vm11 = vweird.f32 %v618_v53 }
 0x3b2   :  { %v646_v3 = vor.u32 1.1754944e-38, %v645_v1  ;;  %vm644_vm13 = vcmp.eq.f32.partialorder %v643_v61, 8.507059e+37  ;;  %v62_v61 = vld [vmem:[%s3762_s3 + $0x58] sm:$0xff] }
 0x3b6   :  { %v2606_v22 = vpop.eup %2605 }
 0x3b7   :  { %v635_v56 = vmul.f32 %v2606_v22, %v618_v53  ;;  %vm640_vm10 = vweird.f32 %v2606_v22  ;;  %v2565_v53 = vpack.i.bf16 %v58_v51, %v2981_v35 }
 0x3b8   :  { %vm641_vm12 = vmor %vm639_vm11, %vm640_vm10 }
 0x3b9   :  { %v636_v42 = vsub.f32 1.0, %v635_v56  ;;  %v66_v56 = vld [vmem:[%s3762_s3 + $0x78] sm:$0xff] }
 0x3ba   :  { %v2555_v1 = vpack.i.bf16 %v66_v56, %v2958_v16 }
 0x3bb   :  { %v637_v59 = vmul.f32 %v2606_v22, %v636_v42 }
 0x3bd   :  { %v638_v62 = vadd.f32 %v2606_v22, %v637_v59  ;;  %v54_v59 = vld [vmem:[%s3762_s3 + $0x18] sm:$0xff] }
 0x3be   :  { %v2570_v35 = vpack.i.bf16 %v54_v59, %v3016_v57 }
 0x3bf   :  { %v642_v8 = vsel %vm641_vm12, %v2606_v22, %v638_v62  ;;  %v2560_v62 = vpack.i.bf16 %v62_v61, %v2993_v44 }
 0x3c0   :  { %v647_v7 = vsel %vm644_vm13, %v646_v3, %v642_v8 }
 0x3c1   :  { %v658_v10 = vmul.f32 %v654_v58, %v647_v7  ;;  %v672_v20 = vsub.f32 1.0, %v647_v7 }
 0x3c3   :  { %663 = vrot.lane.b32.xlu2 %v658_v10, %s2798_s23 }
 0x3cb   :  { %683 = vrot.lane.b32.xlu2 %v2856_v5, %s2799_s11 }
 0x407   :  { %v662_v13 = vpop.permute.xlu0 %661 }
 0x408   :  { %v667_v19 = vadd.f32 %v662_v13, %v604_v36  ;;  %v686_v36 = vpop.permute.xlu1 %685 }
 0x409   :  { %v690_v37 = vmul.f32 %v686_v36, %v647_v7 }
 0x40a   :  { %2607 = vtanh.f32 %v667_v19 }
 0x410   :  { %v2608_v14 = vpop.eup %2607 }
 0x411   :  { %675 = vrot.lane.b32.xlu0 %v2608_v14, %s2797_s0 }
 0x41d   :  { %v664_v26 = vpop.permute.xlu2 %663 }
 0x41e   :  { %v668_v28 = vadd.f32 %v664_v26, %v607_v48 }
 0x420   :  { %2609 = vtanh.f32 %v668_v28 }
 0x425   :  { %v684_v9 = vpop.permute.xlu2 %683 }
 0x426   :  { %v2610_v6 = vpop.eup %2609  ;;  %v689_v15 = vmul.f32 %v684_v9, %v632_v40 }
 0x427   :  { %677 = vrot.lane.b32.xlu0 %v2610_v6, %s2797_s0 }
 0x483   :  { %v676_v11 = vpop.permute.xlu0 %675 }
 0x484   :  { %v681_v30 = vmul.f32 %v676_v11, %v671_v29 }
 0x486   :  { %v3166_v31 = vadd.f32 %v689_v15, %v681_v30 }
 0x488   :  { %695 = vrot.lane.b32.xlu2 %v3166_v31, %s2797_s0  ;;  %v707_v5 = vmul.f32 %v3166_v31, %v3166_v31 }
 0x48a   :  { %711 = vrot.lane.b32.xlu0 %v707_v5, %s2797_s0 }
 0x499   :  { %v678_v33 = vpop.permute.xlu0 %677 }
 0x49a   :  { %v682_v38 = vmul.f32 %v678_v33, %v672_v20 }
 0x49c   :  { %v3173_v39 = vadd.f32 %v690_v37, %v682_v38 }
 0x49e   :  { %697 = vrot.lane.b32.xlu1 %v3173_v39, %s2797_s0  ;;  %v708_v27 = vmul.f32 %v3173_v39, %v3173_v39 }
 0x4a0   :  { %713 = vrot.lane.b32.xlu2 %v708_v27, %s2797_s0 }
 0x4e2   :  { %v696_v40 = vpop.permute.xlu2 %695 }
 0x4e3   :  { %v701_v45 = vsel %vm88_vm0, %v696_v40, 0.0 }
 0x4e4   :  { %702 = vadd.xlane.f32.xlu0 %v701_v45 }
 0x4fa   :  { %v714_v46 = vpop.permute.xlu2 %713 }
 0x4fb   :  { %v720_v48 = vsel %vm88_vm0, %v714_v46, 0.0 }
 0x4fc   :  { %721 = vadd.xlane.f32.xlu0 %v720_v48  ;;  %v712_v49 = vpop.permute.xlu0 %711 }
 0x4fd   :  { %v717_v50 = vsel %vm88_vm0, %v712_v49, 0.0 }
 0x4fe   :  { %718 = vadd.xlane.f32.xlu1 %v717_v50 }
 0x510   :  { %v698_v22 = vpop.permute.xlu1 %697  ;;  %2566 = vrot.lane.b32.xlu0 %v2565_v53, %s2797_s0 }
 0x511   :  { %v704_v42 = vsel %vm88_vm0, %v698_v22, 0.0 }
 0x512   :  { %705 = vadd.xlane.f32.xlu2 %v704_v42 }
 0x517   :  { %2556 = vrot.lane.b32.xlu1 %v2555_v1, %s2797_s0 }
 0x51f   :  { %2571 = vrot.lane.b32.xlu1 %v2570_v35, %s2797_s0 }
 0x52a   :  { %2561 = vrot.lane.b32.xlu2 %v2560_v62, %s2797_s0 }
 0x557   :  { %v703_v3 = vpop.xlane.xlu0 %702 }
 0x558   :  { %v723_v16 = vmul.f32 0.03125, %v703_v3 }
 0x55a   :  { %v727_v58 = vmul.f32 %v723_v16, %v723_v16  ;;  %v731_v11 = vsub.f32 %v3166_v31, %v723_v16 }
 0x56f   :  { %v722_v14 = vpop.xlane.xlu0 %721 }
 0x570   :  { %v726_v15 = vmul.f32 0.03125, %v722_v14  ;;  %v3252_v14 = vld [vmem:[%s3763_s4 + $0x60] sm:$0xff] }
 0x571   :  { %v719_v8 = vpop.xlane.xlu1 %718 }
 0x572   :  { %v725_v7 = vmul.f32 0.03125, %v719_v8 }
 0x574   :  { %v729_v10 = vsub.f32 %v725_v7, %v727_v58 }
 0x576   :  { %v733_v13 = vadd.f32 1e-05, %v729_v10 }
 0x578   :  { %2611 = vrsqrt.f32 %v733_v13  ;;  %vm741_vm15 = vweird.f32 %v733_v13 }
 0x57e   :  { %v2612_v19 = vpop.eup %2611 }
 0x57f   :  { %v736_v57 = vmul.f32 %v2612_v19, %v733_v13  ;;  %vm742_vm14 = vweird.f32 %v2612_v19  ;;  %v3235_v13 = vld [vmem:[%s3763_s4 + $0x78] sm:$0xff] }
 0x580   :  { %vm743_vm1 = vmor %vm741_vm15, %vm742_vm14  ;;  %821 = vmatpush.msrb.mxu0 %v3235_v13 }
 0x581   :  { %v737_v26 = vmul.f32 %v2612_v19, %v736_v57  ;;  %v3246_v57 = vld [vmem:[%s3763_s4 + $0x68] sm:$0xff] }
 0x582   :  { %v2567_v20 = vpop.permute.xlu0 %2566 }
 0x583   :  { %v738_v28 = vmul.f32 0.5, %v737_v26  ;;  %v2569_v46 = vunpack.i.h.bf16 %v2567_v20  ;;  %v2568_v48 = vunpack.i.l.bf16 %v2567_v20  ;;  %v3258_v26 = vld [vmem:[%s3763_s4 + $0x58] sm:$0xff] }
 0x585   :  { %v739_v6 = vsub.f32 1.5, %v738_v28  ;;  %v706_v9 = vpop.xlane.xlu2 %705  ;;  %v3215_v22 = vsel %vm783_vm2, %v2568_v48, %v2569_v46  ;;  %v3264_v28 = vld [vmem:[%s3763_s4 + $0x50] sm:$0xff] }
 0x586   :  { %v724_v29 = vmul.f32 0.03125, %v706_v9  ;;  %v3276_v9 = vld [vmem:[%s3763_s4 + $0x40] sm:$0xff] }
 0x587   :  { %v740_v44 = vmul.f32 %v2612_v19, %v739_v6  ;;  %v3270_v6 = vld [vmem:[%s3763_s4 + $0x48] sm:$0xff] }
 0x588   :  { %v728_v30 = vmul.f32 %v724_v29, %v724_v29  ;;  %v732_v58 = vsub.f32 %v3173_v39, %v724_v29  ;;  %v3282_v29 = vld [vmem:[%s3763_s4 + $0x38] sm:$0xff] }
 0x589   :  { %v2557_v5 = vpop.permute.xlu1 %2556  ;;  %v744_v36 = vsel %vm743_vm1, %v2612_v19, %v740_v44  ;;  %v3240_v19 = vld [vmem:[%s3763_s4 + $0x70] sm:$0xff] }
 0x58a   :  { %v730_v33 = vsub.f32 %v726_v15, %v728_v30  ;;  %v2559_v37 = vunpack.i.h.bf16 %v2557_v5  ;;  %v2558_v38 = vunpack.i.l.bf16 %v2557_v5  ;;  %v755_v27 = vmul.f32 %v744_v36, %v731_v11  ;;  %822 = vmatpush.msrb.mxu0 %v3240_v19  ;;  %v3288_v44 = vld [vmem:[%s3763_s4 + $0x30] sm:$0xff]  ;;  %v3294_v11 = vld [vmem:[%s3763_s4 + $0x28] sm:$0xff]  ;;  %v3300_v15 = vld [vmem:[%s3763_s4 + $0x20] sm:$0xff] }
 0x58b   :  { %v3306_v30 = vld [vmem:[%s3763_s4 + $0x18] sm:$0xff]  ;;  %v3313_v36 = vld [vmem:[%s3763_s4 + $0x10] sm:$0xff] }
 0x58c   :  { %v734_v40 = vadd.f32 1e-05, %v730_v33  ;;  %759 = vrot.lane.b32.xlu0 %v755_v27, %s2797_s0  ;;  %v3207_v45 = vsel %vm783_vm2, %v2558_v38, %v2559_v37  ;;  %823 = vmatpush.msrb.mxu0 %v3246_v57  ;;  %v3325_v33 = vld [vmem:[%s3763_s4 + $0x8] sm:$0xff]  ;;  %v3331_v37 = vld [vmem:[%s3763_s4] sm:$0xff]  ;;  %v247_v38 = vperm.slane %v3048_v60, 5  ;;  %v3349_v27 = vperm.slane %v3048_v60, 4 }
 0x58d   :  { %v2562_v49 = vpop.permute.xlu2 %2561  ;;  %808 = vmatpush.msra.mxu1 %v3207_v45  ;;  %1319 = vmatpush.msra.mxu3 %v3207_v45 }
 0x58e   :  { %2613 = vrsqrt.f32 %v734_v40  ;;  %v2564_v50 = vunpack.i.h.bf16 %v2562_v49  ;;  %v2563_v51 = vunpack.i.l.bf16 %v2562_v49  ;;  %vm751_vm4 = vweird.f32 %v734_v40  ;;  %824 = vmatpush.msrb.mxu0 %v3252_v14 }
 0x590   :  { %v3212_v53 = vsel %vm783_vm2, %v2563_v51, %v2564_v50  ;;  %825 = vmatpush.msrb.mxu0 %v3258_v26 }
 0x591   :  { %v2572_v56 = vpop.permute.xlu1 %2571  ;;  %809 = vmatpush.msra.mxu1 %v3212_v53  ;;  %1320 = vmatpush.msra.mxu3 %v3212_v53 }
 0x592   :  { %v2574_v42 = vunpack.i.h.bf16 %v2572_v56  ;;  %v2573_v1 = vunpack.i.l.bf16 %v2572_v56  ;;  %826 = vmatpush.msrb.mxu0 %v3264_v28 }
 0x593   :  { %810 = vmatpush.msra.mxu1 %v3215_v22  ;;  %1321 = vmatpush.msra.mxu3 %v3215_v22 }
 0x594   :  { %v2614_v59 = vpop.eup %2613  ;;  %v3222_v35 = vsel %vm783_vm2, %v2573_v1, %v2574_v42  ;;  %827 = vmatpush.msrb.mxu0 %v3270_v6  ;;  %855 = vrot.lane.b32.xlu0 %v247_v38, %s2799_s11 }
 0x595   :  { %v746_v61 = vmul.f32 %v2614_v59, %v734_v40  ;;  %811 = vmatpush.msra.mxu1 %v3222_v35  ;;  %1322 = vmatpush.msra.mxu3 %v3222_v35  ;;  %vm752_vm3 = vweird.f32 %v2614_v59 }
 0x596   :  { %vm753_vm6 = vmor %vm751_vm4, %vm752_vm3  ;;  %828 = vmatpush.msrb.mxu0 %v3276_v9 }
 0x597   :  { %2437 = vmatpush.xpose.msk.msrb.mxu1 %vm88_vm0, %v3055_v2  ;;  %v747_v62 = vmul.f32 %v2614_v59, %v746_v61 }
 0x598   :  { %829 = vmatpush.msrb.mxu0 %v3282_v29 }
 0x599   :  { %v748_v3 = vmul.f32 0.5, %v747_v62 }
 0x59a   :  { %830 = vmatpush.msrb.mxu0 %v3288_v44 }
 0x59b   :  { %2438 = vmatpush.xpose.msk.msrb.mxu1 %vm88_vm0, %v3053_v63  ;;  %v749_v16 = vsub.f32 1.5, %v748_v3 }
 0x59c   :  { %831 = vmatpush.msrb.mxu0 %v3294_v11 }
 0x59d   :  { %v750_v8 = vmul.f32 %v2614_v59, %v749_v16 }
 0x59e   :  { %832 = vmatpush.msrb.mxu0 %v3300_v15 }
 0x59f   :  { %v754_v7 = vsel %vm753_vm6, %v2614_v59, %v750_v8 }
 0x5a0   :  { %v756_v10 = vmul.f32 %v754_v7, %v732_v58  ;;  %833 = vmatpush.msrb.mxu0 %v3306_v30 }
 0x5a2   :  { %761 = vrot.lane.b32.xlu2 %v756_v10, %s2797_s0  ;;  %834 = vmatpush.msrb.mxu0 %v3313_v36 }
 0x5a4   :  { %835 = vmatpush.msrb.mxu0 %v3325_v33 }
 0x5a6   :  { %836 = vmatpush.msrb.mxu0 %v3331_v37 }
 0x5a8   :  { %1332 = vmatpush.msra.mxu0 %v3235_v13 }
 0x5aa   :  { %1333 = vmatpush.msra.mxu0 %v3240_v19 }
 0x5ac   :  { %1334 = vmatpush.msra.mxu0 %v3246_v57 }
 0x5ae   :  { %1335 = vmatpush.msra.mxu0 %v3252_v14 }
 0x5b0   :  { %1336 = vmatpush.msra.mxu0 %v3258_v26 }
 0x5b2   :  { %1337 = vmatpush.msra.mxu0 %v3264_v28 }
 0x5b4   :  { %1338 = vmatpush.msra.mxu0 %v3270_v6 }
 0x5b6   :  { %1339 = vmatpush.msra.mxu0 %v3276_v9 }
 0x5b8   :  { %1340 = vmatpush.msra.mxu0 %v3282_v29 }
 0x5ba   :  { %1341 = vmatpush.msra.mxu0 %v3288_v44 }
 0x5bc   :  { %1342 = vmatpush.msra.mxu0 %v3294_v11 }
 0x5be   :  { %1343 = vmatpush.msra.mxu0 %v3300_v15 }
 0x5c0   :  { %1344 = vmatpush.msra.mxu0 %v3306_v30 }
 0x5c2   :  { %1345 = vmatpush.msra.mxu0 %v3313_v36 }
 0x5c4   :  { %1346 = vmatpush.msra.mxu0 %v3325_v33 }
 0x5c6   :  { %1347 = vmatpush.msra.mxu0 %v3331_v37 }
 0x5fc   :  { %v762_v20 = vpop.permute.xlu2 %761 }
 0x5fe   :  { %v760_v5 = vpop.permute.xlu0 %759 }
 0x5ff   :  { %2431 = vmatmul.msk.f32.vlgmr.msra.gmra.mxu1 %vm88_vm0, %v760_v5 }
 0x600   :  { %2441 = vmatpush.xpose.msk.msra.mxu1 %vm88_vm0, %v3071_v32 }
 0x604   :  { %2442 = vmatpush.xpose.msk.msra.mxu1 %vm88_vm0, %v3069_v0 }
 0x606   :  { %v3375_v1 = vpop.permute.xlu0 %855 }
 0x607   :  { %2432 = vmatmul.msk.f32.gmra.mxu1 %vm88_vm0, %v762_v20 }
 0x67c   :  { %v813_v40 = vpop.f32.mrf.mxu1 }
 0x67d   :  { %v814_v46 = vadd.f32 %v813_v40, %v3349_v27 }
 0x67f   :  { %v819_v48 = vmax.f32 %v814_v46, 0.0 }
 0x681   :  { %837 = vmatmul.f32.vlgmr.msrb.gmra.mxu0 %v819_v48 }
 0x682   :  { %1839 = vmatpush.msrb.mxu0 %v3235_v13 }
 0x684   :  { %v816_v49 = vpop.f32.mrf.mxu1  ;;  %1840 = vmatpush.msrb.mxu0 %v3240_v19 }
 0x685   :  { %v817_v60 = vadd.f32 %v816_v49, %v3349_v27 }
 0x686   :  { %1841 = vmatpush.msrb.mxu0 %v3246_v57 }
 0x687   :  { %v820_v50 = vmax.f32 %v817_v60, 0.0 }
 0x688   :  { %1842 = vmatpush.msrb.mxu0 %v3252_v14 }
 0x689   :  { %840 = vmatmul.f32.gmra.mxu0 %v820_v50 }
 0x68a   :  { %1843 = vmatpush.msrb.mxu0 %v3258_v26 }
 0x68c   :  { %1844 = vmatpush.msrb.mxu0 %v3264_v28 }
 0x68e   :  { %1845 = vmatpush.msrb.mxu0 %v3270_v6 }
 0x690   :  { %1846 = vmatpush.msrb.mxu0 %v3276_v9 }
 0x692   :  { %1847 = vmatpush.msrb.mxu0 %v3282_v29 }
 0x694   :  { %1848 = vmatpush.msrb.mxu0 %v3288_v44 }
 0x696   :  { %1849 = vmatpush.msrb.mxu0 %v3294_v11 }
 0x698   :  { %1850 = vmatpush.msrb.mxu0 %v3300_v15 }
 0x69a   :  { %1851 = vmatpush.msrb.mxu0 %v3306_v30 }
 0x69c   :  { %1852 = vmatpush.msrb.mxu0 %v3313_v36 }
 0x69e   :  { %1853 = vmatpush.msrb.mxu0 %v3325_v33 }
 0x6a0   :  { %1854 = vmatpush.msrb.mxu0 %v3331_v37 }
 0x6fe   :  { %v838_v51 = vpop.f32.mrf.mxu0 }
 0x6ff   :  { %846 = vrot.lane.b32.xlu1 %v838_v51, %s2799_s11 }
 0x706   :  { %v841_v56 = vpop.f32.mrf.mxu0 }
 0x707   :  { %848 = vrot.lane.b32.xlu2 %v841_v56, %s2799_s11 }
 0x761   :  { %v849_v42 = vpop.permute.xlu2 %848 }
 0x762   :  { %v853_v59 = vadd.f32 %v849_v42, %v3173_v39 }
 0x764   :  { %v3379_v61 = vadd.f32 %v3375_v1, %v853_v59 }
 0x766   :  { %864 = vrot.lane.b32.xlu2 %v3379_v61, %s2797_s0  ;;  %v902_v39 = vmul.f32 %v3379_v61, %v3379_v61 }
 0x771   :  { %v847_v62 = vpop.permute.xlu1 %846 }
 0x772   :  { %v852_v3 = vadd.f32 %v847_v62, %v3166_v31 }
 0x774   :  { %v3385_v16 = vadd.f32 %v3375_v1, %v852_v3 }
 0x776   :  { %862 = vrot.lane.b32.xlu1 %v3385_v16, %s2797_s0  ;;  %v901_v8 = vmul.f32 %v3385_v16, %v3385_v16 }
 0x778   :  { %905 = vrot.lane.b32.xlu0 %v901_v8, %s2797_s0 }
 0x77e   :  { %907 = vrot.lane.b32.xlu1 %v902_v39, %s2797_s0 }
 0x7c0   :  { %v865_v58 = vpop.permute.xlu2 %864 }
 0x7c1   :  { %v898_v7 = vsel %vm88_vm0, %v865_v58, 0.0 }
 0x7c2   :  { %899 = vadd.xlane.f32.xlu1 %v898_v7 }
 0x7e8   :  { %v863_v31 = vpop.permute.xlu1 %862 }
 0x7e9   :  { %2433 = vmatmul.msk.f32.vlgmr.msra.gmra.mxu2 %vm88_vm0, %v863_v31  ;;  %v895_v10 = vsel %vm88_vm0, %v863_v31, 0.0 }
 0x7ea   :  { %1144 = vmatpush.msra.mxu2 %v3130_v41  ;;  %896 = vadd.xlane.f32.xlu0 %v895_v10  ;;  %v906_v5 = vpop.permute.xlu0 %905 }
 0x7eb   :  { %v911_v20 = vsel %vm88_vm0, %v906_v5, 0.0 }
 0x7ec   :  { %1145 = vmatpush.msra.mxu2 %v3137_v12  ;;  %912 = vadd.xlane.f32.xlu2 %v911_v20 }
 0x7ee   :  { %1146 = vmatpush.msra.mxu2 %v3140_v17 }
 0x7f0   :  { %1147 = vmatpush.msra.mxu2 %v3144_v18  ;;  %v908_v38 = vpop.permute.xlu1 %907 }
 0x7f1   :  { %2434 = vmatmul.msk.f32.gmra.mxu2 %vm88_vm0, %v865_v58  ;;  %v914_v40 = vsel %vm88_vm0, %v908_v38, 0.0 }
 0x7f2   :  { %915 = vadd.xlane.f32.xlu0 %v914_v40 }
 0x835   :  { %v900_v49 = vpop.xlane.xlu1 %899 }
 0x836   :  { %v918_v56 = vmul.f32 0.03125, %v900_v49 }
 0x838   :  { %v922_v3 = vmul.f32 %v918_v56, %v918_v56 }
 0x85d   :  { %v897_v46 = vpop.xlane.xlu0 %896 }
 0x85e   :  { %v917_v48 = vmul.f32 0.03125, %v897_v46 }
 0x85f   :  { %v913_v60 = vpop.xlane.xlu2 %912 }
 0x860   :  { %v921_v50 = vmul.f32 %v917_v48, %v917_v48  ;;  %v919_v51 = vmul.f32 0.03125, %v913_v60 }
 0x862   :  { %v923_v42 = vsub.f32 %v919_v51, %v921_v50  ;;  %v925_v50 = vsub.f32 %v3385_v16, %v917_v48 }
 0x864   :  { %v927_v59 = vadd.f32 1e-05, %v923_v42 }
 0x865   :  { %v916_v62 = vpop.xlane.xlu0 %915 }
 0x866   :  { %2615 = vrsqrt.f32 %v927_v59  ;;  %v920_v8 = vmul.f32 0.03125, %v916_v62  ;;  %vm935_vm8 = vweird.f32 %v927_v59 }
 0x868   :  { %v924_v39 = vsub.f32 %v920_v8, %v922_v3 }
 0x86a   :  { %v928_v7 = vadd.f32 1e-05, %v924_v39  ;;  %v926_v39 = vsub.f32 %v3379_v61, %v918_v56 }
 0x86c   :  { %v2616_v31 = vpop.eup %2615  ;;  %2617 = vrsqrt.f32 %v928_v7  ;;  %v3405_v46 = vpop.f32.mrf.mxu2  ;;  %vm945_vm11 = vweird.f32 %v928_v7 }
 0x86d   :  { %v930_v58 = vmul.f32 %v2616_v31, %v927_v59  ;;  %vm936_vm7 = vweird.f32 %v2616_v31 }
 0x86e   :  { %vm937_vm9 = vmor %vm935_vm8, %vm936_vm7 }
 0x86f   :  { %v931_v10 = vmul.f32 %v2616_v31, %v930_v58 }
 0x871   :  { %v932_v5 = vmul.f32 0.5, %v931_v10 }
 0x872   :  { %v2618_v20 = vpop.eup %2617 }
 0x873   :  { %v933_v38 = vsub.f32 1.5, %v932_v5  ;;  %v940_v40 = vmul.f32 %v2618_v20, %v928_v7  ;;  %vm946_vm10 = vweird.f32 %v2618_v20 }
 0x874   :  { %vm947_vm12 = vmor %vm945_vm11, %vm946_vm10  ;;  %v890_v58 = vpop.f32.mrf.mxu2 }
 0x875   :  { %v941_v49 = vmul.f32 %v2618_v20, %v940_v40  ;;  %v934_v60 = vmul.f32 %v2616_v31, %v933_v38  ;;  %v3411_v5 = vadd.f32 %v890_v58, %v3112_v34 }
 0x877   :  { %v942_v51 = vmul.f32 0.5, %v941_v49  ;;  %v938_v42 = vsel %vm937_vm9, %v2616_v31, %v934_v60 }
 0x878   :  { %v949_v62 = vmul.f32 %v938_v42, %v925_v50 }
 0x879   :  { %v943_v3 = vsub.f32 1.5, %v942_v51 }
 0x87a   :  { %953 = vrot.lane.b32.xlu2 %v949_v62, %s2797_s0 }
 0x87b   :  { %v944_v8 = vmul.f32 %v2618_v20, %v943_v3 }
 0x87d   :  { %v948_v10 = vsel %vm947_vm12, %v2618_v20, %v944_v8 }
 0x87e   :  { %v950_v59 = vmul.f32 %v948_v10, %v926_v39 }
 0x880   :  { %955 = vrot.lane.b32.xlu1 %v950_v59, %s2797_s0 }
 0x882   :  { %1199 = vrot.lane.b32.xlu2 %v3411_v5, %s2798_s23 }
 0x8d4   :  { %v954_v48 = vpop.permute.xlu2 %953 }
 0x8d5   :  { %2435 = vmatmul.msk.f32.vlgmr.msrb.gmra.mxu3 %vm88_vm0, %v954_v48 }
 0x8d6   :  { %2455 = vmatpush.xpose.msk.msrb.mxu3 %vm88_vm0, %v3055_v2 }
 0x8da   :  { %2456 = vmatpush.xpose.msk.msrb.mxu3 %vm88_vm0, %v3053_v63 }
 0x8f2   :  { %v956_v56 = vpop.permute.xlu1 %955 }
 0x8f3   :  { %2436 = vmatmul.msk.f32.gmra.mxu3 %vm88_vm0, %v956_v56 }
 0x958   :  { %v978_v7 = vpop.f32.mrf.mxu3 }
 0x959   :  { %v979_v31 = vadd.f32 %v978_v7, %v3062_v4 }
 0x95b   :  { %2439 = vmatmul.msk.f32.vlgmr.msrb.gmra.mxu1 %vm88_vm0, %v979_v31 }
 0x95c   :  { %1120 = vmatpush.msrb.mxu1 %v3082_v21 }
 0x95e   :  { %1121 = vmatpush.msrb.mxu1 %v3084_v23 }
 0x976   :  { %v981_v20 = vpop.f32.mrf.mxu3 }
 0x977   :  { %v982_v38 = vadd.f32 %v981_v20, %v3062_v4 }
 0x979   :  { %2443 = vmatmul.msk.f32.vlgmr.msra.gmra.mxu1 %vm88_vm0, %v982_v38 }
 0x97a   :  { %1389 = vmatpush.msra.mxu1 %v3034_v47 }
 0x97c   :  { %1390 = vmatpush.msra.mxu1 %v3037_v52 }
 0x97e   :  { %1391 = vmatpush.msra.mxu1 %v3040_v55 }
 0x980   :  { %1392 = vmatpush.msra.mxu1 %v3043_v43 }
 0x9d8   :  { %v1004_v40 = vpop.f32.mrf.mxu1 }
 0x9d9   :  { %v1007_v49 = vsel %vm418_vm5, %v1004_v40, -inf }
 0x9da   :  { %v1008_v60 = vrot.slane %v1007_v49, 4 }
 0x9dc   :  { %v1009_v50 = vmax.f32 %v1007_v49, %v1008_v60 }
 0x9de   :  { %v1010_v51 = vrot.slane %v1009_v50, 2 }
 0x9e0   :  { %v1011_v42 = vmax.f32 %v1009_v50, %v1010_v51 }
 0x9e2   :  { %v1012_v62 = vrot.slane %v1011_v42, 1 }
 0x9e4   :  { %v1013_v3 = vmax.f32 %v1011_v42, %v1012_v62 }
 0x9e6   :  { %v1014_v8 = vsub.f32 %v1004_v40, %v1013_v3 }
 0x9e8   :  { %v1015_v39 = vmul.f32 1.442695, %v1014_v8 }
 0x9ea   :  { %2619 = vpow2.f32 %v1015_v39 }
 0x9f0   :  { %v2620_v58 = vpop.eup %2619 }
 0x9f1   :  { %v1017_v10 = vsel %vm418_vm5, %v2620_v58, 0.0 }
 0x9f2   :  { %v1018_v59 = vrot.slane %v1017_v10, 4 }
 0x9f4   :  { %v1019_v48 = vadd.f32 %v1018_v59, %v1017_v10 }
 0x9f6   :  { %v1020_v56 = vrot.slane %v1019_v48, 2  ;;  %v1075_v7 = vpop.f32.mrf.mxu1 }
 0x9f7   :  { %v1078_v31 = vsel %vm418_vm5, %v1075_v7, -inf }
 0x9f8   :  { %v1079_v20 = vrot.slane %v1078_v31, 4  ;;  %v1021_v38 = vadd.f32 %v1020_v56, %v1019_v48 }
 0x9fa   :  { %v1080_v43 = vmax.f32 %v1078_v31, %v1079_v20  ;;  %v1022_v49 = vrot.slane %v1021_v38, 1 }
 0x9fc   :  { %v1081_v60 = vrot.slane %v1080_v43, 2  ;;  %v1023_v50 = vadd.f32 %v1022_v49, %v1021_v38 }
 0x9fe   :  { %v1082_v51 = vmax.f32 %v1080_v43, %v1081_v60  ;;  %2621 = vrcp.f32 %v1023_v50 }
 0xa00   :  { %v1083_v40 = vrot.slane %v1082_v51, 1 }
 0xa02   :  { %v1084_v42 = vmax.f32 %v1082_v51, %v1083_v40  ;;  %v888_v51 = vadd.f32 %v3405_v46, %v3112_v34  ;;  %v3463_v46 = vld [vmem:[%s3762_s3] sm:$0xff] }
 0xa04   :  { %v2622_v62 = vpop.eup %2621  ;;  %v1085_v3 = vsub.f32 %v1075_v7, %v1084_v42 }
 0xa05   :  { %v1025_v8 = vmul.f32 %v2622_v62, %v2620_v58 }
 0xa06   :  { %v1086_v39 = vmul.f32 1.442695, %v1085_v3  ;;  %v3445_v3 = vld [vmem:[%s3762_s3 + $0x60] sm:$0xff] }
 0xa07   :  { %v1026_v55 = vadd.f32 1e-08, %v1025_v8  ;;  %v3451_v8 = vld [vmem:[%s3762_s3 + $0x40] sm:$0xff] }
 0xa08   :  { %2623 = vpow2.f32 %v1086_v39 }
 0xa09   :  { %v1027_v10 = vsel %vm418_vm5, %v1026_v55, 0.0 }
 0xa0a   :  { %1028 = vadd.xlane.f32.xlu0 %v1027_v10 }
 0xa0e   :  { %v2624_v59 = vpop.eup %2623 }
 0xa0f   :  { %v1088_v48 = vsel %vm418_vm5, %v2624_v59, 0.0 }
 0xa10   :  { %v1089_v56 = vrot.slane %v1088_v48, 4 }
 0xa12   :  { %v1090_v31 = vadd.f32 %v1089_v56, %v1088_v48 }
 0xa14   :  { %v1091_v20 = vrot.slane %v1090_v31, 2 }
 0xa16   :  { %v1092_v38 = vadd.f32 %v1091_v20, %v1090_v31 }
 0xa18   :  { %v1093_v43 = vrot.slane %v1092_v38, 1 }
 0xa1a   :  { %v1094_v49 = vadd.f32 %v1093_v43, %v1092_v38 }
 0xa1c   :  { %2625 = vrcp.f32 %v1094_v49 }
 0xa22   :  { %v2626_v60 = vpop.eup %2625 }
 0xa23   :  { %v1096_v50 = vmul.f32 %v2626_v60, %v2624_v59 }
 0xa25   :  { %v1097_v7 = vadd.f32 1e-08, %v1096_v50 }
 0xa27   :  { %v1098_v58 = vsel %vm418_vm5, %v1097_v7, 0.0 }
 0xa28   :  { %1099 = vadd.xlane.f32.xlu0 %v1098_v58 }
 0xa3c   :  { %1197 = vrot.lane.b32.xlu0 %v888_v51, %s2798_s23 }
 0xa7d   :  { %v1029_v40 = vpop.xlane.xlu0 %1028 }
 0xa7e   :  { %2627 = vrcp.f32 %v1029_v40 }
 0xa84   :  { %v2628_v42 = vpop.eup %2627 }
 0xa85   :  { %v1031_v62 = vmul.f32 %v2628_v42, %v1026_v55  ;;  %v3457_v55 = vld [vmem:[%s3762_s3 + $0x20] sm:$0xff]  ;;  %s2800_s3 = smov [#allocation7]  }
 0xa87   :  { %2440 = vmatmul.msk.f32.vlgmr.msrb.gmra.mxu2 %vm418_vm5, %v1031_v62 }
 0xa88   :  { %1480 = vmatpush.msrb.mxu2 %v3445_v3 }
 0xa8a   :  { %1481 = vmatpush.msrb.mxu2 %v3451_v8 }
 0xa8c   :  { %1482 = vmatpush.msrb.mxu2 %v3457_v55 }
 0xa8e   :  { %1483 = vmatpush.msrb.mxu2 %v3463_v46 }
 0xa9b   :  { %v1100_v39 = vpop.xlane.xlu0 %1099 }
 0xa9c   :  { %2629 = vrcp.f32 %v1100_v39 }
 0xaa2   :  { %v2630_v10 = vpop.eup %2629 }
 0xaa3   :  { %v1102_v59 = vmul.f32 %v2630_v10, %v1097_v7 }
 0xaa5   :  { %2444 = vmatmul.msk.f32.vlgmr.msrb.gmra.mxu1 %vm418_vm5, %v1102_v59 }
 0xaa6   :  { %1556 = vmatpush.msrb.mxu1 %v3089_v54 }
 0xaa8   :  { %1557 = vmatpush.msrb.mxu1 %v3092_v24 }
 0xb0a   :  { %v1052_v48 = vpop.f32.mrf.mxu2 }
 0xb0b   :  { %2445 = vmatmul.msk.f32.vlgmr.msra.gmra.mxu2 %vm88_vm0, %v1052_v48 }
 0xb0c   :  { %1651 = vmatpush.msra.mxu2 %v3130_v41 }
 0xb0e   :  { %1652 = vmatpush.msra.mxu2 %v3137_v12 }
 0xb10   :  { %1653 = vmatpush.msra.mxu2 %v3140_v17 }
 0xb12   :  { %1654 = vmatpush.msra.mxu2 %v3144_v18 }
 0xb22   :  { %v1123_v56 = vpop.f32.mrf.mxu1 }
 0xb23   :  { %2446 = vmatmul.msk.f32.gmra.mxu2 %vm88_vm0, %v1123_v56 }
 0xb8e   :  { %v1149_v31 = vpop.f32.mrf.mxu2 }
 0xb8f   :  { %v1150_v20 = vadd.f32 %v1149_v31, %v3155_v25 }
 0xb91   :  { %v1155_v38 = vadd.f32 %v1150_v20, %v888_v51 }
 0xb93   :  { %v2447_v43 = vmul.f32 -1.442695, %v1155_v38  ;;  %v1198_v38 = vpop.permute.xlu0 %1197 }
 0xb95   :  { %2631 = vpow2.f32 %v2447_v43 }
 0xb9b   :  { %v2632_v49 = vpop.eup %2631 }
 0xb9c   :  { %v1163_v60 = vadd.f32 1.0, %v2632_v49 }
 0xb9e   :  { %2633 = vrcp.f32 %v1163_v60  ;;  %v1176_v62 = vand.u32 2147483648, %v1163_v60  ;;  %v1174_v59 = vand.u32 2147483647, %v1163_v60  ;;  %vm1170_vm14 = vweird.f32 %v1163_v60 }
 0xba0   :  { %v1177_v51 = vor.u32 1.1754944e-38, %v1176_v62  ;;  %vm1175_vm1 = vcmp.eq.f32.partialorder %v1174_v59, 8.507059e+37  ;;  %v1200_v59 = vpop.permute.xlu2 %1199 }
 0xba4   :  { %v2634_v50 = vpop.eup %2633 }
 0xba5   :  { %v1166_v7 = vmul.f32 %v2634_v50, %v1163_v60  ;;  %vm1171_vm13 = vweird.f32 %v2634_v50 }
 0xba6   :  { %v1152_v58 = vpop.f32.mrf.mxu2  ;;  %vm1172_vm15 = vmor %vm1170_vm14, %vm1171_vm13 }
 0xba7   :  { %v1153_v40 = vadd.f32 %v1152_v58, %v3155_v25  ;;  %v1167_v42 = vsub.f32 1.0, %v1166_v7 }
 0xba9   :  { %v1156_v39 = vadd.f32 %v1153_v40, %v3411_v5  ;;  %v1168_v10 = vmul.f32 %v2634_v50, %v1167_v42 }
 0xbab   :  { %v2448_v48 = vmul.f32 -1.442695, %v1156_v39  ;;  %v1169_v56 = vadd.f32 %v2634_v50, %v1168_v10 }
 0xbad   :  { %2635 = vpow2.f32 %v2448_v48  ;;  %v1173_v31 = vsel %vm1172_vm15, %v2634_v50, %v1169_v56 }
 0xbae   :  { %v1178_v43 = vsel %vm1175_vm1, %v1177_v51, %v1173_v31 }
 0xbaf   :  { %v1203_v49 = vmul.f32 %v1198_v38, %v1178_v43 }
 0xbb1   :  { %1207 = vrot.lane.b32.xlu1 %v1203_v49, %s2798_s23 }
 0xbb3   :  { %v2636_v7 = vpop.eup %2635 }
 0xbb4   :  { %v1164_v58 = vadd.f32 1.0, %v2636_v7 }
 0xbb6   :  { %2637 = vrcp.f32 %v1164_v58  ;;  %v1191_v18 = vand.u32 2147483648, %v1164_v58  ;;  %v1189_v60 = vand.u32 2147483647, %v1164_v58  ;;  %vm1185_vm3 = vweird.f32 %v1164_v58 }
 0xbb8   :  { %v1192_v50 = vor.u32 1.1754944e-38, %v1191_v18  ;;  %vm1190_vm6 = vcmp.eq.f32.partialorder %v1189_v60, 8.507059e+37  ;;  %v1229_v60 = vmul.f32 %v1178_v43, %v3385_v16 }
 0xbbc   :  { %v2638_v5 = vpop.eup %2637 }
 0xbbd   :  { %v1181_v42 = vmul.f32 %v2638_v5, %v1164_v58  ;;  %vm1186_vm2 = vweird.f32 %v2638_v5 }
 0xbbe   :  { %vm1187_vm4 = vmor %vm1185_vm3, %vm1186_vm2 }
 0xbbf   :  { %v1182_v25 = vsub.f32 1.0, %v1181_v42 }
 0xbc1   :  { %v1183_v39 = vmul.f32 %v2638_v5, %v1182_v25 }
 0xbc3   :  { %v1184_v10 = vadd.f32 %v2638_v5, %v1183_v39 }
 0xbc5   :  { %v1188_v62 = vsel %vm1187_vm4, %v2638_v5, %v1184_v10 }
 0xbc6   :  { %v1193_v48 = vsel %vm1190_vm6, %v1192_v50, %v1188_v62 }
 0xbc7   :  { %v1204_v56 = vmul.f32 %v1200_v59, %v1193_v48  ;;  %v1218_v18 = vsub.f32 1.0, %v1193_v48  ;;  %v1230_v5 = vmul.f32 %v1193_v48, %v3379_v61 }
 0xbc9   :  { %1209 = vrot.lane.b32.xlu2 %v1204_v56, %s2798_s23 }
 0xc23   :  { %v1210_v51 = vpop.permute.xlu2 %1209  ;;  %v1208_v31 = vpop.permute.xlu1 %1207 }
 0xc24   :  { %v1214_v38 = vadd.f32 %v1210_v51, %v1153_v40  ;;  %v1213_v49 = vadd.f32 %v1208_v31, %v1150_v20  ;;  %v1217_v40 = vsub.f32 1.0, %v1178_v43 }
 0xc26   :  { %2639 = vtanh.f32 %v1214_v38 }
 0xc27   :  { %2641 = vtanh.f32 %v1213_v49 }
 0xc2c   :  { %v2640_v25 = vpop.eup %2639 }
 0xc2d   :  { %v2642_v7 = vpop.eup %2641  ;;  %1223 = vrot.lane.b32.xlu2 %v2640_v25, %s2797_s0 }
 0xc2e   :  { %1221 = vrot.lane.b32.xlu1 %v2642_v7, %s2797_s0 }
 0xc87   :  { %v1224_v58 = vpop.permute.xlu2 %1223 }
 0xc88   :  { %v1228_v42 = vmul.f32 %v1224_v58, %v1218_v18 }
 0xc8a   :  { %v3483_v39 = vadd.f32 %v1230_v5, %v1228_v42 }
 0xc8c   :  { %1237 = vrot.lane.b32.xlu2 %v3483_v39, %s2797_s0  ;;  %v1248_v61 = vmul.f32 %v3483_v39, %v3483_v39 }
 0xca0   :  { %v1222_v20 = vpop.permute.xlu1 %1221 }
 0xca1   :  { %v1227_v10 = vmul.f32 %v1222_v20, %v1217_v40 }
 0xca3   :  { %v3488_v50 = vadd.f32 %v1229_v60, %v1227_v10 }
 0xca5   :  { %1235 = vrot.lane.b32.xlu0 %v3488_v50, %s2797_s0  ;;  %v1247_v62 = vmul.f32 %v3488_v50, %v3488_v50 }
 0xca7   :  { %1251 = vrot.lane.b32.xlu1 %v1247_v62, %s2797_s0 }
 0xcad   :  { %1253 = vrot.lane.b32.xlu0 %v1248_v61, %s2797_s0 }
 0xce6   :  { %v1238_v59 = vpop.permute.xlu2 %1237 }
 0xce7   :  { %v1244_v48 = vsel %vm88_vm0, %v1238_v59, 0.0 }
 0xce8   :  { %1245 = vadd.xlane.f32.xlu0 %v1244_v48 }
 0xd17   :  { %v1236_v16 = vpop.permute.xlu0 %1235 }
 0xd18   :  { %v1241_v43 = vsel %vm88_vm0, %v1236_v16, 0.0 }
 0xd19   :  { %1242 = vadd.xlane.f32.xlu1 %v1241_v43  ;;  %v1252_v56 = vpop.permute.xlu1 %1251 }
 0xd1a   :  { %v1257_v51 = vsel %vm88_vm0, %v1252_v56, 0.0 }
 0xd1b   :  { %1258 = vadd.xlane.f32.xlu2 %v1257_v51 }
 0xd1f   :  { %v1254_v31 = vpop.permute.xlu0 %1253 }
 0xd20   :  { %v1260_v38 = vsel %vm88_vm0, %v1254_v31, 0.0 }
 0xd21   :  { %1261 = vadd.xlane.f32.xlu1 %v1260_v38 }
 0xd5b   :  { %v1246_v7 = vpop.xlane.xlu0 %1245 }
 0xd5c   :  { %v1264_v42 = vmul.f32 0.03125, %v1246_v7 }
 0xd5e   :  { %v1268_v10 = vmul.f32 %v1264_v42, %v1264_v42 }
 0xd8c   :  { %v1243_v49 = vpop.xlane.xlu1 %1242 }
 0xd8d   :  { %v1263_v25 = vmul.f32 0.03125, %v1243_v49 }
 0xd8e   :  { %v1259_v18 = vpop.xlane.xlu2 %1258 }
 0xd8f   :  { %v1267_v58 = vmul.f32 %v1263_v25, %v1263_v25  ;;  %v1265_v5 = vmul.f32 0.03125, %v1259_v18  ;;  %v1271_v18 = vsub.f32 %v3488_v50, %v1263_v25 }
 0xd91   :  { %v1269_v40 = vsub.f32 %v1265_v5, %v1267_v58 }
 0xd93   :  { %v1273_v20 = vadd.f32 1e-05, %v1269_v40 }
 0xd94   :  { %v1262_v60 = vpop.xlane.xlu1 %1261 }
 0xd95   :  { %2643 = vrsqrt.f32 %v1273_v20  ;;  %v1266_v62 = vmul.f32 0.03125, %v1262_v60  ;;  %vm1281_vm8 = vweird.f32 %v1273_v20 }
 0xd97   :  { %v1270_v61 = vsub.f32 %v1266_v62, %v1268_v10  ;;  %v1272_v62 = vsub.f32 %v3483_v39, %v1264_v42 }
 0xd99   :  { %v1274_v59 = vadd.f32 1e-05, %v1270_v61 }
 0xd9b   :  { %v2644_v48 = vpop.eup %2643  ;;  %2645 = vrsqrt.f32 %v1274_v59  ;;  %vm1291_vm11 = vweird.f32 %v1274_v59 }
 0xd9c   :  { %v1276_v16 = vmul.f32 %v2644_v48, %v1273_v20  ;;  %vm1282_vm7 = vweird.f32 %v2644_v48 }
 0xd9d   :  { %vm1283_vm9 = vmor %vm1281_vm8, %vm1282_vm7 }
 0xd9e   :  { %v1277_v43 = vmul.f32 %v2644_v48, %v1276_v16 }
 0xda0   :  { %v1278_v56 = vmul.f32 0.5, %v1277_v43 }
 0xda1   :  { %v2646_v51 = vpop.eup %2645 }
 0xda2   :  { %v1279_v31 = vsub.f32 1.5, %v1278_v56  ;;  %v1286_v38 = vmul.f32 %v2646_v51, %v1274_v59  ;;  %vm1292_vm10 = vweird.f32 %v2646_v51 }
 0xda3   :  { %vm1293_vm12 = vmor %vm1291_vm11, %vm1292_vm10 }
 0xda4   :  { %v1287_v49 = vmul.f32 %v2646_v51, %v1286_v38  ;;  %v1280_v7 = vmul.f32 %v2644_v48, %v1279_v31 }
 0xda6   :  { %v1288_v58 = vmul.f32 0.5, %v1287_v49  ;;  %v1284_v5 = vsel %vm1283_vm9, %v2644_v48, %v1280_v7 }
 0xda7   :  { %v1295_v40 = vmul.f32 %v1284_v5, %v1271_v18 }
 0xda8   :  { %v1289_v60 = vsub.f32 1.5, %v1288_v58 }
 0xda9   :  { %1299 = vrot.lane.b32.xlu2 %v1295_v40, %s2797_s0 }
 0xdaa   :  { %v1290_v10 = vmul.f32 %v2646_v51, %v1289_v60 }
 0xdac   :  { %v1294_v61 = vsel %vm1293_vm12, %v2646_v51, %v1290_v10 }
 0xdad   :  { %v1296_v16 = vmul.f32 %v1294_v61, %v1272_v62 }
 0xdaf   :  { %1301 = vrot.lane.b32.xlu0 %v1296_v16, %s2797_s0 }
 0xe03   :  { %v1300_v20 = vpop.permute.xlu2 %1299 }
 0xe04   :  { %2449 = vmatmul.msk.f32.vlgmr.msra.gmra.mxu3 %vm88_vm0, %v1300_v20 }
 0xe05   :  { %2459 = vmatpush.xpose.msk.msra.mxu3 %vm88_vm0, %v3071_v32 }
 0xe09   :  { %2460 = vmatpush.xpose.msk.msra.mxu3 %vm88_vm0, %v3069_v0 }
 0xe21   :  { %v1302_v25 = vpop.permute.xlu0 %1301 }
 0xe22   :  { %2450 = vmatmul.msk.f32.gmra.mxu3 %vm88_vm0, %v1302_v25 }
 0xe87   :  { %v1324_v59 = vpop.f32.mrf.mxu3 }
 0xe88   :  { %v1325_v42 = vadd.f32 %v1324_v59, %v3349_v27 }
 0xe8a   :  { %v1330_v48 = vmax.f32 %v1325_v42, 0.0 }
 0xe8c   :  { %1348 = vmatmul.f32.vlgmr.msra.gmra.mxu0 %v1330_v48 }
 0xe8d   :  { %2346 = vmatpush.msra.mxu0 %v3235_v13 }
 0xe8f   :  { %2347 = vmatpush.msra.mxu0 %v3240_v19 }
 0xe91   :  { %2348 = vmatpush.msra.mxu0 %v3246_v57 }
 0xe93   :  { %2349 = vmatpush.msra.mxu0 %v3252_v14 }
 0xe95   :  { %2350 = vmatpush.msra.mxu0 %v3258_v26 }
 0xe97   :  { %2351 = vmatpush.msra.mxu0 %v3264_v28 }
 0xe99   :  { %2352 = vmatpush.msra.mxu0 %v3270_v6 }
 0xe9b   :  { %2353 = vmatpush.msra.mxu0 %v3276_v9 }
 0xe9d   :  { %2354 = vmatpush.msra.mxu0 %v3282_v29 }
 0xe9f   :  { %2355 = vmatpush.msra.mxu0 %v3288_v44 }
 0xea1   :  { %2356 = vmatpush.msra.mxu0 %v3294_v11 }
 0xea3   :  { %2357 = vmatpush.msra.mxu0 %v3300_v15 }
 0xea5   :  { %v1327_v13 = vpop.f32.mrf.mxu3  ;;  %2358 = vmatpush.msra.mxu0 %v3306_v30 }
 0xea6   :  { %v1328_v19 = vadd.f32 %v1327_v13, %v3349_v27 }
 0xea7   :  { %2359 = vmatpush.msra.mxu0 %v3313_v36 }
 0xea8   :  { %v1331_v57 = vmax.f32 %v1328_v19, 0.0 }
 0xea9   :  { %2360 = vmatpush.msra.mxu0 %v3325_v33 }
 0xeaa   :  { %1351 = vmatmul.f32.gmra.mxu0 %v1331_v57 }
 0xeab   :  { %2361 = vmatpush.msra.mxu0 %v3331_v37 }
 0xf09   :  { %v1349_v14 = vpop.f32.mrf.mxu0 }
 0xf0a   :  { %1357 = vrot.lane.b32.xlu1 %v1349_v14, %s2799_s11 }
 0xf27   :  { %v1352_v26 = vpop.f32.mrf.mxu0 }
 0xf28   :  { %1359 = vrot.lane.b32.xlu0 %v1352_v26, %s2799_s11 }
 0xf7c   :  { %v1358_v28 = vpop.permute.xlu1 %1357 }
 0xf7d   :  { %v1363_v6 = vadd.f32 %v1358_v28, %v3488_v50 }
 0xf7f   :  { %v3534_v9 = vadd.f32 %v1363_v6, %v3375_v1 }
 0xf81   :  { %1369 = vrot.lane.b32.xlu2 %v3534_v9, %s2797_s0  ;;  %v1408_v29 = vmul.f32 %v3534_v9, %v3534_v9 }
 0xf83   :  { %1412 = vrot.lane.b32.xlu0 %v1408_v29, %s2797_s0 }
 0xf9a   :  { %v1360_v44 = vpop.permute.xlu0 %1359 }
 0xf9b   :  { %v1364_v11 = vadd.f32 %v1360_v44, %v3483_v39 }
 0xf9d   :  { %v3543_v15 = vadd.f32 %v1364_v11, %v3375_v1 }
 0xf9f   :  { %1371 = vrot.lane.b32.xlu2 %v3543_v15, %s2797_s0  ;;  %v1409_v30 = vmul.f32 %v3543_v15, %v3543_v15 }
 0xfa1   :  { %1414 = vrot.lane.b32.xlu1 %v1409_v30, %s2797_s0 }
 0xfdb   :  { %v1370_v36 = vpop.permute.xlu2 %1369 }
 0xfdc   :  { %2451 = vmatmul.msk.f32.vlgmr.msra.gmra.mxu1 %vm88_vm0, %v1370_v36  ;;  %v1402_v33 = vsel %vm88_vm0, %v1370_v36, 0.0 }
 0xfdd   :  { %1627 = vmatpush.msra.mxu1 %v3082_v21  ;;  %1403 = vadd.xlane.f32.xlu0 %v1402_v33 }
 0xfdf   :  { %1628 = vmatpush.msra.mxu1 %v3084_v23 }
 0xff5   :  { %v1413_v37 = vpop.permute.xlu0 %1412 }
 0xff6   :  { %v1418_v39 = vsel %vm88_vm0, %v1413_v37, 0.0 }
 0xff7   :  { %1419 = vadd.xlane.f32.xlu2 %v1418_v39 }
 0xff9   :  { %v1372_v50 = vpop.permute.xlu2 %1371 }
 0xffa   :  { %2452 = vmatmul.msk.f32.gmra.mxu1 %vm88_vm0, %v1372_v50  ;;  %v1405_v43 = vsel %vm88_vm0, %v1372_v50, 0.0 }
 0xffb   :  { %1406 = vadd.xlane.f32.xlu1 %v1405_v43 }
0x1013   :  { %v1415_v56 = vpop.permute.xlu1 %1414 }
0x1014   :  { %v1421_v51 = vsel %vm88_vm0, %v1415_v56, 0.0 }
0x1015   :  { %1422 = vadd.xlane.f32.xlu2 %v1421_v51 }
0x1050   :  { %v1404_v31 = vpop.xlane.xlu0 %1403 }
0x1051   :  { %v1424_v38 = vmul.f32 0.03125, %v1404_v31 }
0x1053   :  { %v1428_v7 = vmul.f32 %v1424_v38, %v1424_v38  ;;  %v1432_v20 = vsub.f32 %v3534_v9, %v1424_v38 }
0x1059   :  { %v1394_v13 = vpop.f32.mrf.mxu1 }
0x105a   :  { %v3561_v26 = vadd.f32 %v1394_v13, %v3112_v34 }
0x106a   :  { %v1420_v49 = vpop.xlane.xlu2 %1419 }
0x106b   :  { %v1426_v18 = vmul.f32 0.03125, %v1420_v49 }
0x106d   :  { %v1430_v58 = vsub.f32 %v1426_v18, %v1428_v7 }
0x106e   :  { %v1407_v25 = vpop.xlane.xlu1 %1406 }
0x106f   :  { %v1434_v5 = vadd.f32 1e-05, %v1430_v58  ;;  %v1425_v48 = vmul.f32 0.03125, %v1407_v25 }
0x1071   :  { %2647 = vrsqrt.f32 %v1434_v5  ;;  %vm1442_vm14 = vweird.f32 %v1434_v5  ;;  %v1429_v57 = vmul.f32 %v1425_v48, %v1425_v48  ;;  %v1433_v37 = vsub.f32 %v3543_v15, %v1425_v48 }
0x1077   :  { %v2648_v40 = vpop.eup %2647 }
0x1078   :  { %v1437_v60 = vmul.f32 %v2648_v40, %v1434_v5  ;;  %vm1443_vm13 = vweird.f32 %v2648_v40 }
0x1079   :  { %vm1444_vm15 = vmor %vm1442_vm14, %vm1443_vm13 }
0x107a   :  { %v1438_v10 = vmul.f32 %v2648_v40, %v1437_v60 }
0x107c   :  { %v1439_v62 = vmul.f32 0.5, %v1438_v10 }
0x107e   :  { %v1440_v61 = vsub.f32 1.5, %v1439_v62 }
0x1080   :  { %v1441_v16 = vmul.f32 %v2648_v40, %v1440_v61 }
0x1082   :  { %v1445_v59 = vsel %vm1444_vm15, %v2648_v40, %v1441_v16 }
0x1083   :  { %v1456_v42 = vmul.f32 %v1445_v59, %v1432_v20 }
0x1085   :  { %1460 = vrot.lane.b32.xlu0 %v1456_v42, %s2797_s0 }
0x1088   :  { %v1423_v19 = vpop.xlane.xlu2 %1422 }
0x1089   :  { %v1427_v14 = vmul.f32 0.03125, %v1423_v19 }
0x108b   :  { %v1431_v28 = vsub.f32 %v1427_v14, %v1429_v57 }
0x108d   :  { %v1435_v6 = vadd.f32 1e-05, %v1431_v28  ;;  %1704 = vrot.lane.b32.xlu0 %v3561_v26, %s2798_s23 }
0x108f   :  { %2649 = vrsqrt.f32 %v1435_v6  ;;  %vm1452_vm2 = vweird.f32 %v1435_v6 }
0x1095   :  { %v2650_v29 = vpop.eup %2649 }
0x1096   :  { %v1447_v44 = vmul.f32 %v2650_v29, %v1435_v6  ;;  %vm1453_vm1 = vweird.f32 %v2650_v29 }
0x1097   :  { %vm1454_vm3 = vmor %vm1452_vm2, %vm1453_vm1 }
0x1098   :  { %v1448_v11 = vmul.f32 %v2650_v29, %v1447_v44 }
0x109a   :  { %v1449_v30 = vmul.f32 0.5, %v1448_v11 }
0x109c   :  { %v1450_v36 = vsub.f32 1.5, %v1449_v30 }
0x109e   :  { %v1451_v33 = vmul.f32 %v2650_v29, %v1450_v36 }
0x10a0   :  { %v1455_v39 = vsel %vm1454_vm3, %v2650_v29, %v1451_v33 }
0x10a1   :  { %v1457_v50 = vmul.f32 %v1455_v39, %v1433_v37 }
0x10a3   :  { %1462 = vrot.lane.b32.xlu1 %v1457_v50, %s2797_s0 }
0x10f7   :  { %v1461_v43 = vpop.permute.xlu0 %1460 }
0x10f8   :  { %2453 = vmatmul.msk.f32.vlgmr.msrb.gmra.mxu2 %vm88_vm0, %v1461_v43 }
0x10f9   :  { %1987 = vmatpush.msrb.mxu2 %v3445_v3 }
0x10fb   :  { %1988 = vmatpush.msrb.mxu2 %v3451_v8 }
0x10fd   :  { %1989 = vmatpush.msrb.mxu2 %v3457_v55 }
0x10ff   :  { %1990 = vmatpush.msrb.mxu2 %v3463_v46 }
0x1115   :  { %v1463_v56 = vpop.permute.xlu1 %1462 }
0x1116   :  { %2454 = vmatmul.msk.f32.gmra.mxu2 %vm88_vm0, %v1463_v56 }
0x117b   :  { %v1485_v51 = vpop.f32.mrf.mxu2 }
0x117c   :  { %v1486_v31 = vadd.f32 %v1485_v51, %v3062_v4 }
0x117e   :  { %2457 = vmatmul.msk.f32.vlgmr.msrb.gmra.mxu3 %vm88_vm0, %v1486_v31 }
0x117f   :  { %1826 = vmatpush.msrb.mxu3 %v3207_v45 }
0x1181   :  { %1827 = vmatpush.msrb.mxu3 %v3212_v53 }
0x1183   :  { %1828 = vmatpush.msrb.mxu3 %v3215_v22 }
0x1185   :  { %1829 = vmatpush.msrb.mxu3 %v3222_v35 }
0x1199   :  { %v1488_v3 = vpop.f32.mrf.mxu2 }
0x119a   :  { %v1489_v8 = vadd.f32 %v1488_v3, %v3062_v4 }
0x119c   :  { %2461 = vmatmul.msk.f32.vlgmr.msra.gmra.mxu3 %vm88_vm0, %v1489_v8 }
0x119d   :  { %2473 = vmatpush.xpose.msk.msra.mxu3 %vm88_vm0, %v3055_v2 }
0x11a1   :  { %2474 = vmatpush.xpose.msk.msra.mxu3 %vm88_vm0, %v3053_v63 }
0x1201   :  { %v1511_v55 = vpop.f32.mrf.mxu3 }
0x1202   :  { %v1514_v46 = vsel %vm418_vm5, %v1511_v55, -inf }
0x1203   :  { %v1515_v38 = vrot.slane %v1514_v46, 4 }
0x1205   :  { %v1516_v49 = vmax.f32 %v1514_v46, %v1515_v38  ;;  %v1397_v38 = vpop.f32.mrf.mxu1 }
0x1207   :  { %v1517_v7 = vrot.slane %v1516_v49, 2 }
0x1209   :  { %v1518_v18 = vmax.f32 %v1516_v49, %v1517_v7  ;;  %v1398_v49 = vadd.f32 %v1397_v38, %v3112_v34 }
0x120b   :  { %v1519_v58 = vrot.slane %v1518_v18, 1 }
0x120d   :  { %v1520_v5 = vmax.f32 %v1518_v18, %v1519_v58 }
0x120f   :  { %v1521_v40 = vsub.f32 %v1511_v55, %v1520_v5  ;;  %v3776_v5 = vld [vmem:[#allocation11_spill] sm:$0xff] }
0x1211   :  { %v1522_v60 = vmul.f32 1.442695, %v1521_v40  ;;  %v3777_v40 = vld [vmem:[#allocation12_spill] sm:$0xff] }
0x1213   :  { %2651 = vpow2.f32 %v1522_v60 }
0x1219   :  { %v2652_v10 = vpop.eup %2651 }
0x121a   :  { %v1524_v62 = vsel %vm418_vm5, %v2652_v10, 0.0 }
0x121b   :  { %v1525_v61 = vrot.slane %v1524_v62, 4 }
0x121d   :  { %v1526_v2 = vadd.f32 %v1525_v61, %v1524_v62 }
0x121f   :  { %v1527_v16 = vrot.slane %v1526_v2, 2  ;;  %v1582_v20 = vpop.f32.mrf.mxu3 }
0x1220   :  { %v1585_v63 = vsel %vm418_vm5, %v1582_v20, -inf }
0x1221   :  { %v1586_v25 = vrot.slane %v1585_v63, 4  ;;  %v1528_v59 = vadd.f32 %v1527_v16, %v1526_v2  ;;  %v3779_v16 = vld [vmem:[#allocation14_spill] sm:$0xff] }
0x1223   :  { %v1587_v42 = vmax.f32 %v1585_v63, %v1586_v25  ;;  %v1529_v48 = vrot.slane %v1528_v59, 1 }
0x1225   :  { %v1588_v13 = vrot.slane %v1587_v42, 2  ;;  %v1530_v19 = vadd.f32 %v1529_v48, %v1528_v59 }
0x1227   :  { %v1589_v57 = vmax.f32 %v1587_v42, %v1588_v13  ;;  %2653 = vrcp.f32 %v1530_v19 }
0x1229   :  { %v1590_v14 = vrot.slane %v1589_v57, 1 }
0x122b   :  { %v1591_v28 = vmax.f32 %v1589_v57, %v1590_v14 }
0x122d   :  { %v2654_v6 = vpop.eup %2653  ;;  %v1592_v29 = vsub.f32 %v1582_v20, %v1591_v28  ;;  %v1705_v28 = vpop.permute.xlu0 %1704 }
0x122e   :  { %v1532_v44 = vmul.f32 %v2654_v6, %v2652_v10 }
0x122f   :  { %v1593_v11 = vmul.f32 1.442695, %v1592_v29 }
0x1230   :  { %v1533_v30 = vadd.f32 1e-08, %v1532_v44 }
0x1231   :  { %2655 = vpow2.f32 %v1593_v11 }
0x1232   :  { %v1534_v36 = vsel %vm418_vm5, %v1533_v30, 0.0 }
0x1233   :  { %1535 = vadd.xlane.f32.xlu2 %v1534_v36 }
0x1237   :  { %v2656_v33 = vpop.eup %2655 }
0x1238   :  { %v1595_v37 = vsel %vm418_vm5, %v2656_v33, 0.0 }
0x1239   :  { %v1596_v39 = vrot.slane %v1595_v37, 4 }
0x123b   :  { %v1597_v50 = vadd.f32 %v1596_v39, %v1595_v37 }
0x123d   :  { %v1598_v43 = vrot.slane %v1597_v50, 2 }
0x123f   :  { %v1599_v56 = vadd.f32 %v1598_v43, %v1597_v50 }
0x1241   :  { %v1600_v51 = vrot.slane %v1599_v56, 1 }
0x1243   :  { %v1601_v31 = vadd.f32 %v1600_v51, %v1599_v56 }
0x1245   :  { %2657 = vrcp.f32 %v1601_v31 }
0x124b   :  { %v2658_v3 = vpop.eup %2657 }
0x124c   :  { %v1603_v8 = vmul.f32 %v2658_v3, %v2656_v33 }
0x124e   :  { %v1604_v55 = vadd.f32 1e-08, %v1603_v8 }
0x1250   :  { %v1605_v46 = vsel %vm418_vm5, %v1604_v55, 0.0 }
0x1251   :  { %1606 = vadd.xlane.f32.xlu2 %v1605_v46 }
0x1269   :  { %1706 = vrot.lane.b32.xlu2 %v1398_v49, %s2798_s23 }
0x12a6   :  { %v1536_v7 = vpop.xlane.xlu2 %1535 }
0x12a7   :  { %2659 = vrcp.f32 %v1536_v7 }
0x12ad   :  { %v2660_v18 = vpop.eup %2659 }
0x12ae   :  { %v1538_v58 = vmul.f32 %v2660_v18, %v1533_v30 }
0x12b0   :  { %2458 = vmatmul.msk.f32.vlgmr.msrb.gmra.mxu1 %vm418_vm5, %v1538_v58 }
0x12b1   :  { %1896 = vmatpush.msrb.mxu1 %v3034_v47  ;;  %v3778_v47 = vld [vmem:[#allocation13_spill] sm:$0xff] }
0x12b3   :  { %1897 = vmatpush.msrb.mxu1 %v3037_v52 }
0x12b5   :  { %1898 = vmatpush.msrb.mxu1 %v3776_v5 }
0x12b7   :  { %1899 = vmatpush.msrb.mxu1 %v3777_v40 }
0x12c4   :  { %v1607_v60 = vpop.xlane.xlu2 %1606 }
0x12c5   :  { %2661 = vrcp.f32 %v1607_v60 }
0x12cb   :  { %v2662_v10 = vpop.eup %2661 }
0x12cc   :  { %v1609_v62 = vmul.f32 %v2662_v10, %v1604_v55  ;;  %v1707_v8 = vpop.permute.xlu2 %1706 }
0x12ce   :  { %2462 = vmatmul.msk.f32.vlgmr.msra.gmra.mxu1 %vm418_vm5, %v1609_v62 }
0x12cf   :  { %2063 = vmatpush.msra.mxu1 %v3089_v54 }
0x12d1   :  { %2064 = vmatpush.msra.mxu1 %v3092_v24 }
0x132d   :  { %v1559_v61 = vpop.f32.mrf.mxu1 }
0x132e   :  { %2463 = vmatmul.msk.f32.vlgmr.msra.gmra.mxu2 %vm88_vm0, %v1559_v61 }
0x132f   :  { %2158 = vmatpush.msra.mxu2 %v3130_v41 }
0x1331   :  { %2159 = vmatpush.msra.mxu2 %v3137_v12 }
0x1333   :  { %2160 = vmatpush.msra.mxu2 %v3140_v17 }
0x1335   :  { %2161 = vmatpush.msra.mxu2 %v3778_v47 }
0x134b   :  { %v1630_v52 = vpop.f32.mrf.mxu1 }
0x134c   :  { %2464 = vmatmul.msk.f32.gmra.mxu2 %vm88_vm0, %v1630_v52 }
0x13b1   :  { %v1656_v2 = vpop.f32.mrf.mxu2 }
0x13b2   :  { %v1657_v20 = vadd.f32 %v1656_v2, %v3779_v16 }
0x13b4   :  { %v1662_v54 = vadd.f32 %v1657_v20, %v3561_v26 }
0x13b6   :  { %v2465_v24 = vmul.f32 -1.442695, %v1662_v54 }
0x13b8   :  { %2663 = vpow2.f32 %v2465_v24 }
0x13be   :  { %v2664_v63 = vpop.eup %2663 }
0x13bf   :  { %v1670_v25 = vadd.f32 1.0, %v2664_v63 }
0x13c1   :  { %2665 = vrcp.f32 %v1670_v25  ;;  %v1683_v42 = vand.u32 2147483648, %v1670_v25  ;;  %v1681_v48 = vand.u32 2147483647, %v1670_v25  ;;  %vm1677_vm6 = vweird.f32 %v1670_v25 }
0x13c3   :  { %v1684_v57 = vor.u32 1.1754944e-38, %v1683_v42  ;;  %vm1682_vm8 = vcmp.eq.f32.partialorder %v1681_v48, 8.507059e+37 }
0x13c7   :  { %v2666_v41 = vpop.eup %2665 }
0x13c8   :  { %v1673_v59 = vmul.f32 %v2666_v41, %v1670_v25  ;;  %vm1678_vm4 = vweird.f32 %v2666_v41 }
0x13c9   :  { %vm1679_vm7 = vmor %vm1677_vm6, %vm1678_vm4 }
0x13ca   :  { %v1674_v12 = vsub.f32 1.0, %v1673_v59 }
0x13cc   :  { %v1675_v17 = vmul.f32 %v2666_v41, %v1674_v12 }
0x13ce   :  { %v1676_v13 = vadd.f32 %v2666_v41, %v1675_v17 }
0x13cf   :  { %v1659_v19 = vpop.f32.mrf.mxu2 }
0x13d0   :  { %v1660_v14 = vadd.f32 %v1659_v19, %v3779_v16  ;;  %v1680_v26 = vsel %vm1679_vm7, %v2666_v41, %v1676_v13 }
0x13d1   :  { %v1685_v6 = vsel %vm1682_vm8, %v1684_v57, %v1680_v26 }
0x13d2   :  { %v1663_v29 = vadd.f32 %v1660_v14, %v1398_v49  ;;  %v1710_v44 = vmul.f32 %v1705_v28, %v1685_v6  ;;  %v1724_v40 = vsub.f32 1.0, %v1685_v6  ;;  %v1736_v10 = vmul.f32 %v1685_v6, %v3534_v9 }
0x13d4   :  { %v2466_v11 = vmul.f32 -1.442695, %v1663_v29  ;;  %1714 = vrot.lane.b32.xlu1 %v1710_v44, %s2798_s23 }
0x13d6   :  { %2667 = vpow2.f32 %v2466_v11 }
0x13dc   :  { %v2668_v30 = vpop.eup %2667 }
0x13dd   :  { %v1671_v36 = vadd.f32 1.0, %v2668_v30 }
0x13df   :  { %2669 = vrcp.f32 %v1671_v36  ;;  %v1698_v50 = vand.u32 2147483648, %v1671_v36  ;;  %v1696_v56 = vand.u32 2147483647, %v1671_v36  ;;  %vm1692_vm10 = vweird.f32 %v1671_v36 }
0x13e1   :  { %v1699_v31 = vor.u32 1.1754944e-38, %v1698_v50  ;;  %vm1697_vm12 = vcmp.eq.f32.partialorder %v1696_v56, 8.507059e+37 }
0x13e5   :  { %v2670_v33 = vpop.eup %2669 }
0x13e6   :  { %v1688_v37 = vmul.f32 %v2670_v33, %v1671_v36  ;;  %vm1693_vm9 = vweird.f32 %v2670_v33 }
0x13e7   :  { %vm1694_vm11 = vmor %vm1692_vm10, %vm1693_vm9 }
0x13e8   :  { %v1689_v39 = vsub.f32 1.0, %v1688_v37 }
0x13ea   :  { %v1690_v43 = vmul.f32 %v2670_v33, %v1689_v39 }
0x13ec   :  { %v1691_v51 = vadd.f32 %v2670_v33, %v1690_v43 }
0x13ee   :  { %v1695_v3 = vsel %vm1694_vm11, %v2670_v33, %v1691_v51 }
0x13ef   :  { %v1700_v55 = vsel %vm1697_vm12, %v1699_v31, %v1695_v3 }
0x13f0   :  { %v1711_v46 = vmul.f32 %v1707_v8, %v1700_v55  ;;  %v1725_v52 = vsub.f32 1.0, %v1700_v55 }
0x13f2   :  { %1716 = vrot.lane.b32.xlu0 %v1711_v46, %s2798_s23 }
0x1446   :  { %v1715_v38 = vpop.permute.xlu1 %1714 }
0x1447   :  { %v1720_v49 = vadd.f32 %v1715_v38, %v1657_v20  ;;  %v1737_v20 = vmul.f32 %v1700_v55, %v3543_v15 }
0x1449   :  { %2671 = vtanh.f32 %v1720_v49 }
0x144f   :  { %v2672_v7 = vpop.eup %2671 }
0x1450   :  { %1728 = vrot.lane.b32.xlu1 %v2672_v7, %s2797_s0 }
0x1464   :  { %v1717_v18 = vpop.permute.xlu0 %1716 }
0x1465   :  { %v1721_v58 = vadd.f32 %v1717_v18, %v1660_v14 }
0x1467   :  { %2673 = vtanh.f32 %v1721_v58 }
0x146d   :  { %v2674_v5 = vpop.eup %2673 }
0x146e   :  { %1730 = vrot.lane.b32.xlu0 %v2674_v5, %s2797_s0 }
0x14c2   :  { %v1729_v60 = vpop.permute.xlu1 %1728 }
0x14c3   :  { %v1734_v62 = vmul.f32 %v1729_v60, %v1724_v40 }
0x14c5   :  { %v3615_v61 = vadd.f32 %v1736_v10, %v1734_v62 }
0x14c7   :  { %1742 = vrot.lane.b32.xlu1 %v3615_v61, %s2797_s0  ;;  %v1754_v47 = vmul.f32 %v3615_v61, %v3615_v61 }
0x14c9   :  { %1758 = vrot.lane.b32.xlu0 %v1754_v47, %s2797_s0 }
0x14e0   :  { %v1731_v2 = vpop.permute.xlu0 %1730 }
0x14e1   :  { %v1735_v54 = vmul.f32 %v1731_v2, %v1725_v52 }
0x14e3   :  { %v3623_v24 = vadd.f32 %v1737_v20, %v1735_v54 }
0x14e5   :  { %1744 = vrot.lane.b32.xlu2 %v3623_v24, %s2797_s0  ;;  %v1755_v9 = vmul.f32 %v3623_v24, %v3623_v24 }
0x14e7   :  { %1760 = vrot.lane.b32.xlu1 %v1755_v9, %s2797_s0 }
0x1539   :  { %v1743_v63 = vpop.permute.xlu1 %1742 }
0x153a   :  { %v1748_v25 = vsel %vm88_vm0, %v1743_v63, 0.0 }
0x153b   :  { %1749 = vadd.xlane.f32.xlu0 %v1748_v25  ;;  %v1759_v41 = vpop.permute.xlu0 %1758 }
0x153c   :  { %v1764_v59 = vsel %vm88_vm0, %v1759_v41, 0.0 }
0x153d   :  { %1765 = vadd.xlane.f32.xlu2 %v1764_v59 }
0x153f   :  { %v1745_v15 = vpop.permute.xlu2 %1744 }
0x1540   :  { %v1751_v12 = vsel %vm88_vm0, %v1745_v15, 0.0 }
0x1541   :  { %1752 = vadd.xlane.f32.xlu1 %v1751_v12 }
0x1559   :  { %v1761_v42 = vpop.permute.xlu1 %1760 }
0x155a   :  { %v1767_v17 = vsel %vm88_vm0, %v1761_v42, 0.0 }
0x155b   :  { %1768 = vadd.xlane.f32.xlu0 %v1767_v17 }
0x15ae   :  { %v1750_v48 = vpop.xlane.xlu0 %1749 }
0x15af   :  { %v1770_v13 = vmul.f32 0.03125, %v1750_v48 }
0x15b0   :  { %v1766_v19 = vpop.xlane.xlu2 %1765 }
0x15b1   :  { %v1774_v57 = vmul.f32 %v1770_v13, %v1770_v13  ;;  %v1772_v14 = vmul.f32 0.03125, %v1766_v19  ;;  %v1778_v33 = vsub.f32 %v3615_v61, %v1770_v13 }
0x15b3   :  { %v1776_v26 = vsub.f32 %v1772_v14, %v1774_v57 }
0x15b4   :  { %v1753_v37 = vpop.xlane.xlu1 %1752 }
0x15b5   :  { %v1780_v28 = vadd.f32 1e-05, %v1776_v26  ;;  %v1771_v43 = vmul.f32 0.03125, %v1753_v37 }
0x15b7   :  { %2675 = vrsqrt.f32 %v1780_v28  ;;  %vm1788_vm14 = vweird.f32 %v1780_v28  ;;  %v1775_v51 = vmul.f32 %v1771_v43, %v1771_v43  ;;  %v1779_v58 = vsub.f32 %v3623_v24, %v1771_v43 }
0x15bd   :  { %v2676_v6 = vpop.eup %2675 }
0x15be   :  { %v1783_v29 = vmul.f32 %v2676_v6, %v1780_v28  ;;  %vm1789_vm13 = vweird.f32 %v2676_v6 }
0x15bf   :  { %vm1790_vm15 = vmor %vm1788_vm14, %vm1789_vm13 }
0x15c0   :  { %v1784_v44 = vmul.f32 %v2676_v6, %v1783_v29 }
0x15c2   :  { %v1785_v11 = vmul.f32 0.5, %v1784_v44 }
0x15c4   :  { %v1786_v30 = vsub.f32 1.5, %v1785_v11 }
0x15c6   :  { %v1787_v36 = vmul.f32 %v2676_v6, %v1786_v30 }
0x15c8   :  { %v1791_v39 = vsel %vm1790_vm15, %v2676_v6, %v1787_v36 }
0x15c9   :  { %v1802_v50 = vmul.f32 %v1791_v39, %v1778_v33 }
0x15cb   :  { %1806 = vrot.lane.b32.xlu2 %v1802_v50, %s2797_s0 }
0x15ce   :  { %v1769_v56 = vpop.xlane.xlu0 %1768 }
0x15cf   :  { %v1773_v31 = vmul.f32 0.03125, %v1769_v56 }
0x15d1   :  { %v1777_v3 = vsub.f32 %v1773_v31, %v1775_v51 }
0x15d3   :  { %v1781_v8 = vadd.f32 1e-05, %v1777_v3 }
0x15d5   :  { %2677 = vrsqrt.f32 %v1781_v8  ;;  %vm1798_vm2 = vweird.f32 %v1781_v8 }
0x15db   :  { %v2678_v55 = vpop.eup %2677 }
0x15dc   :  { %v1793_v46 = vmul.f32 %v2678_v55, %v1781_v8  ;;  %vm1799_vm1 = vweird.f32 %v2678_v55 }
0x15dd   :  { %vm1800_vm3 = vmor %vm1798_vm2, %vm1799_vm1 }
0x15de   :  { %v1794_v38 = vmul.f32 %v2678_v55, %v1793_v46 }
0x15e0   :  { %v1795_v49 = vmul.f32 0.5, %v1794_v38 }
0x15e2   :  { %v1796_v7 = vsub.f32 1.5, %v1795_v49 }
0x15e4   :  { %v1797_v18 = vmul.f32 %v2678_v55, %v1796_v7 }
0x15e6   :  { %v1801_v5 = vsel %vm1800_vm3, %v2678_v55, %v1797_v18 }
0x15e7   :  { %v1803_v40 = vmul.f32 %v1801_v5, %v1779_v58 }
0x15e9   :  { %1808 = vrot.lane.b32.xlu1 %v1803_v40, %s2797_s0 }
0x1625   :  { %v1807_v60 = vpop.permute.xlu2 %1806 }
0x1626   :  { %2467 = vmatmul.msk.f32.vlgmr.msrb.gmra.mxu3 %vm88_vm0, %v1807_v60 }
0x1627   :  { %2477 = vmatpush.xpose.msk.msrb.mxu3 %vm88_vm0, %v3071_v32 }
0x162b   :  { %2478 = vmatpush.xpose.msk.msrb.mxu3 %vm88_vm0, %v3069_v0 }
0x165b   :  { %v1809_v10 = vpop.permute.xlu1 %1808 }
0x165c   :  { %2468 = vmatmul.msk.f32.gmra.mxu3 %vm88_vm0, %v1809_v10 }
0x16a9   :  { %v1831_v62 = vpop.f32.mrf.mxu3 }
0x16aa   :  { %v1832_v47 = vadd.f32 %v1831_v62, %v3349_v27 }
0x16ac   :  { %v1837_v52 = vmax.f32 %v1832_v47, 0.0 }
0x16ae   :  { %1855 = vmatmul.f32.vlgmr.msrb.gmra.mxu0 %v1837_v52 }
0x16df   :  { %v1834_v2 = vpop.f32.mrf.mxu3 }
0x16e0   :  { %v1835_v20 = vadd.f32 %v1834_v2, %v3349_v27 }
0x16e2   :  { %v1838_v54 = vmax.f32 %v1835_v20, 0.0 }
0x16e4   :  { %1858 = vmatmul.f32.gmra.mxu0 %v1838_v54 }
0x172b   :  { %v1856_v9 = vpop.f32.mrf.mxu0 }
0x172c   :  { %1864 = vrot.lane.b32.xlu0 %v1856_v9, %s2799_s11 }
0x1761   :  { %v1859_v32 = vpop.f32.mrf.mxu0 }
0x1762   :  { %1866 = vrot.lane.b32.xlu2 %v1859_v32, %s2799_s11 }
0x179e   :  { %v1865_v0 = vpop.permute.xlu0 %1864 }
0x179f   :  { %v1870_v63 = vadd.f32 %v1865_v0, %v3615_v61 }
0x17a1   :  { %v3650_v25 = vadd.f32 %v1870_v63, %v3375_v1 }
0x17a3   :  { %1876 = vrot.lane.b32.xlu0 %v3650_v25, %s2797_s0  ;;  %v1915_v41 = vmul.f32 %v3650_v25, %v3650_v25 }
0x17a5   :  { %1919 = vrot.lane.b32.xlu1 %v1915_v41, %s2797_s0 }
0x17bc   :  { %v1867_v59 = vpop.permute.xlu2 %1866 }
0x17bd   :  { %v1871_v15 = vadd.f32 %v1867_v59, %v3623_v24 }
0x17bf   :  { %v3659_v12 = vadd.f32 %v1871_v15, %v3375_v1 }
0x17c1   :  { %1878 = vrot.lane.b32.xlu2 %v3659_v12, %s2797_s0  ;;  %v1916_v61 = vmul.f32 %v3659_v12, %v3659_v12 }
0x17c3   :  { %1921 = vrot.lane.b32.xlu0 %v1916_v61, %s2797_s0 }
0x1815   :  { %v1877_v42 = vpop.permute.xlu0 %1876 }
0x1816   :  { %2469 = vmatmul.msk.f32.vlgmr.msrb.gmra.mxu1 %vm88_vm0, %v1877_v42  ;;  %v1909_v17 = vsel %vm88_vm0, %v1877_v42, 0.0 }
0x1817   :  { %2134 = vmatpush.msrb.mxu1 %v3082_v21  ;;  %1910 = vadd.xlane.f32.xlu1 %v1909_v17  ;;  %v1920_v24 = vpop.permute.xlu1 %1919 }
0x1818   :  { %v1925_v48 = vsel %vm88_vm0, %v1920_v24, 0.0 }
0x1819   :  { %2135 = vmatpush.msrb.mxu1 %v3084_v23  ;;  %1926 = vadd.xlane.f32.xlu2 %v1925_v48 }
0x181b   :  { %v1879_v13 = vpop.permute.xlu2 %1878 }
0x181c   :  { %v1912_v19 = vsel %vm88_vm0, %v1879_v13, 0.0 }
0x181d   :  { %1913 = vadd.xlane.f32.xlu0 %v1912_v19 }
0x181e   :  { %2470 = vmatmul.msk.f32.gmra.mxu1 %vm88_vm0, %v1879_v13 }
0x1835   :  { %v1922_v57 = vpop.permute.xlu0 %1921 }
0x1836   :  { %v1928_v14 = vsel %vm88_vm0, %v1922_v57, 0.0 }
0x1837   :  { %1929 = vadd.xlane.f32.xlu1 %v1928_v14 }
0x188a   :  { %v1911_v26 = vpop.xlane.xlu1 %1910 }
0x188b   :  { %v1931_v28 = vmul.f32 0.03125, %v1911_v26 }
0x188c   :  { %v1927_v21 = vpop.xlane.xlu2 %1926 }
0x188d   :  { %v1935_v6 = vmul.f32 %v1931_v28, %v1931_v28  ;;  %v1933_v29 = vmul.f32 0.03125, %v1927_v21  ;;  %v1939_v50 = vsub.f32 %v3650_v25, %v1931_v28 }
0x188f   :  { %v1937_v44 = vsub.f32 %v1933_v29, %v1935_v6 }
0x1890   :  { %v1914_v43 = vpop.xlane.xlu0 %1913 }
0x1891   :  { %v1941_v11 = vadd.f32 1e-05, %v1937_v44  ;;  %v1932_v31 = vmul.f32 0.03125, %v1914_v43 }
0x1893   :  { %2679 = vrsqrt.f32 %v1941_v11  ;;  %vm1949_vm6 = vweird.f32 %v1941_v11  ;;  %v1936_v8 = vmul.f32 %v1932_v31, %v1932_v31  ;;  %v3676_v5 = vpop.f32.mrf.mxu1  ;;  %v1940_v10 = vsub.f32 %v3659_v12, %v1932_v31 }
0x1899   :  { %v2680_v23 = vpop.eup %2679 }
0x189a   :  { %v1944_v30 = vmul.f32 %v2680_v23, %v1941_v11  ;;  %vm1950_vm4 = vweird.f32 %v2680_v23 }
0x189b   :  { %vm1951_vm7 = vmor %vm1949_vm6, %vm1950_vm4  ;;  %v1904_v52 = vpop.f32.mrf.mxu1 }
0x189c   :  { %v1945_v36 = vmul.f32 %v2680_v23, %v1944_v30  ;;  %v3681_v2 = vadd.f32 %v1904_v52, %v3112_v34 }
0x189e   :  { %v1946_v33 = vmul.f32 0.5, %v1945_v36 }
0x18a0   :  { %v1947_v37 = vsub.f32 1.5, %v1946_v33 }
0x18a2   :  { %v1948_v39 = vmul.f32 %v2680_v23, %v1947_v37 }
0x18a4   :  { %v1952_v56 = vsel %vm1951_vm7, %v2680_v23, %v1948_v39 }
0x18a5   :  { %v1963_v51 = vmul.f32 %v1952_v56, %v1939_v50 }
0x18a7   :  { %1967 = vrot.lane.b32.xlu2 %v1963_v51, %s2797_s0 }
0x18aa   :  { %v1930_v3 = vpop.xlane.xlu1 %1929 }
0x18ab   :  { %v1934_v55 = vmul.f32 0.03125, %v1930_v3 }
0x18ad   :  { %v1938_v46 = vsub.f32 %v1934_v55, %v1936_v8 }
0x18af   :  { %v1942_v38 = vadd.f32 1e-05, %v1938_v46 }
0x18b1   :  { %2681 = vrsqrt.f32 %v1942_v38  ;;  %vm1959_vm9 = vweird.f32 %v1942_v38 }
0x18b7   :  { %v2682_v49 = vpop.eup %2681 }
0x18b8   :  { %v1954_v7 = vmul.f32 %v2682_v49, %v1942_v38  ;;  %vm1960_vm8 = vweird.f32 %v2682_v49 }
0x18b9   :  { %vm1961_vm10 = vmor %vm1959_vm9, %vm1960_vm8 }
0x18ba   :  { %v1955_v18 = vmul.f32 %v2682_v49, %v1954_v7 }
0x18bc   :  { %v1956_v58 = vmul.f32 0.5, %v1955_v18 }
0x18be   :  { %v1957_v40 = vsub.f32 1.5, %v1956_v58 }
0x18c0   :  { %v1958_v60 = vmul.f32 %v2682_v49, %v1957_v40  ;;  %v1902_v40 = vadd.f32 %v3676_v5, %v3112_v34 }
0x18c2   :  { %v1962_v62 = vsel %vm1961_vm10, %v2682_v49, %v1958_v60 }
0x18c3   :  { %v1964_v47 = vmul.f32 %v1962_v62, %v1940_v10 }
0x18c5   :  { %1969 = vrot.lane.b32.xlu0 %v1964_v47, %s2797_s0 }
0x18cd   :  { %2213 = vrot.lane.b32.xlu0 %v3681_v2, %s2798_s23 }
0x1901   :  { %v1968_v20 = vpop.permute.xlu2 %1967 }
0x1902   :  { %2471 = vmatmul.msk.f32.vlgmr.msrb.gmra.mxu2 %vm88_vm0, %v1968_v20 }
0x1937   :  { %v1970_v54 = vpop.permute.xlu0 %1969 }
0x1938   :  { %2472 = vmatmul.msk.f32.gmra.mxu2 %vm88_vm0, %v1970_v54 }
0x1985   :  { %v1992_v9 = vpop.f32.mrf.mxu2 }
0x1986   :  { %v1993_v32 = vadd.f32 %v1992_v9, %v3062_v4 }
0x1988   :  { %2475 = vmatmul.msk.f32.vlgmr.msra.gmra.mxu3 %vm88_vm0, %v1993_v32 }
0x1989   :  { %2333 = vmatpush.msra.mxu3 %v3207_v45 }
0x198b   :  { %2334 = vmatpush.msra.mxu3 %v3212_v53 }
0x198d   :  { %2335 = vmatpush.msra.mxu3 %v3215_v22 }
0x198f   :  { %2336 = vmatpush.msra.mxu3 %v3222_v35 }
0x19bb   :  { %v1995_v0 = vpop.f32.mrf.mxu2 }
0x19bc   :  { %v1996_v63 = vadd.f32 %v1995_v0, %v3062_v4 }
0x19be   :  { %2479 = vmatmul.msk.f32.vlgmr.msrb.gmra.mxu3 %vm88_vm0, %v1996_v63 }
0x1a0b   :  { %v2018_v41 = vpop.f32.mrf.mxu3 }
0x1a0c   :  { %v2021_v59 = vsel %vm418_vm5, %v2018_v41, -inf }
0x1a0d   :  { %v2022_v15 = vrot.slane %v2021_v59, 4 }
0x1a0f   :  { %v2023_v61 = vmax.f32 %v2021_v59, %v2022_v15 }
0x1a11   :  { %v2024_v42 = vrot.slane %v2023_v61, 2 }
0x1a13   :  { %v2025_v17 = vmax.f32 %v2023_v61, %v2024_v42 }
0x1a15   :  { %v2026_v24 = vrot.slane %v2025_v17, 1 }
0x1a17   :  { %v2027_v45 = vmax.f32 %v2025_v17, %v2026_v24 }
0x1a19   :  { %v2028_v48 = vsub.f32 %v2018_v41, %v2027_v45 }
0x1a1b   :  { %v2029_v53 = vmul.f32 1.442695, %v2028_v48 }
0x1a1d   :  { %2683 = vpow2.f32 %v2029_v53 }
0x1a23   :  { %v2684_v22 = vpop.eup %2683 }
0x1a24   :  { %v2031_v35 = vsel %vm418_vm5, %v2684_v22, 0.0 }
0x1a25   :  { %v2032_v13 = vrot.slane %v2031_v35, 4 }
0x1a27   :  { %v2033_v19 = vadd.f32 %v2032_v13, %v2031_v35 }
0x1a29   :  { %v2034_v4 = vrot.slane %v2033_v19, 2 }
0x1a2b   :  { %v2035_v57 = vadd.f32 %v2034_v4, %v2033_v19 }
0x1a2d   :  { %v2036_v14 = vrot.slane %v2035_v57, 1 }
0x1a2f   :  { %v2037_v26 = vadd.f32 %v2036_v14, %v2035_v57 }
0x1a31   :  { %2685 = vrcp.f32 %v2037_v26 }
0x1a37   :  { %v2686_v28 = vpop.eup %2685 }
0x1a38   :  { %v2039_v21 = vmul.f32 %v2686_v28, %v2684_v22 }
0x1a3a   :  { %v2040_v6 = vadd.f32 1e-08, %v2039_v21 }
0x1a3c   :  { %v2041_v29 = vsel %vm418_vm5, %v2040_v6, 0.0 }
0x1a3d   :  { %2042 = vadd.xlane.f32.xlu1 %v2041_v29 }
0x1a41   :  { %v2089_v44 = vpop.f32.mrf.mxu3 }
0x1a42   :  { %v2092_v11 = vsel %vm418_vm5, %v2089_v44, -inf }
0x1a43   :  { %v2093_v23 = vrot.slane %v2092_v11, 4 }
0x1a45   :  { %v2094_v30 = vmax.f32 %v2092_v11, %v2093_v23 }
0x1a47   :  { %v2095_v36 = vrot.slane %v2094_v30, 2 }
0x1a49   :  { %v2096_v33 = vmax.f32 %v2094_v30, %v2095_v36 }
0x1a4b   :  { %v2097_v37 = vrot.slane %v2096_v33, 1 }
0x1a4d   :  { %v2098_v39 = vmax.f32 %v2096_v33, %v2097_v37 }
0x1a4f   :  { %v2099_v50 = vsub.f32 %v2089_v44, %v2098_v39 }
0x1a51   :  { %v2100_v43 = vmul.f32 1.442695, %v2099_v50 }
0x1a53   :  { %2687 = vpow2.f32 %v2100_v43 }
0x1a59   :  { %v2688_v56 = vpop.eup %2687 }
0x1a5a   :  { %v2102_v51 = vsel %vm418_vm5, %v2688_v56, 0.0 }
0x1a5b   :  { %v2103_v31 = vrot.slane %v2102_v51, 4 }
0x1a5d   :  { %v2104_v3 = vadd.f32 %v2103_v31, %v2102_v51 }
0x1a5f   :  { %v2105_v8 = vrot.slane %v2104_v3, 2 }
0x1a61   :  { %v2106_v55 = vadd.f32 %v2105_v8, %v2104_v3 }
0x1a63   :  { %v2107_v46 = vrot.slane %v2106_v55, 1 }
0x1a65   :  { %v2108_v38 = vadd.f32 %v2107_v46, %v2106_v55 }
0x1a67   :  { %2689 = vrcp.f32 %v2108_v38 }
0x1a6d   :  { %v2690_v49 = vpop.eup %2689 }
0x1a6e   :  { %v2110_v7 = vmul.f32 %v2690_v49, %v2688_v56 }
0x1a70   :  { %v2111_v18 = vadd.f32 1e-08, %v2110_v7 }
0x1a72   :  { %v2112_v58 = vsel %vm418_vm5, %v2111_v18, 0.0 }
0x1a73   :  { %2113 = vadd.xlane.f32.xlu1 %v2112_v58 }
0x1a8c   :  { %2211 = vrot.lane.b32.xlu1 %v1902_v40, %s2798_s23 }
0x1ab0   :  { %v2043_v60 = vpop.xlane.xlu1 %2042 }
0x1ab1   :  { %2691 = vrcp.f32 %v2043_v60 }
0x1ab7   :  { %v2692_v10 = vpop.eup %2691 }
0x1ab8   :  { %v2045_v62 = vmul.f32 %v2692_v10, %v2040_v6 }
0x1aba   :  { %2476 = vmatmul.msk.f32.vlgmr.msra.gmra.mxu1 %vm418_vm5, %v2045_v62 }
0x1ae6   :  { %v2114_v47 = vpop.xlane.xlu1 %2113 }
0x1ae7   :  { %2693 = vrcp.f32 %v2114_v47 }
0x1aed   :  { %v2694_v52 = vpop.eup %2693 }
0x1aee   :  { %v2116_v20 = vmul.f32 %v2694_v52, %v2111_v18 }
0x1af0   :  { %2480 = vmatmul.msk.f32.vlgmr.msrb.gmra.mxu1 %vm418_vm5, %v2116_v20 }
0x1afe   :  { %v2212_v22 = vpop.permute.xlu1 %2211 }
0x1b37   :  { %v2066_v54 = vpop.f32.mrf.mxu1 }
0x1b38   :  { %2481 = vmatmul.msk.f32.vlgmr.msra.gmra.mxu2 %vm88_vm0, %v2066_v54 }
0x1b6d   :  { %v2137_v9 = vpop.f32.mrf.mxu1 }
0x1b6e   :  { %2482 = vmatmul.msk.f32.gmra.mxu2 %vm88_vm0, %v2137_v9 }
0x1bbb   :  { %v2163_v34 = vpop.f32.mrf.mxu2 }
0x1bbc   :  { %v2164_v5 = vadd.f32 %v2163_v34, %v3779_v16 }
0x1bbe   :  { %v2169_v32 = vadd.f32 %v2164_v5, %v1902_v40 }
0x1bc0   :  { %v2483_v0 = vmul.f32 -1.442695, %v2169_v32 }
0x1bc2   :  { %2695 = vpow2.f32 %v2483_v0 }
0x1bc8   :  { %v2696_v63 = vpop.eup %2695 }
0x1bc9   :  { %v2177_v41 = vadd.f32 1.0, %v2696_v63 }
0x1bcb   :  { %2697 = vrcp.f32 %v2177_v41  ;;  %v2190_v42 = vand.u32 2147483648, %v2177_v41  ;;  %v2188_v24 = vand.u32 2147483647, %v2177_v41  ;;  %vm2184_vm11 = vweird.f32 %v2177_v41 }
0x1bcd   :  { %v2191_v48 = vor.u32 1.1754944e-38, %v2190_v42  ;;  %vm2189_vm13 = vcmp.eq.f32.partialorder %v2188_v24, 8.507059e+37 }
0x1bd1   :  { %v2698_v59 = vpop.eup %2697 }
0x1bd2   :  { %v2180_v15 = vmul.f32 %v2698_v59, %v2177_v41  ;;  %vm2185_vm5 = vweird.f32 %v2698_v59 }
0x1bd3   :  { %vm2186_vm12 = vmor %vm2184_vm11, %vm2185_vm5 }
0x1bd4   :  { %v2181_v61 = vsub.f32 1.0, %v2180_v15 }
0x1bd6   :  { %v2182_v17 = vmul.f32 %v2698_v59, %v2181_v61 }
0x1bd8   :  { %v2183_v45 = vadd.f32 %v2698_v59, %v2182_v17 }
0x1bda   :  { %v2187_v53 = vsel %vm2186_vm12, %v2698_v59, %v2183_v45 }
0x1bdb   :  { %v2192_v35 = vsel %vm2189_vm13, %v2191_v48, %v2187_v53 }
0x1bdc   :  { %v2217_v13 = vmul.f32 %v2212_v22, %v2192_v35  ;;  %v2231_v3 = vsub.f32 1.0, %v2192_v35  ;;  %v2243_v55 = vmul.f32 %v2192_v35, %v3650_v25 }
0x1bde   :  { %2221 = vrot.lane.b32.xlu2 %v2217_v13, %s2798_s23 }
0x1bf1   :  { %v2166_v19 = vpop.f32.mrf.mxu2 }
0x1bf2   :  { %v2167_v4 = vadd.f32 %v2166_v19, %v3779_v16  ;;  %v2214_v16 = vpop.permute.xlu0 %2213 }
0x1bf4   :  { %v2170_v57 = vadd.f32 %v2167_v4, %v3681_v2 }
0x1bf6   :  { %v2484_v14 = vmul.f32 -1.442695, %v2170_v57 }
0x1bf8   :  { %2699 = vpow2.f32 %v2484_v14 }
0x1bfe   :  { %v2700_v26 = vpop.eup %2699 }
0x1bff   :  { %v2178_v28 = vadd.f32 1.0, %v2700_v26 }
0x1c01   :  { %2701 = vrcp.f32 %v2178_v28  ;;  %v2205_v44 = vand.u32 2147483648, %v2178_v28  ;;  %v2203_v23 = vand.u32 2147483647, %v2178_v28  ;;  %vm2199_vm15 = vweird.f32 %v2178_v28 }
0x1c03   :  { %v2206_v36 = vor.u32 1.1754944e-38, %v2205_v44  ;;  %vm2204_vm2 = vcmp.eq.f32.partialorder %v2203_v23, 8.507059e+37 }
0x1c07   :  { %v2702_v21 = vpop.eup %2701 }
0x1c08   :  { %v2195_v6 = vmul.f32 %v2702_v21, %v2178_v28  ;;  %vm2200_vm14 = vweird.f32 %v2702_v21 }
0x1c09   :  { %vm2201_vm1 = vmor %vm2199_vm15, %vm2200_vm14 }
0x1c0a   :  { %v2196_v29 = vsub.f32 1.0, %v2195_v6 }
0x1c0c   :  { %v2197_v11 = vmul.f32 %v2702_v21, %v2196_v29 }
0x1c0e   :  { %v2198_v30 = vadd.f32 %v2702_v21, %v2197_v11 }
0x1c10   :  { %v2202_v33 = vsel %vm2201_vm1, %v2702_v21, %v2198_v30 }
0x1c11   :  { %v2207_v2 = vsel %vm2204_vm2, %v2206_v36, %v2202_v33 }
0x1c12   :  { %v2218_v37 = vmul.f32 %v2214_v16, %v2207_v2  ;;  %v2232_v58 = vsub.f32 1.0, %v2207_v2  ;;  %v2244_v60 = vmul.f32 %v2207_v2, %v3659_v12 }
0x1c14   :  { %2223 = vrot.lane.b32.xlu0 %v2218_v37, %s2798_s23  ;;  %s2395_s23 = sshll.u32 %s2800_s3, 4  ;;  %s2396_s23 = int_to_ptr.vmem [resolvable:$true] %s2395_s23 }
0x1c38   :  { %v2222_v39 = vpop.permute.xlu2 %2221 }
0x1c39   :  { %v2227_v50 = vadd.f32 %v2222_v39, %v2164_v5 }
0x1c3b   :  { %2703 = vtanh.f32 %v2227_v50 }
0x1c41   :  { %v2704_v43 = vpop.eup %2703 }
0x1c42   :  { %2235 = vrot.lane.b32.xlu2 %v2704_v43, %s2797_s0 }
0x1c86   :  { %v2224_v56 = vpop.permute.xlu0 %2223 }
0x1c87   :  { %v2228_v51 = vadd.f32 %v2224_v56, %v2167_v4 }
0x1c89   :  { %2705 = vtanh.f32 %v2228_v51 }
0x1c8f   :  { %v2706_v31 = vpop.eup %2705 }
0x1c90   :  { %2237 = vrot.lane.b32.xlu0 %v2706_v31, %s2797_s0 }
0x1c9c   :  { %v2236_v8 = vpop.permute.xlu2 %2235 }
0x1c9d   :  { %v2241_v46 = vmul.f32 %v2236_v8, %v2231_v3 }
0x1c9f   :  { %v3716_v38 = vadd.f32 %v2243_v55, %v2241_v46 }
0x1ca1   :  { %2249 = vrot.lane.b32.xlu2 %v3716_v38, %s2797_s0  ;;  %v2261_v49 = vmul.f32 %v3716_v38, %v3716_v38 }
0x1ca3   :  { %2265 = vrot.lane.b32.xlu0 %v2261_v49, %s2797_s0 }
0x1cfb   :  { %v2250_v7 = vpop.permute.xlu2 %2249 }
0x1cfc   :  { %v2255_v18 = vsel %vm88_vm0, %v2250_v7, 0.0 }
0x1cfd   :  { %2256 = vadd.xlane.f32.xlu0 %v2255_v18 }
0x1d02   :  { %v2238_v40 = vpop.permute.xlu0 %2237 }
0x1d03   :  { %v2242_v25 = vmul.f32 %v2238_v40, %v2232_v58 }
0x1d05   :  { %v3725_v10 = vadd.f32 %v2244_v60, %v2242_v25 }
0x1d07   :  { %2251 = vrot.lane.b32.xlu1 %v3725_v10, %s2797_s0  ;;  %v2262_v62 = vmul.f32 %v3725_v10, %v3725_v10 }
0x1d09   :  { %2267 = vrot.lane.b32.xlu2 %v2262_v62, %s2797_s0 }
0x1d15   :  { %v2266_v47 = vpop.permute.xlu0 %2265 }
0x1d16   :  { %v2271_v52 = vsel %vm88_vm0, %v2266_v47, 0.0 }
0x1d31   :  { %2272 = vadd.xlane.f32.xlu1 %v2271_v52 }
0x1d63   :  { %v2268_v20 = vpop.permute.xlu2 %2267 }
0x1d64   :  { %v2274_v54 = vsel %vm88_vm0, %v2268_v20, 0.0 }
0x1d65   :  { %2275 = vadd.xlane.f32.xlu0 %v2274_v54 }
0x1d70   :  { %v2257_v34 = vpop.xlane.xlu0 %2256 }
0x1d71   :  { %v2277_v5 = vmul.f32 0.03125, %v2257_v34 }
0x1d73   :  { %v2281_v0 = vmul.f32 %v2277_v5, %v2277_v5  ;;  %v2285_v48 = vsub.f32 %v3716_v38, %v2277_v5 }
0x1d79   :  { %v2252_v12 = vpop.permute.xlu1 %2251 }
0x1d7a   :  { %v2258_v9 = vsel %vm88_vm0, %v2252_v12, 0.0 }
0x1d7b   :  { %2259 = vadd.xlane.f32.xlu2 %v2258_v9 }
0x1da4   :  { %v2273_v32 = vpop.xlane.xlu1 %2272 }
0x1da5   :  { %v2279_v63 = vmul.f32 0.03125, %v2273_v32 }
0x1da7   :  { %v2283_v41 = vsub.f32 %v2279_v63, %v2281_v0 }
0x1da9   :  { %v2287_v59 = vadd.f32 1e-05, %v2283_v41 }
0x1dab   :  { %2707 = vrsqrt.f32 %v2287_v59  ;;  %vm2295_vm4 = vweird.f32 %v2287_v59 }
0x1db1   :  { %v2708_v15 = vpop.eup %2707 }
0x1db2   :  { %v2290_v61 = vmul.f32 %v2708_v15, %v2287_v59  ;;  %vm2296_vm3 = vweird.f32 %v2708_v15 }
0x1db3   :  { %vm2297_vm6 = vmor %vm2295_vm4, %vm2296_vm3 }
0x1db4   :  { %v2291_v42 = vmul.f32 %v2708_v15, %v2290_v61 }
0x1db6   :  { %v2292_v17 = vmul.f32 0.5, %v2291_v42 }
0x1db8   :  { %v2293_v24 = vsub.f32 1.5, %v2292_v17 }
0x1dba   :  { %v2294_v45 = vmul.f32 %v2708_v15, %v2293_v24 }
0x1dbc   :  { %v2298_v53 = vsel %vm2297_vm6, %v2708_v15, %v2294_v45 }
0x1dbd   :  { %v2309_v22 = vmul.f32 %v2298_v53, %v2285_v48 }
0x1dbf   :  { %2313 = vrot.lane.b32.xlu1 %v2309_v22, %s2797_s0 }
0x1dd8   :  { %v2276_v35 = vpop.xlane.xlu0 %2275 }
0x1dd9   :  { %v2280_v4 = vmul.f32 0.03125, %v2276_v35 }
0x1dee   :  { %v2260_v13 = vpop.xlane.xlu2 %2259 }
0x1def   :  { %v2278_v19 = vmul.f32 0.03125, %v2260_v13 }
0x1df1   :  { %v2282_v57 = vmul.f32 %v2278_v19, %v2278_v19  ;;  %v2286_v23 = vsub.f32 %v3725_v10, %v2278_v19 }
0x1df3   :  { %v2284_v14 = vsub.f32 %v2280_v4, %v2282_v57 }
0x1df5   :  { %v2288_v26 = vadd.f32 1e-05, %v2284_v14 }
0x1df7   :  { %2709 = vrsqrt.f32 %v2288_v26  ;;  %vm2305_vm8 = vweird.f32 %v2288_v26 }
0x1dfd   :  { %v2710_v28 = vpop.eup %2709 }
0x1dfe   :  { %v2300_v21 = vmul.f32 %v2710_v28, %v2288_v26  ;;  %vm2306_vm7 = vweird.f32 %v2710_v28 }
0x1dff   :  { %vm2307_vm9 = vmor %vm2305_vm8, %vm2306_vm7 }
0x1e00   :  { %v2301_v6 = vmul.f32 %v2710_v28, %v2300_v21 }
0x1e02   :  { %v2302_v29 = vmul.f32 0.5, %v2301_v6 }
0x1e04   :  { %v2303_v44 = vsub.f32 1.5, %v2302_v29 }
0x1e06   :  { %v2304_v11 = vmul.f32 %v2710_v28, %v2303_v44 }
0x1e08   :  { %v2308_v30 = vsel %vm2307_vm9, %v2710_v28, %v2304_v11 }
0x1e09   :  { %v2310_v36 = vmul.f32 %v2308_v30, %v2286_v23 }
0x1e0b   :  { %2315 = vrot.lane.b32.xlu2 %v2310_v36, %s2797_s0 }
0x1e31   :  { %v2314_v33 = vpop.permute.xlu1 %2313 }
0x1e32   :  { %2485 = vmatmul.msk.f32.vlgmr.msra.gmra.mxu3 %vm88_vm0, %v2314_v33 }
0x1e65   :  { %v2316_v16 = vpop.permute.xlu2 %2315 }
0x1e66   :  { %2486 = vmatmul.msk.f32.gmra.mxu3 %vm88_vm0, %v2316_v16 }
0x1eb5   :  { %v2338_v2 = vpop.f32.mrf.mxu3 }
0x1eb6   :  { %v2339_v37 = vadd.f32 %v2338_v2, %v3349_v27 }
0x1eb8   :  { %v2344_v39 = vmax.f32 %v2339_v37, 0.0 }
0x1eba   :  { %2362 = vmatmul.f32.vlgmr.msra.gmra.mxu0 %v2344_v39 }
0x1ee9   :  { %v2341_v50 = vpop.f32.mrf.mxu3 }
0x1eea   :  { %v2342_v43 = vadd.f32 %v2341_v50, %v3349_v27 }
0x1eec   :  { %v2345_v56 = vmax.f32 %v2342_v43, 0.0 }
0x1eee   :  { %2365 = vmatmul.f32.gmra.mxu0 %v2345_v56 }
0x1f37   :  { %v2363_v51 = vpop.f32.mrf.mxu0 }
0x1f38   :  { %2371 = vrot.lane.b32.xlu0 %v2363_v51, %s2799_s11 }
0x1f6b   :  { %v2366_v31 = vpop.f32.mrf.mxu0 }
0x1f6c   :  { %2373 = vrot.lane.b32.xlu2 %v2366_v31, %s2799_s11 }
0x1faa   :  { %v2372_v3 = vpop.permute.xlu0 %2371 }
0x1fab   :  { %v2377_v8 = vadd.f32 %v2372_v3, %v3716_v38 }
0x1fad   :  { %v2379_v55 = vadd.f32 %v2377_v8, %v3375_v1 }
0x1faf   :  { %2383 = vrot.lane.b32.xlu1 %v2379_v55, %s2797_s0 }
0x1fc6   :  { %v2374_v46 = vpop.permute.xlu2 %2373 }
0x1fc7   :  { %v2378_v49 = vadd.f32 %v2374_v46, %v3725_v10 }
0x1fc9   :  { %v2380_v27 = vadd.f32 %v2378_v49, %v3375_v1 }
0x1fcb   :  { %2385 = vrot.lane.b32.xlu0 %v2380_v27, %s2797_s0 }
0x2021   :  { %v2384_v7 = vpop.permute.xlu1 %2383 }
0x2022   :  { %2389 = vst.msk [vmem:[#allocation7] sm:$0xff] %vm88_vm0, %v2384_v7 }
0x203d   :  { %v2386_v38 = vpop.permute.xlu0 %2385 }
0x203e   :  { %2390 = vst.msk [vmem:[#allocation7 + $0x8] sm:$0xff] %vm88_vm0, %v2386_v38 }
0x203f   :  { %2403 = dma.vmem_to_hbm [thread:$0]  %s2396_s23, 256, %s2398_s14, [#allocation4], %s2794_s26, %s2794_s26, %s2795_s27  }
0x2040   :  { %2791 = dma.done.wait [#allocation4], 256  }
0x2041   :  { %2792 = vsyncadd [#allocation4], 4294967040 }
0x2042   :  { %2408 = vsyncpa [#allocation3], 1 }
0x2043   :  { %2409 = vsyncpa [#allocation6], 1 }
0x2044   :  { %2410 = vsyncpa [#allocation4], 1 }

</bundles_post_ra>
